<compile_context>
chip_gen: v5e
topology: v5e:2x2
jax: 0.10.0
libtpu: 0.0.40
codegen_flags: <defaults>
</compile_context>

<pallas_src>
import jax
import jax.numpy as jnp
from jax.experimental import pallas as pl
from jax.experimental.pallas import tpu as pltpu

LANE = 128                      # lane width / channel padding
TM_MAX = 1024                   # M tile for large layers (multiple of 16)
VMEM_LIMIT = 32 * 1024 * 1024   # explicit scoped-VMEM cap, safe on v5e/v6e/v7x


def _round_up(x, m):
    return ((x + m - 1) // m) * m


def _choose_m_tiling(m):
    """Return (tile_m, padded_m)."""
    mp = _round_up(m, 8)
    if mp <= TM_MAX:
        return mp, mp                      # single M block
    return TM_MAX, _round_up(m, TM_MAX)


def _compiler_params():
    return pltpu.CompilerParams(
        dimension_semantics=("parallel",),
        vmem_limit_bytes=VMEM_LIMIT)


# ----------------------------- Pallas kernels ------------------------------

def _gemm_bias_relu_kernel(a_ref, b_ref, bias_ref, o_ref):
    """o = relu(A @ B + bias) for one (tm, Np) tile; full K in a single block."""
    y = jnp.dot(a_ref[...], b_ref[...], preferred_element_type=jnp.float32)
    o_ref[...] = jnp.maximum(y + bias_ref[...], 0.0).astype(o_ref.dtype)


def _gemm_stats_kernel(a_ref, b_ref, raw_ref, st_ref):
    """Pass 1 of a BN layer: raw GEMM tile (bf16) + per-tile sum / sumsq (f32).

    Partial stats are written per grid step into a distinct (1, 2, Np) block,
    so the grid stays 'parallel' (megacore-safe) and there is no serial tail.
    Zero-padded A rows give exactly-zero GEMM rows (no pre-BN bias), so they do
    not perturb the sums; the wrapper divides by the real row count.
    """
    y = jnp.dot(a_ref[...], b_ref[...], preferred_element_type=jnp.float32)
    raw_ref[...] = y.astype(raw_ref.dtype)
    s = jnp.sum(y, axis=0, keepdims=True)          # (1, Np)
    sq = jnp.sum(y * y, axis=0, keepdims=True)     # (1, Np)
    st_ref[...] = jnp.concatenate([s, sq], axis=0)[None, :, :]


def _bn_relu_kernel(raw_ref, sc_ref, sh_ref, o_ref):
    """Pass 2 of a BN layer: o = relu(raw * scale + shift), tiled over M."""
    x = raw_ref[...].astype(jnp.float32)
    o_ref[...] = jnp.maximum(x * sc_ref[...] + sh_ref[...], 0.0).astype(o_ref.dtype)


def _bn_relu_head_kernel(raw_ref, sc_ref, sh_ref, w_ref, o_ref):
    """Pass 2 of L5 fused with the L6 head.

    Normalize+ReLU the (tm, Np) tile, then reduce each group of `group`
    consecutive rows (= one image's 4x4 spatial map) against the head conv
    weight, producing one pre-sigmoid logit per image (bias+sigmoid in XLA).
    """
    group = w_ref.shape[0]                          # kh*kw of the head conv
    x = raw_ref[...].astype(jnp.float32)            # (tm, Np)
    xn = jnp.maximum(x * sc_ref[...] + sh_ref[...], 0.0)
    tm, npd = xn.shape
    xn3 = xn.reshape(tm // group, group, npd)       # layout-free split (16 % 8 == 0)
    w = w_ref[...].astype(jnp.float32)              # (group, Np)
    t = jnp.sum(xn3 * w[None, :, :], axis=-1)       # (tm//group, group)
    o_ref[...] = jnp.sum(t, axis=-1, keepdims=True)  # (tm//group, 1)


# ---------------------------- conv glue (im2col) ----------------------------

def _im2col(x_nhwc, k, stride, pad):
    n, h, w, c = x_nhwc.shape
    xp = jnp.pad(x_nhwc, ((0, 0), (pad, pad), (pad, pad), (0, 0)))
    ho = (h + 2 * pad - k) // stride + 1
    wo = (w + 2 * pad - k) // stride + 1
    cols = []
    for i in range(k):
        for j in range(k):
            cols.append(xp[:, i:i + stride * (ho - 1) + 1:stride,
                           j:j + stride * (wo - 1) + 1:stride, :])
    cols = jnp.stack(cols, axis=3)                    # (n, ho, wo, k*k, c)
    return cols.reshape(n * ho * wo, k * k * c), ho, wo


def _prep_gemm(x_nhwc, w_oihw, stride, pad):
    """bf16 GEMM operands (single-pad A) + bookkeeping for one conv layer."""
    cout, cin, kh, kw = w_oihw.shape
    cols, ho, wo = _im2col(x_nhwc.astype(jnp.bfloat16), kh, stride, pad)
    m, k = cols.shape
    tm, mp = _choose_m_tiling(m)
    kp = _round_up(k, LANE)
    np_ = _round_up(cout, LANE)
    a = jnp.pad(cols, ((0, mp - m), (0, kp - k)))            # bf16, one pad
    wmat = jnp.transpose(w_oihw, (2, 3, 1, 0)).reshape(k, cout).astype(jnp.bfloat16)
    b = jnp.pad(wmat, ((0, kp - k), (0, np_ - cout)))
    meta = dict(m=m, tm=tm, mp=mp, kp=kp, np_=np_, ho=ho, wo=wo, cout=cout)
    return a, b, meta


def _gemm_with_stats(a, b, meta):
    """Pass-1 pallas_call: tiled GEMM -> raw bf16 + per-tile f32 partial stats."""
    tm, mp, kp, np_ = meta['tm'], meta['mp'], meta['kp'], meta['np_']
    nt = mp // tm
    raw, stats = pl.pallas_call(
        _gemm_stats_kernel,
        out_shape=(jax.ShapeDtypeStruct((mp, np_), jnp.bfloat16),
                   jax.ShapeDtypeStruct((nt, 2, np_), jnp.float32)),
        grid_spec=pltpu.PrefetchScalarGridSpec(
            num_scalar_prefetch=0, grid=(nt,),
            in_specs=[pl.BlockSpec((tm, kp), lambda i: (i, 0)),
                      pl.BlockSpec((kp, np_), lambda i: (0, 0))],
            out_specs=[pl.BlockSpec((tm, np_), lambda i: (i, 0)),
                       pl.BlockSpec((1, 2, np_), lambda i: (i, 0, 0))]),
        compiler_params=_compiler_params(),
    )(a, b)
    return raw, stats


def _bn_scale_shift(stats, gamma, beta, m, np_, eps):
    """Tiny per-channel reduce of partial stats -> f32 (1,Np) scale / shift."""
    s = jnp.sum(stats[:, 0, :], axis=0)
    sq = jnp.sum(stats[:, 1, :], axis=0)
    mean = s / m
    var = jnp.maximum(sq / m - mean * mean, 0.0)     # single-pass, clamped
    g = jnp.pad(gamma.astype(jnp.float32), (0, np_ - gamma.shape[0]))
    bt = jnp.pad(beta.astype(jnp.float32), (0, np_ - beta.shape[0]))
    scale = g * jax.lax.rsqrt(var + eps)
    shift = bt - mean * scale
    return scale.reshape(1, np_), shift.reshape(1, np_)


# ------------------------------ layer wrappers -------------------------------

def conv2d_bias_relu(x_nhwc, w_oihw, bias, stride, pad):
    """Conv2d + bias + ReLU in one tiled pallas_call (bf16 in / bf16 out)."""
    a, b, meta = _prep_gemm(x_nhwc, w_oihw, stride, pad)
    m, tm, mp, kp, np_ = (meta[k] for k in ('m', 'tm', 'mp', 'kp', 'np_'))
    bias_p = jnp.pad(bias.astype(jnp.float32), (0, np_ - bias.shape[0])).reshape(1, np_)
    out = pl.pallas_call(
        _gemm_bias_relu_kernel,
        out_shape=jax.ShapeDtypeStruct((mp, np_), jnp.bfloat16),
        grid_spec=pltpu.PrefetchScalarGridSpec(
            num_scalar_prefetch=0, grid=(mp // tm,),
            in_specs=[pl.BlockSpec((tm, kp), lambda i: (i, 0)),
                      pl.BlockSpec((kp, np_), lambda i: (0, 0)),
                      pl.BlockSpec((1, np_), lambda i: (0, 0))],
            out_specs=pl.BlockSpec((tm, np_), lambda i: (i, 0))),
        compiler_params=_compiler_params(),
    )(a, b, bias_p)
    n = x_nhwc.shape[0]
    return out[:m, :meta['cout']].reshape(n, meta['ho'], meta['wo'], meta['cout'])


def conv2d_bn_relu(x_nhwc, w_oihw, gamma, beta, stride, pad, eps=1e-5):
    """Conv2d (no bias) + BatchNorm(batch stats) + ReLU, two tiled passes."""
    a, b, meta = _prep_gemm(x_nhwc, w_oihw, stride, pad)
    m, tm, mp, np_ = meta['m'], meta['tm'], meta['mp'], meta['np_']
    raw, stats = _gemm_with_stats(a, b, meta)
    scale, shift = _bn_scale_shift(stats, gamma, beta, m, np_, eps)
    out = pl.pallas_call(
        _bn_relu_kernel,
        out_shape=jax.ShapeDtypeStruct((mp, np_), jnp.bfloat16),
        grid_spec=pltpu.PrefetchScalarGridSpec(
            num_scalar_prefetch=0, grid=(mp // tm,),
            in_specs=[pl.BlockSpec((tm, np_), lambda i: (i, 0)),
                      pl.BlockSpec((1, np_), lambda i: (0, 0)),
                      pl.BlockSpec((1, np_), lambda i: (0, 0))],
            out_specs=pl.BlockSpec((tm, np_), lambda i: (i, 0))),
        compiler_params=_compiler_params(),
    )(raw, scale, shift)
    n = x_nhwc.shape[0]
    return out[:m, :meta['cout']].reshape(n, meta['ho'], meta['wo'], meta['cout'])


def conv2d_bn_relu_head(x_nhwc, w_oihw, gamma, beta, w_head, b_head,
                        stride, pad, eps=1e-5):
    """L5 (conv + BN + ReLU) with the L6 head conv fused into its normalize
    pass.  Returns the (N,) sigmoid output of the discriminator."""
    n = x_nhwc.shape[0]
    a, b, meta = _prep_gemm(x_nhwc, w_oihw, stride, pad)
    m, tm, mp, np_ = meta['m'], meta['tm'], meta['mp'], meta['np_']
    group = meta['ho'] * meta['wo']                 # spatial positions / image
    assert group == w_head.shape[2] * w_head.shape[3], "head conv must be full-map"
    assert tm % group == 0 and mp % group == 0

    raw, stats = _gemm_with_stats(a, b, meta)
    scale, shift = _bn_scale_shift(stats, gamma, beta, m, np_, eps)

    # Head weight (1, c5, kh, kw) OIHW -> (kh*kw, c5) in GEMM row order, pad lanes.
    c5 = w_head.shape[1]
    wh = jnp.transpose(w_head[0], (1, 2, 0)).reshape(group, c5).astype(jnp.float32)
    wh = jnp.pad(wh, ((0, 0), (0, np_ - c5)))

    logits = pl.pallas_call(
        _bn_relu_head_kernel,
        out_shape=jax.ShapeDtypeStruct((mp // group, 1), jnp.float32),
        grid_spec=pltpu.PrefetchScalarGridSpec(
            num_scalar_prefetch=0, grid=(mp // tm,),
            in_specs=[pl.BlockSpec((tm, np_), lambda i: (i, 0)),
                      pl.BlockSpec((1, np_), lambda i: (0, 0)),
                      pl.BlockSpec((1, np_), lambda i: (0, 0)),
                      pl.BlockSpec((group, np_), lambda i: (0, 0))],
            out_specs=pl.BlockSpec((tm // group, 1), lambda i: (i, 0))),
        compiler_params=_compiler_params(),
    )(raw, scale, shift, wh)
    # Tiny O(N) epilogue kept in XLA on purpose: +bias and sigmoid.
    return jax.nn.sigmoid(logits[:n, 0] + b_head[0].astype(jnp.float32))


# ------------------------------ full module ---------------------------------

def init_params(key, nc=3, ndf=8):
    ks = jax.random.split(key, 8)
    w = lambda k, shape: (0.02 * jax.random.normal(k, shape)).astype(jnp.float32)
    ones = lambda n: jnp.ones((n,), jnp.float32)
    zeros = lambda n: jnp.zeros((n,), jnp.float32)
    p = {}
    p['c1_w'] = w(ks[0], (ndf, nc, 5, 5));        p['c1_b'] = w(ks[1], (ndf,))
    # Pre-BN conv biases (L2..L5) are mathematically cancelled by the BN mean
    # subtraction, so they are omitted (identical forward output).
    p['c2_w'] = w(ks[2], (ndf, ndf, 4, 4))
    p['bn2_g'] = ones(ndf);        p['bn2_b'] = zeros(ndf)
    p['c3_w'] = w(ks[3], (ndf * 2, ndf, 4, 4))
    p['bn3_g'] = ones(ndf * 2);    p['bn3_b'] = zeros(ndf * 2)
    p['c4_w'] = w(ks[4], (ndf * 4, ndf * 2, 4, 4))
    p['bn4_g'] = ones(ndf * 4);    p['bn4_b'] = zeros(ndf * 4)
    p['c5_w'] = w(ks[5], (ndf * 8, ndf * 4, 4, 4))
    p['bn5_g'] = ones(ndf * 8);    p['bn5_b'] = zeros(ndf * 8)
    p['c6_w'] = w(ks[6], (1, ndf * 8, 4, 4));     p['c6_b'] = w(ks[7], (1,))
    return p


def discriminator_forward(params, x_nchw):
    # x: (N, nc, 64, 64) NCHW, like PyTorch.  Activations kept in bf16 NHWC.
    x = jnp.transpose(x_nchw, (0, 2, 3, 1)).astype(jnp.bfloat16)                  # NHWC
    x = conv2d_bias_relu(x, params['c1_w'], params['c1_b'], 1, 2)                 # 64 -> 64
    x = conv2d_bn_relu(x, params['c2_w'], params['bn2_g'], params['bn2_b'], 2, 1)  # 64 -> 32
    x = conv2d_bn_relu(x, params['c3_w'], params['bn3_g'], params['bn3_b'], 2, 1)  # 32 -> 16
    x = conv2d_bn_relu(x, params['c4_w'], params['bn4_g'], params['bn4_b'], 2, 1)  # 16 -> 8
    # L5 (8 -> 4) with L6 (4 -> 1, sigmoid) fused into its normalize pass.
    y = conv2d_bn_relu_head(x, params['c5_w'], params['bn5_g'], params['bn5_b'],
                            params['c6_w'], params['c6_b'], 2, 1)
    # view(-1, 1).squeeze(1)  ->  (N,)
    return y


# --------------------------- pure-JAX reference ------------------------------

def _reference_forward(params, x_nchw, eps=1e-5):
    x = jnp.transpose(x_nchw, (0, 2, 3, 1)).astype(jnp.float32)

    def conv(x, w, stride, pad):
        return jax.lax.conv_general_dilated(
            x, jnp.transpose(w, (2, 3, 1, 0)),        # OIHW -> HWIO
            window_strides=(stride, stride),
            padding=[(pad, pad), (pad, pad)],
            dimension_numbers=("NHWC", "HWIO", "NHWC"))

    def bn_relu(y, g, b):
        mean = jnp.mean(y, axis=(0, 1, 2))
        var = jnp.mean(jnp.square(y - mean), axis=(0, 1, 2))
        return jnp.maximum((y - mean) * (g * jax.lax.rsqrt(var + eps)) + b, 0.0)

    y = jnp.maximum(conv(x, params['c1_w'], 1, 2) + params['c1_b'], 0.0)
    y = bn_relu(conv(y, params['c2_w'], 2, 1), params['bn2_g'], params['bn2_b'])
    y = bn_relu(conv(y, params['c3_w'], 2, 1), params['bn3_g'], params['bn3_b'])
    y = bn_relu(conv(y, params['c4_w'], 2, 1), params['bn4_g'], params['bn4_b'])
    y = bn_relu(conv(y, params['c5_w'], 2, 1), params['bn5_g'], params['bn5_b'])
    y = jax.nn.sigmoid(conv(y, params['c6_w'], 1, 0) + params['c6_b'])
    return y.reshape(-1)


if __name__ == "__main__":
    key = jax.random.PRNGKey(0)
    pkey, xkey = jax.random.split(key)
    nc, ndf = 3, 8
    params = init_params(pkey, nc=nc, ndf=ndf)
    x = jax.random.normal(xkey, (2, nc, 64, 64), dtype=jnp.float32)

    fwd = jax.jit(discriminator_forward)
    out = jax.block_until_ready(fwd(params, x))

    assert out.shape == (2,), out.shape
    assert bool(jnp.all(jnp.isfinite(out)))
    assert bool(jnp.all((out >= 0.0) & (out <= 1.0)))       # sigmoid range

    ref = jax.block_until_ready(jax.jit(_reference_forward)(params, x))
    max_err = float(jnp.max(jnp.abs(out - ref)))
    assert max_err < 0.1, f"max abs error vs XLA reference: {max_err}"

    print("KERNEL_OK")
</pallas_src>

<mosaic_0001>
module attributes {stable_mosaic.version = 11 : i64} {
  func.func @_gemm_bias_relu_kernel(%arg0: i32, %arg1: memref<1024x128xbf16, #tpu.memory_space<vmem>>, %arg2: memref<128x128xbf16, #tpu.memory_space<vmem>>, %arg3: memref<1x128xf32, #tpu.memory_space<vmem>>, %arg4: memref<1024x128xbf16, #tpu.memory_space<vmem>>) attributes {dimension_semantics = [#tpu.dimension_semantics<parallel>], iteration_bounds = array<i64: 8>, scalar_prefetch = 0 : i64, scratch_operands = 0 : i64, tpu.core_type = #tpu.core_type<tc>, window_params = [{transform_indices = @transform_0, window_bounds = array<i64: 1024, 128>}, {pipeline_mode = #tpu.pipeline_mode<synchronous>, transform_indices = @transform_1, window_bounds = array<i64: 128, 128>}, {pipeline_mode = #tpu.pipeline_mode<synchronous>, transform_indices = @transform_2, window_bounds = array<i64: 1, 128>}, {transform_indices = @transform_3, window_bounds = array<i64: 1024, 128>}]} {
    %c0 = arith.constant 0 : index
    %c0_0 = arith.constant 0 : index
    %0 = vector.load %arg1[%c0, %c0_0] : memref<1024x128xbf16, #tpu.memory_space<vmem>>, vector<1024x128xbf16>
    %c0_1 = arith.constant 0 : index
    %c0_2 = arith.constant 0 : index
    %1 = vector.load %arg2[%c0_1, %c0_2] : memref<128x128xbf16, #tpu.memory_space<vmem>>, vector<128x128xbf16>
    %cst = arith.constant dense<0.000000e+00> : vector<1024x128xf32>
    %2 = tpu.matmul %0, %1, %cst {dimension_numbers = #tpu.dot_dimension_numbers<[1], [0], [0], [1], [0, 0, 1, 1], [], []>} : vector<1024x128xbf16>, vector<128x128xbf16>, vector<1024x128xf32> -> vector<1024x128xf32>
    %c0_3 = arith.constant 0 : index
    %c0_4 = arith.constant 0 : index
    %3 = vector.load %arg3[%c0_3, %c0_4] : memref<1x128xf32, #tpu.memory_space<vmem>>, vector<1x128xf32>
    %4 = vector.broadcast %3 : vector<1x128xf32> to vector<1024x128xf32>
    %5 = arith.addf %2, %4 : vector<1024x128xf32>
    %cst_5 = arith.constant 0.000000e+00 : f32
    %6 = vector.broadcast %cst_5 : f32 to vector<1024x128xf32>
    %7 = arith.maximumf %5, %6 : vector<1024x128xf32>
    %8 = arith.truncf %7 : vector<1024x128xf32> to vector<1024x128xbf16>
    %c0_6 = arith.constant 0 : index
    %c0_7 = arith.constant 0 : index
    %9 = vector.load %arg4[%c0_6, %c0_7] : memref<1024x128xbf16, #tpu.memory_space<vmem>>, vector<1024x128xbf16>
    tpu.vector_store %arg4[%c0_6, %c0_7], %8 {strides = array<i32>} : memref<1024x128xbf16, #tpu.memory_space<vmem>>, vector<1024x128xbf16>,
    return
  }
  func.func @transform_0(%arg0: i32) -> (i32, i32) {
    %c0_i32 = arith.constant 0 : i32
    %c0_i32_0 = arith.constant 0 : i32
    return %arg0, %c0_i32 : i32, i32
  }
  func.func @transform_1(%arg0: i32) -> (i32, i32) {
    %c0_i32 = arith.constant 0 : i32
    %c0_i32_0 = arith.constant 0 : i32
    %c0_i32_1 = arith.constant 0 : i32
    return %c0_i32, %c0_i32_0 : i32, i32
  }
  func.func @transform_2(%arg0: i32) -> (i32, i32) {
    %c0_i32 = arith.constant 0 : i32
    %c0_i32_0 = arith.constant 0 : i32
    %c0_i32_1 = arith.constant 0 : i32
    return %c0_i32, %c0_i32_0 : i32, i32
  }
  func.func @transform_3(%arg0: i32) -> (i32, i32) {
    %c0_i32 = arith.constant 0 : i32
    %c0_i32_0 = arith.constant 0 : i32
    return %arg0, %c0_i32 : i32, i32
  }
}

module attributes {stable_mosaic.version = 11 : i64} {
  func.func @_gemm_stats_kernel(%arg0: i32, %arg1: memref<1024x128xbf16, #tpu.memory_space<vmem>>, %arg2: memref<128x128xbf16, #tpu.memory_space<vmem>>, %arg3: memref<1024x128xbf16, #tpu.memory_space<vmem>>, %arg4: memref<1x2x128xf32, #tpu.memory_space<vmem>>) attributes {dimension_semantics = [#tpu.dimension_semantics<parallel>], iteration_bounds = array<i64: 2>, scalar_prefetch = 0 : i64, scratch_operands = 0 : i64, tpu.core_type = #tpu.core_type<tc>, window_params = [{transform_indices = @transform_0, window_bounds = array<i64: 1024, 128>}, {pipeline_mode = #tpu.pipeline_mode<synchronous>, transform_indices = @transform_1, window_bounds = array<i64: 128, 128>}, {transform_indices = @transform_2, window_bounds = array<i64: 1024, 128>}, {transform_indices = @transform_3, window_bounds = array<i64: 1, 2, 128>}]} {
    %c0 = arith.constant 0 : index
    %c0_0 = arith.constant 0 : index
    %0 = vector.load %arg1[%c0, %c0_0] : memref<1024x128xbf16, #tpu.memory_space<vmem>>, vector<1024x128xbf16>
    %c0_1 = arith.constant 0 : index
    %c0_2 = arith.constant 0 : index
    %1 = vector.load %arg2[%c0_1, %c0_2] : memref<128x128xbf16, #tpu.memory_space<vmem>>, vector<128x128xbf16>
    %cst = arith.constant dense<0.000000e+00> : vector<1024x128xf32>
    %2 = tpu.matmul %0, %1, %cst {dimension_numbers = #tpu.dot_dimension_numbers<[1], [0], [0], [1], [0, 0, 1, 1], [], []>} : vector<1024x128xbf16>, vector<128x128xbf16>, vector<1024x128xf32> -> vector<1024x128xf32>
    %3 = arith.truncf %2 : vector<1024x128xf32> to vector<1024x128xbf16>
    %c0_3 = arith.constant 0 : index
    %c0_4 = arith.constant 0 : index
    %4 = vector.load %arg3[%c0_3, %c0_4] : memref<1024x128xbf16, #tpu.memory_space<vmem>>, vector<1024x128xbf16>
    tpu.vector_store %arg3[%c0_3, %c0_4], %3 {strides = array<i32>} : memref<1024x128xbf16, #tpu.memory_space<vmem>>, vector<1024x128xbf16>,
    %cst_5 = arith.constant dense<0.000000e+00> : vector<128xf32>
    %5 = vector.multi_reduction <add>, %2, %cst_5 [0] : vector<1024x128xf32> to vector<128xf32>
    %6 = vector.shape_cast %5 : vector<128xf32> to vector<1x128xf32>
    %7 = arith.mulf %2, %2 : vector<1024x128xf32>
    %cst_6 = arith.constant dense<0.000000e+00> : vector<128xf32>
    %8 = vector.multi_reduction <add>, %7, %cst_6 [0] : vector<1024x128xf32> to vector<128xf32>
    %9 = vector.shape_cast %8 : vector<128xf32> to vector<1x128xf32>
    %10 = tpu.concatenate %6, %9 in 0 : vector<1x128xf32>, vector<1x128xf32> -> vector<2x128xf32>
    %11 = vector.shape_cast %10 : vector<2x128xf32> to vector<1x2x128xf32>
    %c0_7 = arith.constant 0 : index
    %c0_8 = arith.constant 0 : index
    %c0_9 = arith.constant 0 : index
    %12 = vector.load %arg4[%c0_7, %c0_8, %c0_9] : memref<1x2x128xf32, #tpu.memory_space<vmem>>, vector<1x2x128xf32>
    tpu.vector_store %arg4[%c0_7, %c0_8, %c0_9], %11 {strides = array<i32>} : memref<1x2x128xf32, #tpu.memory_space<vmem>>, vector<1x2x128xf32>,
    return
  }
  func.func @transform_0(%arg0: i32) -> (i32, i32) {
    %c0_i32 = arith.constant 0 : i32
    %c0_i32_0 = arith.constant 0 : i32
    return %arg0, %c0_i32 : i32, i32
  }
  func.func @transform_1(%arg0: i32) -> (i32, i32) {
    %c0_i32 = arith.constant 0 : i32
    %c0_i32_0 = arith.constant 0 : i32
    %c0_i32_1 = arith.constant 0 : i32
    return %c0_i32, %c0_i32_0 : i32, i32
  }
  func.func @transform_2(%arg0: i32) -> (i32, i32) {
    %c0_i32 = arith.constant 0 : i32
    %c0_i32_0 = arith.constant 0 : i32
    return %arg0, %c0_i32 : i32, i32
  }
  func.func @transform_3(%arg0: i32) -> (i32, i32, i32) {
    %c0_i32 = arith.constant 0 : i32
    %c0_i32_0 = arith.constant 0 : i32
    %c0_i32_1 = arith.constant 0 : i32
    return %arg0, %c0_i32, %c0_i32_0 : i32, i32, i32
  }
}

module attributes {stable_mosaic.version = 11 : i64} {
  func.func @_bn_relu_kernel(%arg0: i32, %arg1: memref<1024x128xbf16, #tpu.memory_space<vmem>>, %arg2: memref<1x128xf32, #tpu.memory_space<vmem>>, %arg3: memref<1x128xf32, #tpu.memory_space<vmem>>, %arg4: memref<1024x128xbf16, #tpu.memory_space<vmem>>) attributes {dimension_semantics = [#tpu.dimension_semantics<parallel>], iteration_bounds = array<i64: 2>, scalar_prefetch = 0 : i64, scratch_operands = 0 : i64, tpu.core_type = #tpu.core_type<tc>, window_params = [{transform_indices = @transform_0, window_bounds = array<i64: 1024, 128>}, {pipeline_mode = #tpu.pipeline_mode<synchronous>, transform_indices = @transform_1, window_bounds = array<i64: 1, 128>}, {pipeline_mode = #tpu.pipeline_mode<synchronous>, transform_indices = @transform_2, window_bounds = array<i64: 1, 128>}, {transform_indices = @transform_3, window_bounds = array<i64: 1024, 128>}]} {
    %c0 = arith.constant 0 : index
    %c0_0 = arith.constant 0 : index
    %0 = vector.load %arg1[%c0, %c0_0] : memref<1024x128xbf16, #tpu.memory_space<vmem>>, vector<1024x128xbf16>
    %1 = arith.extf %0 : vector<1024x128xbf16> to vector<1024x128xf32>
    %c0_1 = arith.constant 0 : index
    %c0_2 = arith.constant 0 : index
    %2 = vector.load %arg2[%c0_1, %c0_2] : memref<1x128xf32, #tpu.memory_space<vmem>>, vector<1x128xf32>
    %3 = vector.broadcast %2 : vector<1x128xf32> to vector<1024x128xf32>
    %4 = arith.mulf %1, %3 : vector<1024x128xf32>
    %c0_3 = arith.constant 0 : index
    %c0_4 = arith.constant 0 : index
    %5 = vector.load %arg3[%c0_3, %c0_4] : memref<1x128xf32, #tpu.memory_space<vmem>>, vector<1x128xf32>
    %6 = vector.broadcast %5 : vector<1x128xf32> to vector<1024x128xf32>
    %7 = arith.addf %4, %6 : vector<1024x128xf32>
    %cst = arith.constant 0.000000e+00 : f32
    %8 = vector.broadcast %cst : f32 to vector<1024x128xf32>
    %9 = arith.maximumf %7, %8 : vector<1024x128xf32>
    %10 = arith.truncf %9 : vector<1024x128xf32> to vector<1024x128xbf16>
    %c0_5 = arith.constant 0 : index
    %c0_6 = arith.constant 0 : index
    %11 = vector.load %arg4[%c0_5, %c0_6] : memref<1024x128xbf16, #tpu.memory_space<vmem>>, vector<1024x128xbf16>
    tpu.vector_store %arg4[%c0_5, %c0_6], %10 {strides = array<i32>} : memref<1024x128xbf16, #tpu.memory_space<vmem>>, vector<1024x128xbf16>,
    return
  }
  func.func @transform_0(%arg0: i32) -> (i32, i32) {
    %c0_i32 = arith.constant 0 : i32
    %c0_i32_0 = arith.constant 0 : i32
    return %arg0, %c0_i32 : i32, i32
  }
  func.func @transform_1(%arg0: i32) -> (i32, i32) {
    %c0_i32 = arith.constant 0 : i32
    %c0_i32_0 = arith.constant 0 : i32
    %c0_i32_1 = arith.constant 0 : i32
    return %c0_i32, %c0_i32_0 : i32, i32
  }
  func.func @transform_2(%arg0: i32) -> (i32, i32) {
    %c0_i32 = arith.constant 0 : i32
    %c0_i32_0 = arith.constant 0 : i32
    %c0_i32_1 = arith.constant 0 : i32
    return %c0_i32, %c0_i32_0 : i32, i32
  }
  func.func @transform_3(%arg0: i32) -> (i32, i32) {
    %c0_i32 = arith.constant 0 : i32
    %c0_i32_0 = arith.constant 0 : i32
    return %arg0, %c0_i32 : i32, i32
  }
}

module attributes {stable_mosaic.version = 11 : i64} {
  func.func @_gemm_stats_kernel(%arg0: i32, %arg1: memref<512x128xbf16, #tpu.memory_space<vmem>>, %arg2: memref<128x128xbf16, #tpu.memory_space<vmem>>, %arg3: memref<512x128xbf16, #tpu.memory_space<vmem>>, %arg4: memref<1x2x128xf32, #tpu.memory_space<vmem>>) attributes {dimension_semantics = [#tpu.dimension_semantics<parallel>], iteration_bounds = array<i64: 1>, scalar_prefetch = 0 : i64, scratch_operands = 0 : i64, tpu.core_type = #tpu.core_type<tc>, window_params = [{transform_indices = @transform_0, window_bounds = array<i64: 512, 128>}, {pipeline_mode = #tpu.pipeline_mode<synchronous>, transform_indices = @transform_1, window_bounds = array<i64: 128, 128>}, {transform_indices = @transform_2, window_bounds = array<i64: 512, 128>}, {transform_indices = @transform_3, window_bounds = array<i64: 1, 2, 128>}]} {
    %c0 = arith.constant 0 : index
    %c0_0 = arith.constant 0 : index
    %0 = vector.load %arg1[%c0, %c0_0] : memref<512x128xbf16, #tpu.memory_space<vmem>>, vector<512x128xbf16>
    %c0_1 = arith.constant 0 : index
    %c0_2 = arith.constant 0 : index
    %1 = vector.load %arg2[%c0_1, %c0_2] : memref<128x128xbf16, #tpu.memory_space<vmem>>, vector<128x128xbf16>
    %cst = arith.constant dense<0.000000e+00> : vector<512x128xf32>
    %2 = tpu.matmul %0, %1, %cst {dimension_numbers = #tpu.dot_dimension_numbers<[1], [0], [0], [1], [0, 0, 1, 1], [], []>} : vector<512x128xbf16>, vector<128x128xbf16>, vector<512x128xf32> -> vector<512x128xf32>
    %3 = arith.truncf %2 : vector<512x128xf32> to vector<512x128xbf16>
    %c0_3 = arith.constant 0 : index
    %c0_4 = arith.constant 0 : index
    %4 = vector.load %arg3[%c0_3, %c0_4] : memref<512x128xbf16, #tpu.memory_space<vmem>>, vector<512x128xbf16>
    tpu.vector_store %arg3[%c0_3, %c0_4], %3 {strides = array<i32>} : memref<512x128xbf16, #tpu.memory_space<vmem>>, vector<512x128xbf16>,
    %cst_5 = arith.constant dense<0.000000e+00> : vector<128xf32>
    %5 = vector.multi_reduction <add>, %2, %cst_5 [0] : vector<512x128xf32> to vector<128xf32>
    %6 = vector.shape_cast %5 : vector<128xf32> to vector<1x128xf32>
    %7 = arith.mulf %2, %2 : vector<512x128xf32>
    %cst_6 = arith.constant dense<0.000000e+00> : vector<128xf32>
    %8 = vector.multi_reduction <add>, %7, %cst_6 [0] : vector<512x128xf32> to vector<128xf32>
    %9 = vector.shape_cast %8 : vector<128xf32> to vector<1x128xf32>
    %10 = tpu.concatenate %6, %9 in 0 : vector<1x128xf32>, vector<1x128xf32> -> vector<2x128xf32>
    %11 = vector.shape_cast %10 : vector<2x128xf32> to vector<1x2x128xf32>
    %c0_7 = arith.constant 0 : index
    %c0_8 = arith.constant 0 : index
    %c0_9 = arith.constant 0 : index
    %12 = vector.load %arg4[%c0_7, %c0_8, %c0_9] : memref<1x2x128xf32, #tpu.memory_space<vmem>>, vector<1x2x128xf32>
    tpu.vector_store %arg4[%c0_7, %c0_8, %c0_9], %11 {strides = array<i32>} : memref<1x2x128xf32, #tpu.memory_space<vmem>>, vector<1x2x128xf32>,
    return
  }
  func.func @transform_0(%arg0: i32) -> (i32, i32) {
    %c0_i32 = arith.constant 0 : i32
    %c0_i32_0 = arith.constant 0 : i32
    return %arg0, %c0_i32 : i32, i32
  }
  func.func @transform_1(%arg0: i32) -> (i32, i32) {
    %c0_i32 = arith.constant 0 : i32
    %c0_i32_0 = arith.constant 0 : i32
    %c0_i32_1 = arith.constant 0 : i32
    return %c0_i32, %c0_i32_0 : i32, i32
  }
  func.func @transform_2(%arg0: i32) -> (i32, i32) {
    %c0_i32 = arith.constant 0 : i32
    %c0_i32_0 = arith.constant 0 : i32
    return %arg0, %c0_i32 : i32, i32
  }
  func.func @transform_3(%arg0: i32) -> (i32, i32, i32) {
    %c0_i32 = arith.constant 0 : i32
    %c0_i32_0 = arith.constant 0 : i32
    %c0_i32_1 = arith.constant 0 : i32
    return %arg0, %c0_i32, %c0_i32_0 : i32, i32, i32
  }
}

module attributes {stable_mosaic.version = 11 : i64} {
  func.func @_bn_relu_kernel(%arg0: i32, %arg1: memref<512x128xbf16, #tpu.memory_space<vmem>>, %arg2: memref<1x128xf32, #tpu.memory_space<vmem>>, %arg3: memref<1x128xf32, #tpu.memory_space<vmem>>, %arg4: memref<512x128xbf16, #tpu.memory_space<vmem>>) attributes {dimension_semantics = [#tpu.dimension_semantics<parallel>], iteration_bounds = array<i64: 1>, scalar_prefetch = 0 : i64, scratch_operands = 0 : i64, tpu.core_type = #tpu.core_type<tc>, window_params = [{transform_indices = @transform_0, window_bounds = array<i64: 512, 128>}, {pipeline_mode = #tpu.pipeline_mode<synchronous>, transform_indices = @transform_1, window_bounds = array<i64: 1, 128>}, {pipeline_mode = #tpu.pipeline_mode<synchronous>, transform_indices = @transform_2, window_bounds = array<i64: 1, 128>}, {transform_indices = @transform_3, window_bounds = array<i64: 512, 128>}]} {
    %c0 = arith.constant 0 : index
    %c0_0 = arith.constant 0 : index
    %0 = vector.load %arg1[%c0, %c0_0] : memref<512x128xbf16, #tpu.memory_space<vmem>>, vector<512x128xbf16>
    %1 = arith.extf %0 : vector<512x128xbf16> to vector<512x128xf32>
    %c0_1 = arith.constant 0 : index
    %c0_2 = arith.constant 0 : index
    %2 = vector.load %arg2[%c0_1, %c0_2] : memref<1x128xf32, #tpu.memory_space<vmem>>, vector<1x128xf32>
    %3 = vector.broadcast %2 : vector<1x128xf32> to vector<512x128xf32>
    %4 = arith.mulf %1, %3 : vector<512x128xf32>
    %c0_3 = arith.constant 0 : index
    %c0_4 = arith.constant 0 : index
    %5 = vector.load %arg3[%c0_3, %c0_4] : memref<1x128xf32, #tpu.memory_space<vmem>>, vector<1x128xf32>
    %6 = vector.broadcast %5 : vector<1x128xf32> to vector<512x128xf32>
    %7 = arith.addf %4, %6 : vector<512x128xf32>
    %cst = arith.constant 0.000000e+00 : f32
    %8 = vector.broadcast %cst : f32 to vector<512x128xf32>
    %9 = arith.maximumf %7, %8 : vector<512x128xf32>
    %10 = arith.truncf %9 : vector<512x128xf32> to vector<512x128xbf16>
    %c0_5 = arith.constant 0 : index
    %c0_6 = arith.constant 0 : index
    %11 = vector.load %arg4[%c0_5, %c0_6] : memref<512x128xbf16, #tpu.memory_space<vmem>>, vector<512x128xbf16>
    tpu.vector_store %arg4[%c0_5, %c0_6], %10 {strides = array<i32>} : memref<512x128xbf16, #tpu.memory_space<vmem>>, vector<512x128xbf16>,
    return
  }
  func.func @transform_0(%arg0: i32) -> (i32, i32) {
    %c0_i32 = arith.constant 0 : i32
    %c0_i32_0 = arith.constant 0 : i32
    return %arg0, %c0_i32 : i32, i32
  }
  func.func @transform_1(%arg0: i32) -> (i32, i32) {
    %c0_i32 = arith.constant 0 : i32
    %c0_i32_0 = arith.constant 0 : i32
    %c0_i32_1 = arith.constant 0 : i32
    return %c0_i32, %c0_i32_0 : i32, i32
  }
  func.func @transform_2(%arg0: i32) -> (i32, i32) {
    %c0_i32 = arith.constant 0 : i32
    %c0_i32_0 = arith.constant 0 : i32
    %c0_i32_1 = arith.constant 0 : i32
    return %c0_i32, %c0_i32_0 : i32, i32
  }
  func.func @transform_3(%arg0: i32) -> (i32, i32) {
    %c0_i32 = arith.constant 0 : i32
    %c0_i32_0 = arith.constant 0 : i32
    return %arg0, %c0_i32 : i32, i32
  }
}

module attributes {stable_mosaic.version = 11 : i64} {
  func.func @_gemm_stats_kernel(%arg0: i32, %arg1: memref<128x256xbf16, #tpu.memory_space<vmem>>, %arg2: memref<256x128xbf16, #tpu.memory_space<vmem>>, %arg3: memref<128x128xbf16, #tpu.memory_space<vmem>>, %arg4: memref<1x2x128xf32, #tpu.memory_space<vmem>>) attributes {dimension_semantics = [#tpu.dimension_semantics<parallel>], iteration_bounds = array<i64: 1>, scalar_prefetch = 0 : i64, scratch_operands = 0 : i64, tpu.core_type = #tpu.core_type<tc>, window_params = [{transform_indices = @transform_0, window_bounds = array<i64: 128, 256>}, {pipeline_mode = #tpu.pipeline_mode<synchronous>, transform_indices = @transform_1, window_bounds = array<i64: 256, 128>}, {transform_indices = @transform_2, window_bounds = array<i64: 128, 128>}, {transform_indices = @transform_3, window_bounds = array<i64: 1, 2, 128>}]} {
    %c0 = arith.constant 0 : index
    %c0_0 = arith.constant 0 : index
    %0 = vector.load %arg1[%c0, %c0_0] : memref<128x256xbf16, #tpu.memory_space<vmem>>, vector<128x256xbf16>
    %c0_1 = arith.constant 0 : index
    %c0_2 = arith.constant 0 : index
    %1 = vector.load %arg2[%c0_1, %c0_2] : memref<256x128xbf16, #tpu.memory_space<vmem>>, vector<256x128xbf16>
    %cst = arith.constant dense<0.000000e+00> : vector<128x128xf32>
    %2 = tpu.matmul %0, %1, %cst {dimension_numbers = #tpu.dot_dimension_numbers<[1], [0], [0], [1], [0, 0, 1, 1], [], []>} : vector<128x256xbf16>, vector<256x128xbf16>, vector<128x128xf32> -> vector<128x128xf32>
    %3 = arith.truncf %2 : vector<128x128xf32> to vector<128x128xbf16>
    %c0_3 = arith.constant 0 : index
    %c0_4 = arith.constant 0 : index
    %4 = vector.load %arg3[%c0_3, %c0_4] : memref<128x128xbf16, #tpu.memory_space<vmem>>, vector<128x128xbf16>
    tpu.vector_store %arg3[%c0_3, %c0_4], %3 {strides = array<i32>} : memref<128x128xbf16, #tpu.memory_space<vmem>>, vector<128x128xbf16>,
    %cst_5 = arith.constant dense<0.000000e+00> : vector<128xf32>
    %5 = vector.multi_reduction <add>, %2, %cst_5 [0] : vector<128x128xf32> to vector<128xf32>
    %6 = vector.shape_cast %5 : vector<128xf32> to vector<1x128xf32>
    %7 = arith.mulf %2, %2 : vector<128x128xf32>
    %cst_6 = arith.constant dense<0.000000e+00> : vector<128xf32>
    %8 = vector.multi_reduction <add>, %7, %cst_6 [0] : vector<128x128xf32> to vector<128xf32>
    %9 = vector.shape_cast %8 : vector<128xf32> to vector<1x128xf32>
    %10 = tpu.concatenate %6, %9 in 0 : vector<1x128xf32>, vector<1x128xf32> -> vector<2x128xf32>
    %11 = vector.shape_cast %10 : vector<2x128xf32> to vector<1x2x128xf32>
    %c0_7 = arith.constant 0 : index
    %c0_8 = arith.constant 0 : index
    %c0_9 = arith.constant 0 : index
    %12 = vector.load %arg4[%c0_7, %c0_8, %c0_9] : memref<1x2x128xf32, #tpu.memory_space<vmem>>, vector<1x2x128xf32>
    tpu.vector_store %arg4[%c0_7, %c0_8, %c0_9], %11 {strides = array<i32>} : memref<1x2x128xf32, #tpu.memory_space<vmem>>, vector<1x2x128xf32>,
    return
  }
  func.func @transform_0(%arg0: i32) -> (i32, i32) {
    %c0_i32 = arith.constant 0 : i32
    %c0_i32_0 = arith.constant 0 : i32
    return %arg0, %c0_i32 : i32, i32
  }
  func.func @transform_1(%arg0: i32) -> (i32, i32) {
    %c0_i32 = arith.constant 0 : i32
    %c0_i32_0 = arith.constant 0 : i32
    %c0_i32_1 = arith.constant 0 : i32
    return %c0_i32, %c0_i32_0 : i32, i32
  }
  func.func @transform_2(%arg0: i32) -> (i32, i32) {
    %c0_i32 = arith.constant 0 : i32
    %c0_i32_0 = arith.constant 0 : i32
    return %arg0, %c0_i32 : i32, i32
  }
  func.func @transform_3(%arg0: i32) -> (i32, i32, i32) {
    %c0_i32 = arith.constant 0 : i32
    %c0_i32_0 = arith.constant 0 : i32
    %c0_i32_1 = arith.constant 0 : i32
    return %arg0, %c0_i32, %c0_i32_0 : i32, i32, i32
  }
}

module attributes {stable_mosaic.version = 11 : i64} {
  func.func @_bn_relu_kernel(%arg0: i32, %arg1: memref<128x128xbf16, #tpu.memory_space<vmem>>, %arg2: memref<1x128xf32, #tpu.memory_space<vmem>>, %arg3: memref<1x128xf32, #tpu.memory_space<vmem>>, %arg4: memref<128x128xbf16, #tpu.memory_space<vmem>>) attributes {dimension_semantics = [#tpu.dimension_semantics<parallel>], iteration_bounds = array<i64: 1>, scalar_prefetch = 0 : i64, scratch_operands = 0 : i64, tpu.core_type = #tpu.core_type<tc>, window_params = [{transform_indices = @transform_0, window_bounds = array<i64: 128, 128>}, {pipeline_mode = #tpu.pipeline_mode<synchronous>, transform_indices = @transform_1, window_bounds = array<i64: 1, 128>}, {pipeline_mode = #tpu.pipeline_mode<synchronous>, transform_indices = @transform_2, window_bounds = array<i64: 1, 128>}, {transform_indices = @transform_3, window_bounds = array<i64: 128, 128>}]} {
    %c0 = arith.constant 0 : index
    %c0_0 = arith.constant 0 : index
    %0 = vector.load %arg1[%c0, %c0_0] : memref<128x128xbf16, #tpu.memory_space<vmem>>, vector<128x128xbf16>
    %1 = arith.extf %0 : vector<128x128xbf16> to vector<128x128xf32>
    %c0_1 = arith.constant 0 : index
    %c0_2 = arith.constant 0 : index
    %2 = vector.load %arg2[%c0_1, %c0_2] : memref<1x128xf32, #tpu.memory_space<vmem>>, vector<1x128xf32>
    %3 = vector.broadcast %2 : vector<1x128xf32> to vector<128x128xf32>
    %4 = arith.mulf %1, %3 : vector<128x128xf32>
    %c0_3 = arith.constant 0 : index
    %c0_4 = arith.constant 0 : index
    %5 = vector.load %arg3[%c0_3, %c0_4] : memref<1x128xf32, #tpu.memory_space<vmem>>, vector<1x128xf32>
    %6 = vector.broadcast %5 : vector<1x128xf32> to vector<128x128xf32>
    %7 = arith.addf %4, %6 : vector<128x128xf32>
    %cst = arith.constant 0.000000e+00 : f32
    %8 = vector.broadcast %cst : f32 to vector<128x128xf32>
    %9 = arith.maximumf %7, %8 : vector<128x128xf32>
    %10 = arith.truncf %9 : vector<128x128xf32> to vector<128x128xbf16>
    %c0_5 = arith.constant 0 : index
    %c0_6 = arith.constant 0 : index
    %11 = vector.load %arg4[%c0_5, %c0_6] : memref<128x128xbf16, #tpu.memory_space<vmem>>, vector<128x128xbf16>
    tpu.vector_store %arg4[%c0_5, %c0_6], %10 {strides = array<i32>} : memref<128x128xbf16, #tpu.memory_space<vmem>>, vector<128x128xbf16>,
    return
  }
  func.func @transform_0(%arg0: i32) -> (i32, i32) {
    %c0_i32 = arith.constant 0 : i32
    %c0_i32_0 = arith.constant 0 : i32
    return %arg0, %c0_i32 : i32, i32
  }
  func.func @transform_1(%arg0: i32) -> (i32, i32) {
    %c0_i32 = arith.constant 0 : i32
    %c0_i32_0 = arith.constant 0 : i32
    %c0_i32_1 = arith.constant 0 : i32
    return %c0_i32, %c0_i32_0 : i32, i32
  }
  func.func @transform_2(%arg0: i32) -> (i32, i32) {
    %c0_i32 = arith.constant 0 : i32
    %c0_i32_0 = arith.constant 0 : i32
    %c0_i32_1 = arith.constant 0 : i32
    return %c0_i32, %c0_i32_0 : i32, i32
  }
  func.func @transform_3(%arg0: i32) -> (i32, i32) {
    %c0_i32 = arith.constant 0 : i32
    %c0_i32_0 = arith.constant 0 : i32
    return %arg0, %c0_i32 : i32, i32
  }
}

module attributes {stable_mosaic.version = 11 : i64} {
  func.func @_gemm_stats_kernel(%arg0: i32, %arg1: memref<32x512xbf16, #tpu.memory_space<vmem>>, %arg2: memref<512x128xbf16, #tpu.memory_space<vmem>>, %arg3: memref<32x128xbf16, #tpu.memory_space<vmem>>, %arg4: memref<1x2x128xf32, #tpu.memory_space<vmem>>) attributes {dimension_semantics = [#tpu.dimension_semantics<parallel>], iteration_bounds = array<i64: 1>, scalar_prefetch = 0 : i64, scratch_operands = 0 : i64, tpu.core_type = #tpu.core_type<tc>, window_params = [{transform_indices = @transform_0, window_bounds = array<i64: 32, 512>}, {pipeline_mode = #tpu.pipeline_mode<synchronous>, transform_indices = @transform_1, window_bounds = array<i64: 512, 128>}, {transform_indices = @transform_2, window_bounds = array<i64: 32, 128>}, {transform_indices = @transform_3, window_bounds = array<i64: 1, 2, 128>}]} {
    %c0 = arith.constant 0 : index
    %c0_0 = arith.constant 0 : index
    %0 = vector.load %arg1[%c0, %c0_0] : memref<32x512xbf16, #tpu.memory_space<vmem>>, vector<32x512xbf16>
    %c0_1 = arith.constant 0 : index
    %c0_2 = arith.constant 0 : index
    %1 = vector.load %arg2[%c0_1, %c0_2] : memref<512x128xbf16, #tpu.memory_space<vmem>>, vector<512x128xbf16>
    %cst = arith.constant dense<0.000000e+00> : vector<32x128xf32>
    %2 = tpu.matmul %0, %1, %cst {dimension_numbers = #tpu.dot_dimension_numbers<[1], [0], [0], [1], [0, 0, 1, 1], [], []>} : vector<32x512xbf16>, vector<512x128xbf16>, vector<32x128xf32> -> vector<32x128xf32>
    %3 = arith.truncf %2 : vector<32x128xf32> to vector<32x128xbf16>
    %c0_3 = arith.constant 0 : index
    %c0_4 = arith.constant 0 : index
    %4 = vector.load %arg3[%c0_3, %c0_4] : memref<32x128xbf16, #tpu.memory_space<vmem>>, vector<32x128xbf16>
    tpu.vector_store %arg3[%c0_3, %c0_4], %3 {strides = array<i32>} : memref<32x128xbf16, #tpu.memory_space<vmem>>, vector<32x128xbf16>,
    %cst_5 = arith.constant dense<0.000000e+00> : vector<128xf32>
    %5 = vector.multi_reduction <add>, %2, %cst_5 [0] : vector<32x128xf32> to vector<128xf32>
    %6 = vector.shape_cast %5 : vector<128xf32> to vector<1x128xf32>
    %7 = arith.mulf %2, %2 : vector<32x128xf32>
    %cst_6 = arith.constant dense<0.000000e+00> : vector<128xf32>
    %8 = vector.multi_reduction <add>, %7, %cst_6 [0] : vector<32x128xf32> to vector<128xf32>
    %9 = vector.shape_cast %8 : vector<128xf32> to vector<1x128xf32>
    %10 = tpu.concatenate %6, %9 in 0 : vector<1x128xf32>, vector<1x128xf32> -> vector<2x128xf32>
    %11 = vector.shape_cast %10 : vector<2x128xf32> to vector<1x2x128xf32>
    %c0_7 = arith.constant 0 : index
    %c0_8 = arith.constant 0 : index
    %c0_9 = arith.constant 0 : index
    %12 = vector.load %arg4[%c0_7, %c0_8, %c0_9] : memref<1x2x128xf32, #tpu.memory_space<vmem>>, vector<1x2x128xf32>
    tpu.vector_store %arg4[%c0_7, %c0_8, %c0_9], %11 {strides = array<i32>} : memref<1x2x128xf32, #tpu.memory_space<vmem>>, vector<1x2x128xf32>,
    return
  }
  func.func @transform_0(%arg0: i32) -> (i32, i32) {
    %c0_i32 = arith.constant 0 : i32
    %c0_i32_0 = arith.constant 0 : i32
    return %arg0, %c0_i32 : i32, i32
  }
  func.func @transform_1(%arg0: i32) -> (i32, i32) {
    %c0_i32 = arith.constant 0 : i32
    %c0_i32_0 = arith.constant 0 : i32
    %c0_i32_1 = arith.constant 0 : i32
    return %c0_i32, %c0_i32_0 : i32, i32
  }
  func.func @transform_2(%arg0: i32) -> (i32, i32) {
    %c0_i32 = arith.constant 0 : i32
    %c0_i32_0 = arith.constant 0 : i32
    return %arg0, %c0_i32 : i32, i32
  }
  func.func @transform_3(%arg0: i32) -> (i32, i32, i32) {
    %c0_i32 = arith.constant 0 : i32
    %c0_i32_0 = arith.constant 0 : i32
    %c0_i32_1 = arith.constant 0 : i32
    return %arg0, %c0_i32, %c0_i32_0 : i32, i32, i32
  }
}

module attributes {stable_mosaic.version = 11 : i64} {
  func.func @_bn_relu_head_kernel(%arg0: i32, %arg1: memref<32x128xbf16, #tpu.memory_space<vmem>>, %arg2: memref<1x128xf32, #tpu.memory_space<vmem>>, %arg3: memref<1x128xf32, #tpu.memory_space<vmem>>, %arg4: memref<16x128xf32, #tpu.memory_space<vmem>>, %arg5: memref<2x1xf32, #tpu.memory_space<vmem>>) attributes {dimension_semantics = [#tpu.dimension_semantics<parallel>], iteration_bounds = array<i64: 1>, scalar_prefetch = 0 : i64, scratch_operands = 0 : i64, tpu.core_type = #tpu.core_type<tc>, window_params = [{transform_indices = @transform_0, window_bounds = array<i64: 32, 128>}, {pipeline_mode = #tpu.pipeline_mode<synchronous>, transform_indices = @transform_1, window_bounds = array<i64: 1, 128>}, {pipeline_mode = #tpu.pipeline_mode<synchronous>, transform_indices = @transform_2, window_bounds = array<i64: 1, 128>}, {pipeline_mode = #tpu.pipeline_mode<synchronous>, transform_indices = @transform_3, window_bounds = array<i64: 16, 128>}, {transform_indices = @transform_4, window_bounds = array<i64: 2, 1>}]} {
    %c0 = arith.constant 0 : index
    %c0_0 = arith.constant 0 : index
    %0 = vector.load %arg1[%c0, %c0_0] : memref<32x128xbf16, #tpu.memory_space<vmem>>, vector<32x128xbf16>
    %1 = arith.extf %0 : vector<32x128xbf16> to vector<32x128xf32>
    %c0_1 = arith.constant 0 : index
    %c0_2 = arith.constant 0 : index
    %2 = vector.load %arg2[%c0_1, %c0_2] : memref<1x128xf32, #tpu.memory_space<vmem>>, vector<1x128xf32>
    %3 = vector.broadcast %2 : vector<1x128xf32> to vector<32x128xf32>
    %4 = arith.mulf %1, %3 : vector<32x128xf32>
    %c0_3 = arith.constant 0 : index
    %c0_4 = arith.constant 0 : index
    %5 = vector.load %arg3[%c0_3, %c0_4] : memref<1x128xf32, #tpu.memory_space<vmem>>, vector<1x128xf32>
    %6 = vector.broadcast %5 : vector<1x128xf32> to vector<32x128xf32>
    %7 = arith.addf %4, %6 : vector<32x128xf32>
    %cst = arith.constant 0.000000e+00 : f32
    %8 = vector.broadcast %cst : f32 to vector<32x128xf32>
    %9 = arith.maximumf %7, %8 : vector<32x128xf32>
    %10 = vector.shape_cast %9 : vector<32x128xf32> to vector<2x16x128xf32>
    %c0_5 = arith.constant 0 : index
    %c0_6 = arith.constant 0 : index
    %11 = vector.load %arg4[%c0_5, %c0_6] : memref<16x128xf32, #tpu.memory_space<vmem>>, vector<16x128xf32>
    %12 = vector.shape_cast %11 : vector<16x128xf32> to vector<1x16x128xf32>
    %13 = vector.broadcast %12 : vector<1x16x128xf32> to vector<2x16x128xf32>
    %14 = arith.mulf %10, %13 : vector<2x16x128xf32>
    %cst_7 = arith.constant dense<0.000000e+00> : vector<2x16xf32>
    %15 = vector.multi_reduction <add>, %14, %cst_7 [2] : vector<2x16x128xf32> to vector<2x16xf32>
    %cst_8 = arith.constant dense<0.000000e+00> : vector<2xf32>
    %16 = vector.multi_reduction <add>, %15, %cst_8 [1] : vector<2x16xf32> to vector<2xf32>
    %17 = vector.shape_cast %16 : vector<2xf32> to vector<2x1xf32>
    %c0_9 = arith.constant 0 : index
    %c0_10 = arith.constant 0 : index
    %18 = vector.load %arg5[%c0_9, %c0_10] : memref<2x1xf32, #tpu.memory_space<vmem>>, vector<2x1xf32>
    tpu.vector_store %arg5[%c0_9, %c0_10], %17 {strides = array<i32>} : memref<2x1xf32, #tpu.memory_space<vmem>>, vector<2x1xf32>,
    return
  }
  func.func @transform_0(%arg0: i32) -> (i32, i32) {
    %c0_i32 = arith.constant 0 : i32
    %c0_i32_0 = arith.constant 0 : i32
    return %arg0, %c0_i32 : i32, i32
  }
  func.func @transform_1(%arg0: i32) -> (i32, i32) {
    %c0_i32 = arith.constant 0 : i32
    %c0_i32_0 = arith.constant 0 : i32
    %c0_i32_1 = arith.constant 0 : i32
    return %c0_i32, %c0_i32_0 : i32, i32
  }
  func.func @transform_2(%arg0: i32) -> (i32, i32) {
    %c0_i32 = arith.constant 0 : i32
    %c0_i32_0 = arith.constant 0 : i32
    %c0_i32_1 = arith.constant 0 : i32
    return %c0_i32, %c0_i32_0 : i32, i32
  }
  func.func @transform_3(%arg0: i32) -> (i32, i32) {
    %c0_i32 = arith.constant 0 : i32
    %c0_i32_0 = arith.constant 0 : i32
    %c0_i32_1 = arith.constant 0 : i32
    return %c0_i32, %c0_i32_0 : i32, i32
  }
  func.func @transform_4(%arg0: i32) -> (i32, i32) {
    %c0_i32 = arith.constant 0 : i32
    %c0_i32_0 = arith.constant 0 : i32
    return %arg0, %c0_i32 : i32, i32
  }
}

</mosaic_0001>

<bundles_post_ra>
// kernel: discriminator_forward.9
= control target key start
LH: loop header
LB: loop body
LE: loop exit
PB: predicated region body
PF: predicated region fallthrough
CT: control target
= control target key end

     0   :  { %s2339_s12 = smov 0   ;;  %s2641_s0 = inlined_call_operand.vmem [shape: bf16[8192,128], index: 0, kind: input, shape index: {}]   ;;  %s2642_s1 = inlined_call_operand.vmem [shape: bf16[128,128], index: 1, kind: input, shape index: {}]   ;;  %s2643_s2 = inlined_call_operand.vmem [shape: f32[1,128], index: 2, kind: input, shape index: {}]   ;;  %s2644_s3 = inlined_call_operand.vmem [shape: bf16[8192,128], index: 3, kind: output, shape index: {}]  }
   0x1 LB: > { %s1523_s13 = sadd.s32 4294967295, %s2317_s12   ;;  %p1527_p0 = scmp.ge.s32.totalorder %s2317_s12, 1  ;;  %s2317_s12 = sphi %s2339_s12, %s13_s12  }
   0x2   : > { %p138_p1 = scmp.lt.s32.totalorder %s2317_s12, 9 }
   0x4   : > { %p139_p2 = pnand %p1527_p0, %p138_p1 }
   0x5   : > { %s1528_s22 = sshll.u32 (!%p139_p2), %s1523_s13, 7 }
   0x6   : > { %142 = sbr.rel (%p139_p2) target bundleno = 432 (0x1b0), region = 32  ;;  %p163_p3 = scmp.lt.s32.totalorder (!%p139_p2), %s1528_s22, 1023 }
   0xb   : > { %v1893_v0 = vld [vmem:[%s2642_s1 + $0x38] sm:$0xff]  ;;  %v1892_v1 = vld [vmem:[%s2642_s1 + $0x30] sm:$0xff]  ;;  %v1891_v2 = vld [vmem:[%s2642_s1 + $0x28] sm:$0xff]  ;;  %s2646_s22 = smov (!%p163_p3, %s1528_s22), 1023 }
   0xc   : > { %754 = vmatpush.bf16.msra.mxu0 %v1893_v0  ;;  %2277 = vmatpush.bf16.msra.mxu1 %v1893_v0  ;;  %v1890_v3 = vld [vmem:[%s2642_s1 + $0x20] sm:$0xff]  ;;  %v1889_v4 = vld [vmem:[%s2642_s1 + $0x18] sm:$0xff]  ;;  %v1888_v5 = vld [vmem:[%s2642_s1 + $0x10] sm:$0xff]  ;;  %s1529_s29 = sshll.u32 %s2646_s22, 2 }
   0xd   : > { %2278 = vmatpush.bf16.msra.mxu2 %v1893_v0  ;;  %2279 = vmatpush.bf16.msra.mxu3 %v1893_v0  ;;  %v1887_v6 = vld [vmem:[%s2642_s1 + $0x8] sm:$0xff]  ;;  %v1886_v7 = vld [vmem:[%s2642_s1] sm:$0xff]  ;;  %s2379_s7 = scalar_lea.vmem %s2641_s0, %s1529_s29  ;;  %s2431_s13 = scalar_lea.vmem %s2644_s3, %s1529_s29 }
   0xe   : > { %v1822_v8 = vld [vmem:[%s2379_s7] sm:$0xff]  ;;  %v1823_v12 = vld [vmem:[%s2379_s7 + $0x8] sm:$0xff]  ;;  %v1824_v16 = vld [vmem:[%s2379_s7 + $0x10] sm:$0xff] }
   0xf   : > { %v1838_v9 = vld [vmem:[%s2379_s7 + $0x80] sm:$0xff]  ;;  %v1839_v13 = vld [vmem:[%s2379_s7 + $0x88] sm:$0xff]  ;;  %v1840_v17 = vld [vmem:[%s2379_s7 + $0x90] sm:$0xff] }
  0x10   : > { %755 = vmatpush.bf16.msra.mxu0 %v1892_v1  ;;  %2280 = vmatpush.bf16.msra.mxu1 %v1892_v1  ;;  %v1854_v10 = vld [vmem:[%s2379_s7 + $0x100] sm:$0xff]  ;;  %v1855_v14 = vld [vmem:[%s2379_s7 + $0x108] sm:$0xff]  ;;  %v1856_v18 = vld [vmem:[%s2379_s7 + $0x110] sm:$0xff] }
  0x11   : > { %2281 = vmatpush.bf16.msra.mxu2 %v1892_v1  ;;  %2282 = vmatpush.bf16.msra.mxu3 %v1892_v1  ;;  %v1870_v11 = vld [vmem:[%s2379_s7 + $0x180] sm:$0xff]  ;;  %v1871_v15 = vld [vmem:[%s2379_s7 + $0x188] sm:$0xff]  ;;  %v1872_v19 = vld [vmem:[%s2379_s7 + $0x190] sm:$0xff] }
  0x12   : > { %v1825_v20 = vld [vmem:[%s2379_s7 + $0x18] sm:$0xff]  ;;  %v1826_v24 = vld [vmem:[%s2379_s7 + $0x20] sm:$0xff]  ;;  %v1827_v28 = vld [vmem:[%s2379_s7 + $0x28] sm:$0xff] }
  0x13   : > { %v1841_v21 = vld [vmem:[%s2379_s7 + $0x98] sm:$0xff]  ;;  %v1842_v25 = vld [vmem:[%s2379_s7 + $0xa0] sm:$0xff]  ;;  %v1843_v29 = vld [vmem:[%s2379_s7 + $0xa8] sm:$0xff] }
  0x14   : > { %756 = vmatpush.bf16.msra.mxu0 %v1891_v2  ;;  %2283 = vmatpush.bf16.msra.mxu1 %v1891_v2  ;;  %v1857_v22 = vld [vmem:[%s2379_s7 + $0x118] sm:$0xff]  ;;  %v1858_v26 = vld [vmem:[%s2379_s7 + $0x120] sm:$0xff]  ;;  %v1859_v30 = vld [vmem:[%s2379_s7 + $0x128] sm:$0xff] }
  0x15   : > { %2284 = vmatpush.bf16.msra.mxu2 %v1891_v2  ;;  %2285 = vmatpush.bf16.msra.mxu3 %v1891_v2  ;;  %v1873_v23 = vld [vmem:[%s2379_s7 + $0x198] sm:$0xff]  ;;  %v1874_v27 = vld [vmem:[%s2379_s7 + $0x1a0] sm:$0xff]  ;;  %v1875_v31 = vld [vmem:[%s2379_s7 + $0x1a8] sm:$0xff] }
  0x16   : > { %v1828_v32 = vld [vmem:[%s2379_s7 + $0x30] sm:$0xff]  ;;  %v1829_v36 = vld [vmem:[%s2379_s7 + $0x38] sm:$0xff]  ;;  %v1830_v40 = vld [vmem:[%s2379_s7 + $0x40] sm:$0xff] }
  0x17   : > { %v1844_v33 = vld [vmem:[%s2379_s7 + $0xb0] sm:$0xff]  ;;  %v1845_v37 = vld [vmem:[%s2379_s7 + $0xb8] sm:$0xff]  ;;  %v1846_v41 = vld [vmem:[%s2379_s7 + $0xc0] sm:$0xff] }
  0x18   : > { %757 = vmatpush.bf16.msra.mxu0 %v1890_v3  ;;  %2286 = vmatpush.bf16.msra.mxu1 %v1890_v3  ;;  %v1860_v34 = vld [vmem:[%s2379_s7 + $0x130] sm:$0xff]  ;;  %v1861_v38 = vld [vmem:[%s2379_s7 + $0x138] sm:$0xff]  ;;  %v1862_v44 = vld [vmem:[%s2379_s7 + $0x140] sm:$0xff] }
  0x19   : > { %2287 = vmatpush.bf16.msra.mxu2 %v1890_v3  ;;  %2288 = vmatpush.bf16.msra.mxu3 %v1890_v3  ;;  %v1876_v35 = vld [vmem:[%s2379_s7 + $0x1b0] sm:$0xff]  ;;  %v1877_v39 = vld [vmem:[%s2379_s7 + $0x1b8] sm:$0xff]  ;;  %v1878_v45 = vld [vmem:[%s2379_s7 + $0x1c0] sm:$0xff] }
  0x1a   : > { %v2420_v46 = vld [vmem:[%s2643_s2] ss:$0 sm:$0xff]  ;;  %v1831_v1 = vld [vmem:[%s2379_s7 + $0x48] sm:$0xff] }
  0x1b   : > { %v1847_v2 = vld [vmem:[%s2379_s7 + $0xc8] sm:$0xff] }
  0x1c   : > { %758 = vmatpush.bf16.msra.mxu0 %v1889_v4  ;;  %2289 = vmatpush.bf16.msra.mxu1 %v1889_v4 }
  0x1d   : > { %2290 = vmatpush.bf16.msra.mxu2 %v1889_v4  ;;  %2291 = vmatpush.bf16.msra.mxu3 %v1889_v4 }
  0x20   : > { %759 = vmatpush.bf16.msra.mxu0 %v1888_v5  ;;  %2292 = vmatpush.bf16.msra.mxu1 %v1888_v5 }
  0x21   : > { %2293 = vmatpush.bf16.msra.mxu2 %v1888_v5  ;;  %2294 = vmatpush.bf16.msra.mxu3 %v1888_v5 }
  0x24   : > { %760 = vmatpush.bf16.msra.mxu0 %v1887_v6  ;;  %2295 = vmatpush.bf16.msra.mxu1 %v1887_v6 }
  0x25   : > { %2296 = vmatpush.bf16.msra.mxu2 %v1887_v6  ;;  %2297 = vmatpush.bf16.msra.mxu3 %v1887_v6 }
  0x28   : > { %761 = vmatpush.bf16.msra.mxu0 %v1886_v7  ;;  %2298 = vmatpush.bf16.msra.mxu1 %v1886_v7 }
  0x29   : > { %2299 = vmatpush.bf16.msra.mxu2 %v1886_v7  ;;  %2300 = vmatpush.bf16.msra.mxu3 %v1886_v7  ;;  %v1863_v7 = vld [vmem:[%s2379_s7 + $0x148] sm:$0xff] }
  0x2b   : > { %762 = vmatmul.bf16.vlgmr.msra.gmra.mxu0 %v1822_v8  ;;  %842 = vmatmul.bf16.vlgmr.msra.gmra.mxu1 %v1838_v9  ;;  %v1879_v8 = vld [vmem:[%s2379_s7 + $0x1c8] sm:$0xff] }
  0x2c   : > { %922 = vmatmul.bf16.vlgmr.msra.gmra.mxu2 %v1854_v10  ;;  %1002 = vmatmul.bf16.vlgmr.msra.gmra.mxu3 %v1870_v11 }
  0x3b   : > { %767 = vmatmul.bf16.gmra.mxu0 %v1823_v12  ;;  %847 = vmatmul.bf16.gmra.mxu1 %v1839_v13 }
  0x3c   : > { %927 = vmatmul.bf16.gmra.mxu2 %v1855_v14  ;;  %1007 = vmatmul.bf16.gmra.mxu3 %v1871_v15 }
  0x4b   : > { %772 = vmatmul.bf16.gmra.mxu0 %v1824_v16  ;;  %852 = vmatmul.bf16.gmra.mxu1 %v1840_v17 }
  0x4c   : > { %932 = vmatmul.bf16.gmra.mxu2 %v1856_v18  ;;  %1012 = vmatmul.bf16.gmra.mxu3 %v1872_v19 }
  0x5b   : > { %777 = vmatmul.bf16.gmra.mxu0 %v1825_v20  ;;  %857 = vmatmul.bf16.gmra.mxu1 %v1841_v21 }
  0x5c   : > { %937 = vmatmul.bf16.gmra.mxu2 %v1857_v22  ;;  %1017 = vmatmul.bf16.gmra.mxu3 %v1873_v23 }
  0x6b   : > { %782 = vmatmul.bf16.gmra.mxu0 %v1826_v24  ;;  %862 = vmatmul.bf16.gmra.mxu1 %v1842_v25 }
  0x6c   : > { %942 = vmatmul.bf16.gmra.mxu2 %v1858_v26  ;;  %1022 = vmatmul.bf16.gmra.mxu3 %v1874_v27 }
  0x7b   : > { %787 = vmatmul.bf16.gmra.mxu0 %v1827_v28  ;;  %867 = vmatmul.bf16.gmra.mxu1 %v1843_v29 }
  0x7c   : > { %947 = vmatmul.bf16.gmra.mxu2 %v1859_v30  ;;  %1027 = vmatmul.bf16.gmra.mxu3 %v1875_v31 }
  0x8b   : > { %792 = vmatmul.bf16.gmra.mxu0 %v1828_v32  ;;  %872 = vmatmul.bf16.gmra.mxu1 %v1844_v33  ;;  %v1832_v33 = vld [vmem:[%s2379_s7 + $0x50] sm:$0xff] }
  0x8c   : > { %952 = vmatmul.bf16.gmra.mxu2 %v1860_v34  ;;  %1032 = vmatmul.bf16.gmra.mxu3 %v1876_v35  ;;  %v1848_v34 = vld [vmem:[%s2379_s7 + $0xd0] sm:$0xff] }
  0x9b   : > { %797 = vmatmul.bf16.gmra.mxu0 %v1829_v36  ;;  %877 = vmatmul.bf16.gmra.mxu1 %v1845_v37 }
  0x9c   : > { %957 = vmatmul.bf16.gmra.mxu2 %v1861_v38  ;;  %1037 = vmatmul.bf16.gmra.mxu3 %v1877_v39  ;;  %v1864_v39 = vld [vmem:[%s2379_s7 + $0x150] sm:$0xff] }
  0xa8   : > { %v763_v42 = vpop.f32.mrf.mxu0  ;;  %v843_v43 = vpop.f32.mrf.mxu1 }
  0xa9   : > { %v764_v47 = vadd.f32 %v2420_v46, %v763_v42  ;;  %v844_v48 = vadd.f32 %v2420_v46, %v843_v43 }
  0xab   : > { %802 = vmatmul.bf16.gmra.mxu0 %v1830_v40  ;;  %882 = vmatmul.bf16.gmra.mxu1 %v1846_v41  ;;  %v1083_v55 = vmax.f32 %v764_v47, 0.0  ;;  %v1115_v56 = vmax.f32 %v844_v48, 0.0  ;;  %v1880_v40 = vld [vmem:[%s2379_s7 + $0x1d0] sm:$0xff] }
  0xac   : > { %962 = vmatmul.bf16.gmra.mxu2 %v1862_v44  ;;  %1042 = vmatmul.bf16.gmra.mxu3 %v1878_v45 }
  0xaf   : > { %v923_v49 = vpop.f32.mrf.mxu2  ;;  %v1003_v50 = vpop.f32.mrf.mxu3 }
  0xb0   : > { %v765_v51 = vpop.f32.mrf.mxu0  ;;  %v845_v52 = vpop.f32.mrf.mxu1  ;;  %v924_v61 = vadd.f32 %v2420_v46, %v923_v49  ;;  %v1004_v62 = vadd.f32 %v2420_v46, %v1003_v50 }
  0xb1   : > { %v766_v53 = vadd.f32 %v2420_v46, %v765_v51  ;;  %v846_v54 = vadd.f32 %v2420_v46, %v845_v52 }
  0xb2   : > { %v1147_v9 = vmax.f32 %v924_v61, 0.0  ;;  %v1179_v10 = vmax.f32 %v1004_v62, 0.0 }
  0xb3   : > { %v1084_v57 = vmax.f32 %v766_v53, 0.0  ;;  %v1116_v58 = vmax.f32 %v846_v54, 0.0 }
  0xb5   : > { %v1897_v59 = vpack.c.bf16 %v1084_v57, %v1083_v55  ;;  %v1977_v60 = vpack.c.bf16 %v1116_v58, %v1115_v56 }
  0xb7   : > { %1898 = vst [vmem:[%s2431_s13] sm:$0xff] %v1897_v59   ;;  %v925_v63 = vpop.f32.mrf.mxu2  ;;  %v1005_v0 = vpop.f32.mrf.mxu3 }
  0xb8   : > { %2229 = vst [vmem:[%s2431_s13 + $0x80] sm:$0xff] %v1977_v60   ;;  %v926_v3 = vadd.f32 %v2420_v46, %v925_v63  ;;  %v1006_v4 = vadd.f32 %v2420_v46, %v1005_v0  ;;  %v768_v5 = vpop.f32.mrf.mxu0  ;;  %v848_v6 = vpop.f32.mrf.mxu1 }
  0xb9   : > { %v769_v15 = vadd.f32 %v2420_v46, %v768_v5  ;;  %v849_v16 = vadd.f32 %v2420_v46, %v848_v6 }
  0xba   : > { %v1148_v11 = vmax.f32 %v926_v3, 0.0  ;;  %v1180_v12 = vmax.f32 %v1006_v4, 0.0  ;;  %v1849_v3 = vld [vmem:[%s2379_s7 + $0xd8] sm:$0xff] }
  0xbb   : > { %807 = vmatmul.bf16.gmra.mxu0 %v1831_v1  ;;  %887 = vmatmul.bf16.gmra.mxu1 %v1847_v2  ;;  %v1085_v23 = vmax.f32 %v769_v15, 0.0  ;;  %v1117_v24 = vmax.f32 %v849_v16, 0.0  ;;  %v1833_v2 = vld [vmem:[%s2379_s7 + $0x58] sm:$0xff] }
  0xbc   : > { %v2057_v13 = vpack.c.bf16 %v1148_v11, %v1147_v9  ;;  %v2137_v14 = vpack.c.bf16 %v1180_v12, %v1179_v10  ;;  %967 = vmatmul.bf16.gmra.mxu2 %v1863_v7  ;;  %1047 = vmatmul.bf16.gmra.mxu3 %v1879_v8  ;;  %v1865_v8 = vld [vmem:[%s2379_s7 + $0x158] sm:$0xff] }
  0xbd   : > { %v1881_v9 = vld [vmem:[%s2379_s7 + $0x1d8] sm:$0xff] }
  0xbe   : > { %2245 = vst [vmem:[%s2431_s13 + $0x100] sm:$0xff] %v2057_v13  }
  0xbf   : > { %2261 = vst [vmem:[%s2431_s13 + $0x180] sm:$0xff] %v2137_v14   ;;  %v928_v17 = vpop.f32.mrf.mxu2  ;;  %v1008_v18 = vpop.f32.mrf.mxu3 }
  0xc0   : > { %v770_v19 = vpop.f32.mrf.mxu0  ;;  %v850_v20 = vpop.f32.mrf.mxu1  ;;  %v929_v29 = vadd.f32 %v2420_v46, %v928_v17  ;;  %v1009_v30 = vadd.f32 %v2420_v46, %v1008_v18 }
  0xc1   : > { %v771_v21 = vadd.f32 %v2420_v46, %v770_v19  ;;  %v851_v22 = vadd.f32 %v2420_v46, %v850_v20 }
  0xc2   : > { %v1149_v41 = vmax.f32 %v929_v29, 0.0  ;;  %v1181_v42 = vmax.f32 %v1009_v30, 0.0 }
  0xc3   : > { %v1086_v25 = vmax.f32 %v771_v21, 0.0  ;;  %v1118_v26 = vmax.f32 %v851_v22, 0.0 }
  0xc5   : > { %v1902_v27 = vpack.c.bf16 %v1086_v25, %v1085_v23  ;;  %v1982_v28 = vpack.c.bf16 %v1118_v26, %v1117_v24 }
  0xc7   : > { %2214 = vst [vmem:[%s2431_s13 + $0x8] sm:$0xff] %v1902_v27   ;;  %v930_v31 = vpop.f32.mrf.mxu2  ;;  %v1010_v32 = vpop.f32.mrf.mxu3 }
  0xc8   : > { %2230 = vst [vmem:[%s2431_s13 + $0x88] sm:$0xff] %v1982_v28   ;;  %v931_v35 = vadd.f32 %v2420_v46, %v930_v31  ;;  %v1011_v36 = vadd.f32 %v2420_v46, %v1010_v32  ;;  %v773_v37 = vpop.f32.mrf.mxu0  ;;  %v853_v38 = vpop.f32.mrf.mxu1 }
  0xc9   : > { %v774_v48 = vadd.f32 %v2420_v46, %v773_v37  ;;  %v854_v49 = vadd.f32 %v2420_v46, %v853_v38 }
  0xca   : > { %v1150_v43 = vmax.f32 %v931_v35, 0.0  ;;  %v1182_v44 = vmax.f32 %v1011_v36, 0.0  ;;  %v1850_v35 = vld [vmem:[%s2379_s7 + $0xe0] sm:$0xff] }
  0xcb   : > { %812 = vmatmul.bf16.gmra.mxu0 %v1832_v33  ;;  %892 = vmatmul.bf16.gmra.mxu1 %v1848_v34  ;;  %v1087_v56 = vmax.f32 %v774_v48, 0.0  ;;  %v1119_v57 = vmax.f32 %v854_v49, 0.0  ;;  %v1834_v34 = vld [vmem:[%s2379_s7 + $0x60] sm:$0xff] }
  0xcc   : > { %v2062_v45 = vpack.c.bf16 %v1150_v43, %v1149_v41  ;;  %v2142_v47 = vpack.c.bf16 %v1182_v44, %v1181_v42  ;;  %972 = vmatmul.bf16.gmra.mxu2 %v1864_v39  ;;  %1052 = vmatmul.bf16.gmra.mxu3 %v1880_v40  ;;  %v1866_v40 = vld [vmem:[%s2379_s7 + $0x160] sm:$0xff] }
  0xcd   : > { %v1882_v41 = vld [vmem:[%s2379_s7 + $0x1e0] sm:$0xff] }
  0xce   : > { %2246 = vst [vmem:[%s2431_s13 + $0x108] sm:$0xff] %v2062_v45  }
  0xcf   : > { %2262 = vst [vmem:[%s2431_s13 + $0x188] sm:$0xff] %v2142_v47   ;;  %v933_v50 = vpop.f32.mrf.mxu2  ;;  %v1013_v51 = vpop.f32.mrf.mxu3 }
  0xd0   : > { %v775_v52 = vpop.f32.mrf.mxu0  ;;  %v855_v53 = vpop.f32.mrf.mxu1  ;;  %v934_v62 = vadd.f32 %v2420_v46, %v933_v50  ;;  %v1014_v63 = vadd.f32 %v2420_v46, %v1013_v51 }
  0xd1   : > { %v776_v54 = vadd.f32 %v2420_v46, %v775_v52  ;;  %v856_v55 = vadd.f32 %v2420_v46, %v855_v53 }
  0xd2   : > { %v1151_v10 = vmax.f32 %v934_v62, 0.0  ;;  %v1183_v11 = vmax.f32 %v1014_v63, 0.0 }
  0xd3   : > { %v1088_v58 = vmax.f32 %v776_v54, 0.0  ;;  %v1120_v59 = vmax.f32 %v856_v55, 0.0 }
  0xd5   : > { %v1907_v60 = vpack.c.bf16 %v1088_v58, %v1087_v56  ;;  %v1987_v61 = vpack.c.bf16 %v1120_v59, %v1119_v57 }
  0xd7   : > { %2215 = vst [vmem:[%s2431_s13 + $0x10] sm:$0xff] %v1907_v60   ;;  %v935_v0 = vpop.f32.mrf.mxu2  ;;  %v1015_v1 = vpop.f32.mrf.mxu3 }
  0xd8   : > { %2231 = vst [vmem:[%s2431_s13 + $0x90] sm:$0xff] %v1987_v61   ;;  %v936_v4 = vadd.f32 %v2420_v46, %v935_v0  ;;  %v1016_v5 = vadd.f32 %v2420_v46, %v1015_v1  ;;  %v778_v6 = vpop.f32.mrf.mxu0  ;;  %v858_v7 = vpop.f32.mrf.mxu1 }
  0xd9   : > { %v779_v16 = vadd.f32 %v2420_v46, %v778_v6  ;;  %v859_v17 = vadd.f32 %v2420_v46, %v858_v7 }
  0xda   : > { %v1152_v12 = vmax.f32 %v936_v4, 0.0  ;;  %v1184_v13 = vmax.f32 %v1016_v5, 0.0  ;;  %v1851_v4 = vld [vmem:[%s2379_s7 + $0xe8] sm:$0xff] }
  0xdb   : > { %817 = vmatmul.bf16.gmra.mxu0 %v1833_v2  ;;  %897 = vmatmul.bf16.gmra.mxu1 %v1849_v3  ;;  %v1089_v24 = vmax.f32 %v779_v16, 0.0  ;;  %v1121_v25 = vmax.f32 %v859_v17, 0.0  ;;  %v1835_v3 = vld [vmem:[%s2379_s7 + $0x68] sm:$0xff] }
  0xdc   : > { %v2067_v14 = vpack.c.bf16 %v1152_v12, %v1151_v10  ;;  %v2147_v15 = vpack.c.bf16 %v1184_v13, %v1183_v11  ;;  %977 = vmatmul.bf16.gmra.mxu2 %v1865_v8  ;;  %1057 = vmatmul.bf16.gmra.mxu3 %v1881_v9  ;;  %v1867_v9 = vld [vmem:[%s2379_s7 + $0x168] sm:$0xff] }
  0xdd   : > { %v1883_v10 = vld [vmem:[%s2379_s7 + $0x1e8] sm:$0xff] }
  0xde   : > { %2247 = vst [vmem:[%s2431_s13 + $0x110] sm:$0xff] %v2067_v14  }
  0xdf   : > { %2263 = vst [vmem:[%s2431_s13 + $0x190] sm:$0xff] %v2147_v15   ;;  %v938_v18 = vpop.f32.mrf.mxu2  ;;  %v1018_v19 = vpop.f32.mrf.mxu3 }
  0xe0   : > { %v780_v20 = vpop.f32.mrf.mxu0  ;;  %v860_v21 = vpop.f32.mrf.mxu1  ;;  %v939_v30 = vadd.f32 %v2420_v46, %v938_v18  ;;  %v1019_v31 = vadd.f32 %v2420_v46, %v1018_v19 }
  0xe1   : > { %v781_v22 = vadd.f32 %v2420_v46, %v780_v20  ;;  %v861_v23 = vadd.f32 %v2420_v46, %v860_v21 }
  0xe2   : > { %v1153_v42 = vmax.f32 %v939_v30, 0.0  ;;  %v1185_v43 = vmax.f32 %v1019_v31, 0.0 }
  0xe3   : > { %v1090_v26 = vmax.f32 %v781_v22, 0.0  ;;  %v1122_v27 = vmax.f32 %v861_v23, 0.0 }
  0xe5   : > { %v1912_v28 = vpack.c.bf16 %v1090_v26, %v1089_v24  ;;  %v1992_v29 = vpack.c.bf16 %v1122_v27, %v1121_v25 }
  0xe7   : > { %2216 = vst [vmem:[%s2431_s13 + $0x18] sm:$0xff] %v1912_v28   ;;  %v940_v32 = vpop.f32.mrf.mxu2  ;;  %v1020_v33 = vpop.f32.mrf.mxu3 }
  0xe8   : > { %2232 = vst [vmem:[%s2431_s13 + $0x98] sm:$0xff] %v1992_v29   ;;  %v941_v36 = vadd.f32 %v2420_v46, %v940_v32  ;;  %v1021_v37 = vadd.f32 %v2420_v46, %v1020_v33  ;;  %v783_v38 = vpop.f32.mrf.mxu0  ;;  %v863_v39 = vpop.f32.mrf.mxu1 }
  0xe9   : > { %v784_v49 = vadd.f32 %v2420_v46, %v783_v38  ;;  %v864_v50 = vadd.f32 %v2420_v46, %v863_v39 }
  0xea   : > { %v1154_v44 = vmax.f32 %v941_v36, 0.0  ;;  %v1186_v45 = vmax.f32 %v1021_v37, 0.0  ;;  %v1852_v36 = vld [vmem:[%s2379_s7 + $0xf0] sm:$0xff] }
  0xeb   : > { %822 = vmatmul.bf16.gmra.mxu0 %v1834_v34  ;;  %902 = vmatmul.bf16.gmra.mxu1 %v1850_v35  ;;  %v1091_v57 = vmax.f32 %v784_v49, 0.0  ;;  %v1123_v58 = vmax.f32 %v864_v50, 0.0  ;;  %v1836_v35 = vld [vmem:[%s2379_s7 + $0x70] sm:$0xff] }
  0xec   : > { %v2072_v47 = vpack.c.bf16 %v1154_v44, %v1153_v42  ;;  %v2152_v48 = vpack.c.bf16 %v1186_v45, %v1185_v43  ;;  %982 = vmatmul.bf16.gmra.mxu2 %v1866_v40  ;;  %1062 = vmatmul.bf16.gmra.mxu3 %v1882_v41  ;;  %v1868_v41 = vld [vmem:[%s2379_s7 + $0x170] sm:$0xff] }
  0xed   : > { %v1884_v42 = vld [vmem:[%s2379_s7 + $0x1f0] sm:$0xff] }
  0xee   : > { %2248 = vst [vmem:[%s2431_s13 + $0x118] sm:$0xff] %v2072_v47  }
  0xef   : > { %2264 = vst [vmem:[%s2431_s13 + $0x198] sm:$0xff] %v2152_v48   ;;  %v943_v51 = vpop.f32.mrf.mxu2  ;;  %v1023_v52 = vpop.f32.mrf.mxu3 }
  0xf0   : > { %v785_v53 = vpop.f32.mrf.mxu0  ;;  %v865_v54 = vpop.f32.mrf.mxu1  ;;  %v944_v63 = vadd.f32 %v2420_v46, %v943_v51  ;;  %v1024_v0 = vadd.f32 %v2420_v46, %v1023_v52 }
  0xf1   : > { %v786_v55 = vadd.f32 %v2420_v46, %v785_v53  ;;  %v866_v56 = vadd.f32 %v2420_v46, %v865_v54 }
  0xf2   : > { %v1155_v11 = vmax.f32 %v944_v63, 0.0  ;;  %v1187_v12 = vmax.f32 %v1024_v0, 0.0 }
  0xf3   : > { %v1092_v59 = vmax.f32 %v786_v55, 0.0  ;;  %v1124_v60 = vmax.f32 %v866_v56, 0.0 }
  0xf5   : > { %v1917_v61 = vpack.c.bf16 %v1092_v59, %v1091_v57  ;;  %v1997_v62 = vpack.c.bf16 %v1124_v60, %v1123_v58 }
  0xf7   : > { %2217 = vst [vmem:[%s2431_s13 + $0x20] sm:$0xff] %v1917_v61   ;;  %v945_v1 = vpop.f32.mrf.mxu2  ;;  %v1025_v2 = vpop.f32.mrf.mxu3 }
  0xf8   : > { %2233 = vst [vmem:[%s2431_s13 + $0xa0] sm:$0xff] %v1997_v62   ;;  %v946_v5 = vadd.f32 %v2420_v46, %v945_v1  ;;  %v1026_v6 = vadd.f32 %v2420_v46, %v1025_v2  ;;  %v788_v7 = vpop.f32.mrf.mxu0  ;;  %v868_v8 = vpop.f32.mrf.mxu1 }
  0xf9   : > { %v789_v17 = vadd.f32 %v2420_v46, %v788_v7  ;;  %v869_v18 = vadd.f32 %v2420_v46, %v868_v8 }
  0xfa   : > { %v1156_v13 = vmax.f32 %v946_v5, 0.0  ;;  %v1188_v14 = vmax.f32 %v1026_v6, 0.0  ;;  %v1853_v5 = vld [vmem:[%s2379_s7 + $0xf8] sm:$0xff] }
  0xfb   : > { %827 = vmatmul.bf16.gmra.mxu0 %v1835_v3  ;;  %907 = vmatmul.bf16.gmra.mxu1 %v1851_v4  ;;  %v1093_v25 = vmax.f32 %v789_v17, 0.0  ;;  %v1125_v26 = vmax.f32 %v869_v18, 0.0  ;;  %v1837_v4 = vld [vmem:[%s2379_s7 + $0x78] sm:$0xff] }
  0xfc   : > { %v2077_v15 = vpack.c.bf16 %v1156_v13, %v1155_v11  ;;  %v2157_v16 = vpack.c.bf16 %v1188_v14, %v1187_v12  ;;  %987 = vmatmul.bf16.gmra.mxu2 %v1867_v9  ;;  %1067 = vmatmul.bf16.gmra.mxu3 %v1883_v10  ;;  %v1869_v10 = vld [vmem:[%s2379_s7 + $0x178] sm:$0xff] }
  0xfd   : > { %v1885_v11 = vld [vmem:[%s2379_s7 + $0x1f8] sm:$0xff] }
  0xfe   : > { %2249 = vst [vmem:[%s2431_s13 + $0x120] sm:$0xff] %v2077_v15  }
  0xff   : > { %2265 = vst [vmem:[%s2431_s13 + $0x1a0] sm:$0xff] %v2157_v16   ;;  %v948_v19 = vpop.f32.mrf.mxu2  ;;  %v1028_v20 = vpop.f32.mrf.mxu3 }
 0x100   : > { %v790_v21 = vpop.f32.mrf.mxu0  ;;  %v870_v22 = vpop.f32.mrf.mxu1  ;;  %v949_v31 = vadd.f32 %v2420_v46, %v948_v19  ;;  %v1029_v32 = vadd.f32 %v2420_v46, %v1028_v20 }
 0x101   : > { %v791_v23 = vadd.f32 %v2420_v46, %v790_v21  ;;  %v871_v24 = vadd.f32 %v2420_v46, %v870_v22 }
 0x102   : > { %v1157_v43 = vmax.f32 %v949_v31, 0.0  ;;  %v1189_v44 = vmax.f32 %v1029_v32, 0.0 }
 0x103   : > { %v1094_v27 = vmax.f32 %v791_v23, 0.0  ;;  %v1126_v28 = vmax.f32 %v871_v24, 0.0 }
 0x105   : > { %v1922_v29 = vpack.c.bf16 %v1094_v27, %v1093_v25  ;;  %v2002_v30 = vpack.c.bf16 %v1126_v28, %v1125_v26 }
 0x107   : > { %2218 = vst [vmem:[%s2431_s13 + $0x28] sm:$0xff] %v1922_v29   ;;  %v950_v33 = vpop.f32.mrf.mxu2  ;;  %v1030_v34 = vpop.f32.mrf.mxu3 }
 0x108   : > { %2234 = vst [vmem:[%s2431_s13 + $0xa8] sm:$0xff] %v2002_v30   ;;  %v951_v37 = vadd.f32 %v2420_v46, %v950_v33  ;;  %v1031_v38 = vadd.f32 %v2420_v46, %v1030_v34  ;;  %v793_v39 = vpop.f32.mrf.mxu0  ;;  %v873_v40 = vpop.f32.mrf.mxu1 }
 0x109   : > { %v794_v50 = vadd.f32 %v2420_v46, %v793_v39  ;;  %v874_v51 = vadd.f32 %v2420_v46, %v873_v40 }
 0x10a   : > { %v1158_v45 = vmax.f32 %v951_v37, 0.0  ;;  %v1190_v47 = vmax.f32 %v1031_v38, 0.0 }
 0x10b   : > { %832 = vmatmul.bf16.gmra.mxu0 %v1836_v35  ;;  %912 = vmatmul.bf16.gmra.mxu1 %v1852_v36  ;;  %v1095_v58 = vmax.f32 %v794_v50, 0.0  ;;  %v1127_v59 = vmax.f32 %v874_v51, 0.0 }
 0x10c   : > { %v2082_v48 = vpack.c.bf16 %v1158_v45, %v1157_v43  ;;  %v2162_v49 = vpack.c.bf16 %v1190_v47, %v1189_v44  ;;  %992 = vmatmul.bf16.gmra.mxu2 %v1868_v41  ;;  %1072 = vmatmul.bf16.gmra.mxu3 %v1884_v42 }
 0x10e   : > { %2250 = vst [vmem:[%s2431_s13 + $0x128] sm:$0xff] %v2082_v48  }
 0x10f   : > { %2266 = vst [vmem:[%s2431_s13 + $0x1a8] sm:$0xff] %v2162_v49   ;;  %v953_v52 = vpop.f32.mrf.mxu2  ;;  %v1033_v53 = vpop.f32.mrf.mxu3 }
 0x110   : > { %v795_v54 = vpop.f32.mrf.mxu0  ;;  %v875_v55 = vpop.f32.mrf.mxu1  ;;  %v954_v0 = vadd.f32 %v2420_v46, %v953_v52  ;;  %v1034_v1 = vadd.f32 %v2420_v46, %v1033_v53 }
 0x111   : > { %v796_v56 = vadd.f32 %v2420_v46, %v795_v54  ;;  %v876_v57 = vadd.f32 %v2420_v46, %v875_v55 }
 0x112   : > { %v1159_v12 = vmax.f32 %v954_v0, 0.0  ;;  %v1191_v13 = vmax.f32 %v1034_v1, 0.0 }
 0x113   : > { %v1096_v60 = vmax.f32 %v796_v56, 0.0  ;;  %v1128_v61 = vmax.f32 %v876_v57, 0.0 }
 0x115   : > { %v1927_v62 = vpack.c.bf16 %v1096_v60, %v1095_v58  ;;  %v2007_v63 = vpack.c.bf16 %v1128_v61, %v1127_v59 }
 0x117   : > { %2219 = vst [vmem:[%s2431_s13 + $0x30] sm:$0xff] %v1927_v62   ;;  %v955_v2 = vpop.f32.mrf.mxu2  ;;  %v1035_v3 = vpop.f32.mrf.mxu3 }
 0x118   : > { %2235 = vst [vmem:[%s2431_s13 + $0xb0] sm:$0xff] %v2007_v63   ;;  %v956_v6 = vadd.f32 %v2420_v46, %v955_v2  ;;  %v1036_v7 = vadd.f32 %v2420_v46, %v1035_v3  ;;  %v798_v8 = vpop.f32.mrf.mxu0  ;;  %v878_v9 = vpop.f32.mrf.mxu1 }
 0x119   : > { %v799_v18 = vadd.f32 %v2420_v46, %v798_v8  ;;  %v879_v19 = vadd.f32 %v2420_v46, %v878_v9 }
 0x11a   : > { %v1160_v14 = vmax.f32 %v956_v6, 0.0  ;;  %v1192_v15 = vmax.f32 %v1036_v7, 0.0 }
 0x11b   : > { %837 = vmatmul.bf16.gmra.mxu0 %v1837_v4  ;;  %917 = vmatmul.bf16.gmra.mxu1 %v1853_v5  ;;  %v1097_v26 = vmax.f32 %v799_v18, 0.0  ;;  %v1129_v27 = vmax.f32 %v879_v19, 0.0 }
 0x11c   : > { %v2087_v16 = vpack.c.bf16 %v1160_v14, %v1159_v12  ;;  %v2167_v17 = vpack.c.bf16 %v1192_v15, %v1191_v13  ;;  %997 = vmatmul.bf16.gmra.mxu2 %v1869_v10  ;;  %1077 = vmatmul.bf16.gmra.mxu3 %v1885_v11 }
 0x11e   : > { %2251 = vst [vmem:[%s2431_s13 + $0x130] sm:$0xff] %v2087_v16  }
 0x11f   : > { %2267 = vst [vmem:[%s2431_s13 + $0x1b0] sm:$0xff] %v2167_v17   ;;  %v958_v20 = vpop.f32.mrf.mxu2  ;;  %v1038_v21 = vpop.f32.mrf.mxu3 }
 0x120   : > { %v800_v22 = vpop.f32.mrf.mxu0  ;;  %v880_v23 = vpop.f32.mrf.mxu1  ;;  %v959_v32 = vadd.f32 %v2420_v46, %v958_v20  ;;  %v1039_v33 = vadd.f32 %v2420_v46, %v1038_v21 }
 0x121   : > { %v801_v24 = vadd.f32 %v2420_v46, %v800_v22  ;;  %v881_v25 = vadd.f32 %v2420_v46, %v880_v23 }
 0x122   : > { %v1161_v40 = vmax.f32 %v959_v32, 0.0  ;;  %v1193_v41 = vmax.f32 %v1039_v33, 0.0 }
 0x123   : > { %v1098_v28 = vmax.f32 %v801_v24, 0.0  ;;  %v1130_v29 = vmax.f32 %v881_v25, 0.0 }
 0x125   : > { %v1932_v30 = vpack.c.bf16 %v1098_v28, %v1097_v26  ;;  %v2012_v31 = vpack.c.bf16 %v1130_v29, %v1129_v27 }
 0x127   : > { %2220 = vst [vmem:[%s2431_s13 + $0x38] sm:$0xff] %v1932_v30   ;;  %v960_v34 = vpop.f32.mrf.mxu2  ;;  %v1040_v35 = vpop.f32.mrf.mxu3 }
 0x128   : > { %2236 = vst [vmem:[%s2431_s13 + $0xb8] sm:$0xff] %v2012_v31   ;;  %v961_v36 = vadd.f32 %v2420_v46, %v960_v34  ;;  %v1041_v37 = vadd.f32 %v2420_v46, %v1040_v35  ;;  %v803_v38 = vpop.f32.mrf.mxu0  ;;  %v883_v39 = vpop.f32.mrf.mxu1 }
 0x129   : > { %v804_v47 = vadd.f32 %v2420_v46, %v803_v38  ;;  %v884_v48 = vadd.f32 %v2420_v46, %v883_v39 }
 0x12a   : > { %v1162_v42 = vmax.f32 %v961_v36, 0.0  ;;  %v1194_v43 = vmax.f32 %v1041_v37, 0.0 }
 0x12b   : > { %v1099_v55 = vmax.f32 %v804_v47, 0.0  ;;  %v1131_v56 = vmax.f32 %v884_v48, 0.0 }
 0x12c   : > { %v2092_v44 = vpack.c.bf16 %v1162_v42, %v1161_v40  ;;  %v2172_v45 = vpack.c.bf16 %v1194_v43, %v1193_v41 }
 0x12e   : > { %2252 = vst [vmem:[%s2431_s13 + $0x138] sm:$0xff] %v2092_v44  }
 0x12f   : > { %2268 = vst [vmem:[%s2431_s13 + $0x1b8] sm:$0xff] %v2172_v45   ;;  %v963_v49 = vpop.f32.mrf.mxu2  ;;  %v1043_v50 = vpop.f32.mrf.mxu3 }
 0x130   : > { %v805_v51 = vpop.f32.mrf.mxu0  ;;  %v885_v52 = vpop.f32.mrf.mxu1  ;;  %v964_v61 = vadd.f32 %v2420_v46, %v963_v49  ;;  %v1044_v62 = vadd.f32 %v2420_v46, %v1043_v50 }
 0x131   : > { %v806_v53 = vadd.f32 %v2420_v46, %v805_v51  ;;  %v886_v54 = vadd.f32 %v2420_v46, %v885_v52 }
 0x132   : > { %v1163_v5 = vmax.f32 %v964_v61, 0.0  ;;  %v1195_v6 = vmax.f32 %v1044_v62, 0.0 }
 0x133   : > { %v1100_v57 = vmax.f32 %v806_v53, 0.0  ;;  %v1132_v58 = vmax.f32 %v886_v54, 0.0 }
 0x135   : > { %v1937_v59 = vpack.c.bf16 %v1100_v57, %v1099_v55  ;;  %v2017_v60 = vpack.c.bf16 %v1132_v58, %v1131_v56 }
 0x137   : > { %2221 = vst [vmem:[%s2431_s13 + $0x40] sm:$0xff] %v1937_v59   ;;  %v965_v63 = vpop.f32.mrf.mxu2  ;;  %v1045_v0 = vpop.f32.mrf.mxu3 }
 0x138   : > { %2237 = vst [vmem:[%s2431_s13 + $0xc0] sm:$0xff] %v2017_v60   ;;  %v966_v1 = vadd.f32 %v2420_v46, %v965_v63  ;;  %v1046_v2 = vadd.f32 %v2420_v46, %v1045_v0  ;;  %v808_v3 = vpop.f32.mrf.mxu0  ;;  %v888_v4 = vpop.f32.mrf.mxu1 }
 0x139   : > { %v809_v11 = vadd.f32 %v2420_v46, %v808_v3  ;;  %v889_v12 = vadd.f32 %v2420_v46, %v888_v4 }
 0x13a   : > { %v1164_v7 = vmax.f32 %v966_v1, 0.0  ;;  %v1196_v8 = vmax.f32 %v1046_v2, 0.0 }
 0x13b   : > { %v1101_v19 = vmax.f32 %v809_v11, 0.0  ;;  %v1133_v20 = vmax.f32 %v889_v12, 0.0 }
 0x13c   : > { %v2097_v9 = vpack.c.bf16 %v1164_v7, %v1163_v5  ;;  %v2177_v10 = vpack.c.bf16 %v1196_v8, %v1195_v6 }
 0x13e   : > { %2253 = vst [vmem:[%s2431_s13 + $0x140] sm:$0xff] %v2097_v9  }
 0x13f   : > { %2269 = vst [vmem:[%s2431_s13 + $0x1c0] sm:$0xff] %v2177_v10   ;;  %v968_v13 = vpop.f32.mrf.mxu2  ;;  %v1048_v14 = vpop.f32.mrf.mxu3 }
 0x140   : > { %v810_v15 = vpop.f32.mrf.mxu0  ;;  %v890_v16 = vpop.f32.mrf.mxu1  ;;  %v969_v25 = vadd.f32 %v2420_v46, %v968_v13  ;;  %v1049_v26 = vadd.f32 %v2420_v46, %v1048_v14 }
 0x141   : > { %v811_v17 = vadd.f32 %v2420_v46, %v810_v15  ;;  %v891_v18 = vadd.f32 %v2420_v46, %v890_v16 }
 0x142   : > { %v1165_v33 = vmax.f32 %v969_v25, 0.0  ;;  %v1197_v34 = vmax.f32 %v1049_v26, 0.0 }
 0x143   : > { %v1102_v21 = vmax.f32 %v811_v17, 0.0  ;;  %v1134_v22 = vmax.f32 %v891_v18, 0.0 }
 0x145   : > { %v1942_v23 = vpack.c.bf16 %v1102_v21, %v1101_v19  ;;  %v2022_v24 = vpack.c.bf16 %v1134_v22, %v1133_v20 }
 0x147   : > { %2222 = vst [vmem:[%s2431_s13 + $0x48] sm:$0xff] %v1942_v23   ;;  %v970_v27 = vpop.f32.mrf.mxu2  ;;  %v1050_v28 = vpop.f32.mrf.mxu3 }
 0x148   : > { %2238 = vst [vmem:[%s2431_s13 + $0xc8] sm:$0xff] %v2022_v24   ;;  %v971_v29 = vadd.f32 %v2420_v46, %v970_v27  ;;  %v1051_v30 = vadd.f32 %v2420_v46, %v1050_v28  ;;  %v813_v31 = vpop.f32.mrf.mxu0  ;;  %v893_v32 = vpop.f32.mrf.mxu1 }
 0x149   : > { %v814_v39 = vadd.f32 %v2420_v46, %v813_v31  ;;  %v894_v40 = vadd.f32 %v2420_v46, %v893_v32 }
 0x14a   : > { %v1166_v35 = vmax.f32 %v971_v29, 0.0  ;;  %v1198_v36 = vmax.f32 %v1051_v30, 0.0 }
 0x14b   : > { %v1103_v48 = vmax.f32 %v814_v39, 0.0  ;;  %v1135_v49 = vmax.f32 %v894_v40, 0.0 }
 0x14c   : > { %v2102_v37 = vpack.c.bf16 %v1166_v35, %v1165_v33  ;;  %v2182_v38 = vpack.c.bf16 %v1198_v36, %v1197_v34 }
 0x14e   : > { %2254 = vst [vmem:[%s2431_s13 + $0x148] sm:$0xff] %v2102_v37  }
 0x14f   : > { %2270 = vst [vmem:[%s2431_s13 + $0x1c8] sm:$0xff] %v2182_v38   ;;  %v973_v41 = vpop.f32.mrf.mxu2  ;;  %v1053_v42 = vpop.f32.mrf.mxu3 }
 0x150   : > { %v815_v43 = vpop.f32.mrf.mxu0  ;;  %v895_v44 = vpop.f32.mrf.mxu1  ;;  %v974_v54 = vadd.f32 %v2420_v46, %v973_v41  ;;  %v1054_v55 = vadd.f32 %v2420_v46, %v1053_v42 }
 0x151   : > { %v816_v45 = vadd.f32 %v2420_v46, %v815_v43  ;;  %v896_v47 = vadd.f32 %v2420_v46, %v895_v44 }
 0x152   : > { %v1167_v62 = vmax.f32 %v974_v54, 0.0  ;;  %v1199_v63 = vmax.f32 %v1054_v55, 0.0 }
 0x153   : > { %v1104_v50 = vmax.f32 %v816_v45, 0.0  ;;  %v1136_v51 = vmax.f32 %v896_v47, 0.0 }
 0x155   : > { %v1947_v52 = vpack.c.bf16 %v1104_v50, %v1103_v48  ;;  %v2027_v53 = vpack.c.bf16 %v1136_v51, %v1135_v49 }
 0x157   : > { %2223 = vst [vmem:[%s2431_s13 + $0x50] sm:$0xff] %v1947_v52   ;;  %v975_v56 = vpop.f32.mrf.mxu2  ;;  %v1055_v57 = vpop.f32.mrf.mxu3 }
 0x158   : > { %2239 = vst [vmem:[%s2431_s13 + $0xd0] sm:$0xff] %v2027_v53   ;;  %v976_v58 = vadd.f32 %v2420_v46, %v975_v56  ;;  %v1056_v59 = vadd.f32 %v2420_v46, %v1055_v57  ;;  %v818_v60 = vpop.f32.mrf.mxu0  ;;  %v898_v61 = vpop.f32.mrf.mxu1 }
 0x159   : > { %v819_v4 = vadd.f32 %v2420_v46, %v818_v60  ;;  %v899_v5 = vadd.f32 %v2420_v46, %v898_v61 }
 0x15a   : > { %v1168_v0 = vmax.f32 %v976_v58, 0.0  ;;  %v1200_v1 = vmax.f32 %v1056_v59, 0.0 }
 0x15b   : > { %v1105_v12 = vmax.f32 %v819_v4, 0.0  ;;  %v1137_v13 = vmax.f32 %v899_v5, 0.0 }
 0x15c   : > { %v2107_v2 = vpack.c.bf16 %v1168_v0, %v1167_v62  ;;  %v2187_v3 = vpack.c.bf16 %v1200_v1, %v1199_v63 }
 0x15e   : > { %2255 = vst [vmem:[%s2431_s13 + $0x150] sm:$0xff] %v2107_v2  }
 0x15f   : > { %2271 = vst [vmem:[%s2431_s13 + $0x1d0] sm:$0xff] %v2187_v3   ;;  %v978_v6 = vpop.f32.mrf.mxu2  ;;  %v1058_v7 = vpop.f32.mrf.mxu3 }
 0x160   : > { %v820_v8 = vpop.f32.mrf.mxu0  ;;  %v900_v9 = vpop.f32.mrf.mxu1  ;;  %v979_v18 = vadd.f32 %v2420_v46, %v978_v6  ;;  %v1059_v19 = vadd.f32 %v2420_v46, %v1058_v7 }
 0x161   : > { %v821_v10 = vadd.f32 %v2420_v46, %v820_v8  ;;  %v901_v11 = vadd.f32 %v2420_v46, %v900_v9 }
 0x162   : > { %v1169_v26 = vmax.f32 %v979_v18, 0.0  ;;  %v1201_v27 = vmax.f32 %v1059_v19, 0.0 }
 0x163   : > { %v1106_v14 = vmax.f32 %v821_v10, 0.0  ;;  %v1138_v15 = vmax.f32 %v901_v11, 0.0 }
 0x165   : > { %v1952_v16 = vpack.c.bf16 %v1106_v14, %v1105_v12  ;;  %v2032_v17 = vpack.c.bf16 %v1138_v15, %v1137_v13 }
 0x167   : > { %2224 = vst [vmem:[%s2431_s13 + $0x58] sm:$0xff] %v1952_v16   ;;  %v980_v20 = vpop.f32.mrf.mxu2  ;;  %v1060_v21 = vpop.f32.mrf.mxu3 }
 0x168   : > { %2240 = vst [vmem:[%s2431_s13 + $0xd8] sm:$0xff] %v2032_v17   ;;  %v981_v22 = vadd.f32 %v2420_v46, %v980_v20  ;;  %v1061_v23 = vadd.f32 %v2420_v46, %v1060_v21  ;;  %v823_v24 = vpop.f32.mrf.mxu0  ;;  %v903_v25 = vpop.f32.mrf.mxu1 }
 0x169   : > { %v824_v32 = vadd.f32 %v2420_v46, %v823_v24  ;;  %v904_v33 = vadd.f32 %v2420_v46, %v903_v25 }
 0x16a   : > { %v1170_v28 = vmax.f32 %v981_v22, 0.0  ;;  %v1202_v29 = vmax.f32 %v1061_v23, 0.0 }
 0x16b   : > { %v1107_v40 = vmax.f32 %v824_v32, 0.0  ;;  %v1139_v41 = vmax.f32 %v904_v33, 0.0 }
 0x16c   : > { %v2112_v30 = vpack.c.bf16 %v1170_v28, %v1169_v26  ;;  %v2192_v31 = vpack.c.bf16 %v1202_v29, %v1201_v27 }
 0x16e   : > { %2256 = vst [vmem:[%s2431_s13 + $0x158] sm:$0xff] %v2112_v30  }
 0x16f   : > { %2272 = vst [vmem:[%s2431_s13 + $0x1d8] sm:$0xff] %v2192_v31   ;;  %v983_v34 = vpop.f32.mrf.mxu2  ;;  %v1063_v35 = vpop.f32.mrf.mxu3  ;;  %v2310_v31 = vld [vmem:[%s2643_s2] ss:$0 sm:$0xff] }
 0x170   : > { %v825_v36 = vpop.f32.mrf.mxu0  ;;  %v905_v37 = vpop.f32.mrf.mxu1  ;;  %v984_v47 = vadd.f32 %v2420_v46, %v983_v34  ;;  %v1064_v48 = vadd.f32 %v2420_v46, %v1063_v35 }
 0x171   : > { %v826_v38 = vadd.f32 %v2420_v46, %v825_v36  ;;  %v906_v39 = vadd.f32 %v2420_v46, %v905_v37 }
 0x172   : > { %v1171_v55 = vmax.f32 %v984_v47, 0.0  ;;  %v1203_v56 = vmax.f32 %v1064_v48, 0.0 }
 0x173   : > { %v1108_v42 = vmax.f32 %v826_v38, 0.0  ;;  %v1140_v43 = vmax.f32 %v906_v39, 0.0 }
 0x175   : > { %v1957_v44 = vpack.c.bf16 %v1108_v42, %v1107_v40  ;;  %v2037_v45 = vpack.c.bf16 %v1140_v43, %v1139_v41 }
 0x177   : > { %2225 = vst [vmem:[%s2431_s13 + $0x60] sm:$0xff] %v1957_v44   ;;  %v985_v49 = vpop.f32.mrf.mxu2  ;;  %v1065_v50 = vpop.f32.mrf.mxu3 }
 0x178   : > { %2241 = vst [vmem:[%s2431_s13 + $0xe0] sm:$0xff] %v2037_v45   ;;  %v986_v51 = vadd.f32 %v2420_v46, %v985_v49  ;;  %v1066_v52 = vadd.f32 %v2420_v46, %v1065_v50  ;;  %v828_v53 = vpop.f32.mrf.mxu0  ;;  %v908_v54 = vpop.f32.mrf.mxu1 }
 0x179   : > { %v829_v61 = vadd.f32 %v2420_v46, %v828_v53  ;;  %v909_v62 = vadd.f32 %v2420_v46, %v908_v54 }
 0x17a   : > { %v1172_v57 = vmax.f32 %v986_v51, 0.0  ;;  %v1204_v58 = vmax.f32 %v1066_v52, 0.0 }
 0x17b   : > { %v1109_v5 = vmax.f32 %v829_v61, 0.0  ;;  %v1141_v6 = vmax.f32 %v909_v62, 0.0 }
 0x17c   : > { %v2117_v59 = vpack.c.bf16 %v1172_v57, %v1171_v55  ;;  %v2197_v60 = vpack.c.bf16 %v1204_v58, %v1203_v56 }
 0x17e   : > { %2257 = vst [vmem:[%s2431_s13 + $0x160] sm:$0xff] %v2117_v59  }
 0x17f   : > { %2273 = vst [vmem:[%s2431_s13 + $0x1e0] sm:$0xff] %v2197_v60   ;;  %v988_v63 = vpop.f32.mrf.mxu2  ;;  %v1068_v0 = vpop.f32.mrf.mxu3 }
 0x180   : > { %v830_v1 = vpop.f32.mrf.mxu0  ;;  %v910_v2 = vpop.f32.mrf.mxu1  ;;  %v989_v11 = vadd.f32 %v2420_v46, %v988_v63  ;;  %v1069_v12 = vadd.f32 %v2420_v46, %v1068_v0 }
 0x181   : > { %v831_v3 = vadd.f32 %v2420_v46, %v830_v1  ;;  %v911_v4 = vadd.f32 %v2420_v46, %v910_v2 }
 0x182   : > { %v1173_v19 = vmax.f32 %v989_v11, 0.0  ;;  %v1205_v20 = vmax.f32 %v1069_v12, 0.0 }
 0x183   : > { %v1110_v7 = vmax.f32 %v831_v3, 0.0  ;;  %v1142_v8 = vmax.f32 %v911_v4, 0.0 }
 0x185   : > { %v1962_v9 = vpack.c.bf16 %v1110_v7, %v1109_v5  ;;  %v2042_v10 = vpack.c.bf16 %v1142_v8, %v1141_v6 }
 0x187   : > { %2226 = vst [vmem:[%s2431_s13 + $0x68] sm:$0xff] %v1962_v9   ;;  %v990_v13 = vpop.f32.mrf.mxu2  ;;  %v1070_v14 = vpop.f32.mrf.mxu3 }
 0x188   : > { %2242 = vst [vmem:[%s2431_s13 + $0xe8] sm:$0xff] %v2042_v10   ;;  %v991_v15 = vadd.f32 %v2420_v46, %v990_v13  ;;  %v1071_v16 = vadd.f32 %v2420_v46, %v1070_v14  ;;  %v833_v17 = vpop.f32.mrf.mxu0  ;;  %v913_v18 = vpop.f32.mrf.mxu1 }
 0x189   : > { %v834_v25 = vadd.f32 %v2420_v46, %v833_v17  ;;  %v914_v26 = vadd.f32 %v2420_v46, %v913_v18 }
 0x18a   : > { %v1174_v21 = vmax.f32 %v991_v15, 0.0  ;;  %v1206_v22 = vmax.f32 %v1071_v16, 0.0 }
 0x18b   : > { %v1111_v34 = vmax.f32 %v834_v25, 0.0  ;;  %v1143_v35 = vmax.f32 %v914_v26, 0.0 }
 0x18c   : > { %v2122_v23 = vpack.c.bf16 %v1174_v21, %v1173_v19  ;;  %v2202_v24 = vpack.c.bf16 %v1206_v22, %v1205_v20 }
 0x18e   : > { %2258 = vst [vmem:[%s2431_s13 + $0x168] sm:$0xff] %v2122_v23  }
 0x18f   : > { %2274 = vst [vmem:[%s2431_s13 + $0x1e8] sm:$0xff] %v2202_v24   ;;  %v993_v27 = vpop.f32.mrf.mxu2  ;;  %v1073_v28 = vpop.f32.mrf.mxu3 }
 0x190   : > { %v835_v29 = vpop.f32.mrf.mxu0  ;;  %v915_v30 = vpop.f32.mrf.mxu1  ;;  %v994_v40 = vadd.f32 %v2310_v31, %v993_v27  ;;  %v1074_v46 = vadd.f32 %v2310_v31, %v1073_v28 }
 0x191   : > { %v836_v32 = vadd.f32 %v2310_v31, %v835_v29  ;;  %v916_v33 = vadd.f32 %v2310_v31, %v915_v30 }
 0x192   : > { %v1175_v48 = vmax.f32 %v994_v40, 0.0  ;;  %v1207_v49 = vmax.f32 %v1074_v46, 0.0 }
 0x193   : > { %v1112_v36 = vmax.f32 %v836_v32, 0.0  ;;  %v1144_v37 = vmax.f32 %v916_v33, 0.0 }
 0x195   : > { %v1967_v38 = vpack.c.bf16 %v1112_v36, %v1111_v34  ;;  %v2047_v39 = vpack.c.bf16 %v1144_v37, %v1143_v35 }
 0x197   : > { %2227 = vst [vmem:[%s2431_s13 + $0x70] sm:$0xff] %v1967_v38   ;;  %v995_v41 = vpop.f32.mrf.mxu2  ;;  %v1075_v42 = vpop.f32.mrf.mxu3 }
 0x198   : > { %2243 = vst [vmem:[%s2431_s13 + $0xf0] sm:$0xff] %v2047_v39   ;;  %v996_v43 = vadd.f32 %v2310_v31, %v995_v41  ;;  %v1076_v44 = vadd.f32 %v2310_v31, %v1075_v42  ;;  %v838_v45 = vpop.f32.mrf.mxu0  ;;  %v918_v47 = vpop.f32.mrf.mxu1 }
 0x199   : > { %v839_v54 = vadd.f32 %v2310_v31, %v838_v45  ;;  %v919_v55 = vadd.f32 %v2310_v31, %v918_v47 }
 0x19a   : > { %v1176_v50 = vmax.f32 %v996_v43, 0.0  ;;  %v1208_v51 = vmax.f32 %v1076_v44, 0.0 }
 0x19b   : > { %v1113_v62 = vmax.f32 %v839_v54, 0.0  ;;  %v1145_v63 = vmax.f32 %v919_v55, 0.0 }
 0x19c   : > { %v2127_v52 = vpack.c.bf16 %v1176_v50, %v1175_v48  ;;  %v2207_v53 = vpack.c.bf16 %v1208_v51, %v1207_v49 }
 0x19e   : > { %2259 = vst [vmem:[%s2431_s13 + $0x170] sm:$0xff] %v2127_v52  }
 0x19f   : > { %2275 = vst [vmem:[%s2431_s13 + $0x1f0] sm:$0xff] %v2207_v53   ;;  %v998_v56 = vpop.f32.mrf.mxu2  ;;  %v1078_v57 = vpop.f32.mrf.mxu3 }
 0x1a0   : > { %v840_v58 = vpop.f32.mrf.mxu0  ;;  %v920_v59 = vpop.f32.mrf.mxu1  ;;  %v999_v4 = vadd.f32 %v2310_v31, %v998_v56  ;;  %v1079_v5 = vadd.f32 %v2310_v31, %v1078_v57 }
 0x1a1   : > { %v841_v60 = vadd.f32 %v2310_v31, %v840_v58  ;;  %v921_v61 = vadd.f32 %v2310_v31, %v920_v59 }
 0x1a2   : > { %v1177_v10 = vmax.f32 %v999_v4, 0.0  ;;  %v1209_v11 = vmax.f32 %v1079_v5, 0.0 }
 0x1a3   : > { %v1114_v0 = vmax.f32 %v841_v60, 0.0  ;;  %v1146_v1 = vmax.f32 %v921_v61, 0.0 }
 0x1a5   : > { %v1972_v2 = vpack.c.bf16 %v1114_v0, %v1113_v62  ;;  %v2052_v3 = vpack.c.bf16 %v1146_v1, %v1145_v63 }
 0x1a7   : > { %2228 = vst [vmem:[%s2431_s13 + $0x78] sm:$0xff] %v1972_v2   ;;  %v1000_v6 = vpop.f32.mrf.mxu2  ;;  %v1080_v7 = vpop.f32.mrf.mxu3 }
 0x1a8   : > { %2244 = vst [vmem:[%s2431_s13 + $0xf8] sm:$0xff] %v2052_v3   ;;  %v1001_v8 = vadd.f32 %v2310_v31, %v1000_v6  ;;  %v1081_v9 = vadd.f32 %v2310_v31, %v1080_v7 }
 0x1aa   : > { %v1178_v12 = vmax.f32 %v1001_v8, 0.0  ;;  %v1210_v13 = vmax.f32 %v1081_v9, 0.0 }
 0x1ac   : > { %v2132_v14 = vpack.c.bf16 %v1178_v12, %v1177_v10  ;;  %v2212_v15 = vpack.c.bf16 %v1210_v13, %v1209_v11 }
 0x1ae   : > { %2260 = vst [vmem:[%s2431_s13 + $0x178] sm:$0xff] %v2132_v14  }
 0x1af   : > { %2276 = vst [vmem:[%s2431_s13 + $0x1f8] sm:$0xff] %v2212_v15  }
 0x1b0 PF: > { %s13_s12 = sadd.s32 1, %s2317_s12  }
 0x1b1   : > { %p10_p4 = scmp.ge.s32.totalorder %s13_s12, 10  }
 0x1b3   :  { %12 = sbr.rel (!%p10_p4) target bundleno = 1 (0x1), region = 62 }

// kernel: discriminator_forward.10
= control target key start
LH: loop header
LB: loop body
LE: loop exit
PB: predicated region body
PF: predicated region fallthrough
CT: control target
= control target key end

     0   :  { %s2645_s12 = smov 0   ;;  %s3433_s0 = inlined_call_operand.vmem [shape: bf16[2048,128], index: 0, kind: input, shape index: {}]   ;;  %s3434_s1 = inlined_call_operand.vmem [shape: bf16[128,128], index: 1, kind: input, shape index: {}]   ;;  %s3435_s2 = inlined_call_operand.vmem [shape: bf16[2048,128], index: 2, kind: output, shape index: {0}]   ;;  %s3436_s3 = inlined_call_operand.vmem [shape: f32[2,2,128], index: 3, kind: output, shape index: {1}]  }
   0x1 LB: > { %s2651_s13 = sadd.s32 4294967295, %s2623_s12   ;;  %p1834_p0 = scmp.ge.s32.totalorder %s2623_s12, 1  ;;  %s2623_s12 = sphi %s2645_s12, %s14_s12  }
   0x2   : > { %p141_p1 = scmp.lt.s32.totalorder %s2623_s12, 3 }
   0x4   : > { %p142_p2 = pnand %p1834_p0, %p141_p1 }
   0x6   : > { %145 = sbr.rel (%p142_p2) target bundleno = 627 (0x273), region = 28 }
   0xb   : > { %v2201_v0 = vld [vmem:[%s3434_s1 + $0x38] sm:$0xff]  ;;  %v2200_v1 = vld [vmem:[%s3434_s1 + $0x30] sm:$0xff]  ;;  %v2199_v2 = vld [vmem:[%s3434_s1 + $0x28] sm:$0xff]  ;;  %s1835_s22 = sshll.u32 %s2651_s13, 7  ;;  %p181_p4 = scmp.lt.s32.totalorder %s2651_s13, 1  ;;  %vm1740_vm0 = vcmask 1040384  }
   0xc   : > { %761 = vmatpush.bf16.msra.mxu0 %v2201_v0  ;;  %2585 = vmatpush.bf16.msra.mxu1 %v2201_v0  ;;  %v2198_v3 = vld [vmem:[%s3434_s1 + $0x20] sm:$0xff]  ;;  %v2197_v4 = vld [vmem:[%s3434_s1 + $0x18] sm:$0xff]  ;;  %p170_p3 = scmp.lt.s32.totalorder %s1835_s22, 255  ;;  %v2196_v5 = vld [vmem:[%s3434_s1 + $0x10] sm:$0xff] }
   0xd   : > { %2586 = vmatpush.bf16.msra.mxu2 %v2201_v0  ;;  %2587 = vmatpush.bf16.msra.mxu3 %v2201_v0  ;;  %v2195_v6 = vld [vmem:[%s3434_s1 + $0x8] sm:$0xff]  ;;  %v2194_v7 = vld [vmem:[%s3434_s1] sm:$0xff]  ;;  %s3516_s13 = smov (!%p181_p4, %s2651_s13), 1 }
   0xe   : > { %s3514_s22 = smov (!%p170_p3, %s1835_s22), 255  ;;  %s1839_s11 = sshll.u32 %s3516_s13, 1 }
   0xf   : > { %s1836_s29 = sshll.u32 %s3514_s22, 2  ;;  %s184_s16 = scalar_lea.vmem %s3436_s3, %s1839_s11 }
  0x10   : > { %762 = vmatpush.bf16.msra.mxu0 %v2200_v1  ;;  %2588 = vmatpush.bf16.msra.mxu1 %v2200_v1  ;;  %s2688_s7 = scalar_lea.vmem %s3433_s0, %s1836_s29  ;;  %s2715_s10 = scalar_lea.vmem %s3435_s2, %s1836_s29 }
  0x11   : > { %2589 = vmatpush.bf16.msra.mxu2 %v2200_v1  ;;  %2590 = vmatpush.bf16.msra.mxu3 %v2200_v1  ;;  %v2130_v8 = vld [vmem:[%s2688_s7] sm:$0xff]  ;;  %v2131_v9 = vld [vmem:[%s2688_s7 + $0x8] sm:$0xff]  ;;  %v2132_v11 = vld [vmem:[%s2688_s7 + $0x10] sm:$0xff] }
  0x12   : > { %v2146_v10 = vld [vmem:[%s2688_s7 + $0x80] sm:$0xff]  ;;  %v2147_v12 = vld [vmem:[%s2688_s7 + $0x88] sm:$0xff]  ;;  %v2133_v13 = vld [vmem:[%s2688_s7 + $0x18] sm:$0xff] }
  0x13   : > { %v2148_v14 = vld [vmem:[%s2688_s7 + $0x90] sm:$0xff]  ;;  %v2134_v15 = vld [vmem:[%s2688_s7 + $0x20] sm:$0xff]  ;;  %v2149_v16 = vld [vmem:[%s2688_s7 + $0x98] sm:$0xff] }
  0x14   : > { %763 = vmatpush.bf16.msra.mxu0 %v2199_v2  ;;  %2591 = vmatpush.bf16.msra.mxu1 %v2199_v2  ;;  %v2135_v17 = vld [vmem:[%s2688_s7 + $0x28] sm:$0xff]  ;;  %v2162_v18 = vld [vmem:[%s2688_s7 + $0x100] sm:$0xff]  ;;  %v2136_v20 = vld [vmem:[%s2688_s7 + $0x30] sm:$0xff] }
  0x15   : > { %2592 = vmatpush.bf16.msra.mxu2 %v2199_v2  ;;  %2593 = vmatpush.bf16.msra.mxu3 %v2199_v2  ;;  %v2150_v19 = vld [vmem:[%s2688_s7 + $0xa0] sm:$0xff]  ;;  %v2163_v21 = vld [vmem:[%s2688_s7 + $0x108] sm:$0xff]  ;;  %v2137_v23 = vld [vmem:[%s2688_s7 + $0x38] sm:$0xff] }
  0x16   : > { %v2151_v22 = vld [vmem:[%s2688_s7 + $0xa8] sm:$0xff]  ;;  %v2164_v24 = vld [vmem:[%s2688_s7 + $0x110] sm:$0xff]  ;;  %v2138_v26 = vld [vmem:[%s2688_s7 + $0x40] sm:$0xff] }
  0x17   : > { %v2152_v25 = vld [vmem:[%s2688_s7 + $0xb0] sm:$0xff]  ;;  %v2165_v28 = vld [vmem:[%s2688_s7 + $0x118] sm:$0xff]  ;;  %v2139_v36 = vld [vmem:[%s2688_s7 + $0x48] sm:$0xff] }
  0x18   : > { %764 = vmatpush.bf16.msra.mxu0 %v2198_v3  ;;  %2594 = vmatpush.bf16.msra.mxu1 %v2198_v3  ;;  %v2153_v34 = vld [vmem:[%s2688_s7 + $0xb8] sm:$0xff]  ;;  %v2166_v41 = vld [vmem:[%s2688_s7 + $0x120] sm:$0xff]  ;;  %v2140_v50 = vld [vmem:[%s2688_s7 + $0x50] sm:$0xff] }
  0x19   : > { %2595 = vmatpush.bf16.msra.mxu2 %v2198_v3  ;;  %2596 = vmatpush.bf16.msra.mxu3 %v2198_v3  ;;  %v2178_v42 = vld [vmem:[%s2688_s7 + $0x180] sm:$0xff]  ;;  %v2167_v57 = vld [vmem:[%s2688_s7 + $0x128] sm:$0xff]  ;;  %v2141_v2 = vld [vmem:[%s2688_s7 + $0x58] sm:$0xff] }
  0x1a   : > { %v2154_v48 = vld [vmem:[%s2688_s7 + $0xc0] sm:$0xff]  ;;  %v2179_v58 = vld [vmem:[%s2688_s7 + $0x188] sm:$0xff] }
  0x1b   : > { %v2155_v0 = vld [vmem:[%s2688_s7 + $0xc8] sm:$0xff] }
  0x1c   : > { %765 = vmatpush.bf16.msra.mxu0 %v2197_v4  ;;  %2597 = vmatpush.bf16.msra.mxu1 %v2197_v4 }
  0x1d   : > { %2598 = vmatpush.bf16.msra.mxu2 %v2197_v4  ;;  %2599 = vmatpush.bf16.msra.mxu3 %v2197_v4 }
  0x20   : > { %766 = vmatpush.bf16.msra.mxu0 %v2196_v5  ;;  %2600 = vmatpush.bf16.msra.mxu1 %v2196_v5 }
  0x21   : > { %2601 = vmatpush.bf16.msra.mxu2 %v2196_v5  ;;  %2602 = vmatpush.bf16.msra.mxu3 %v2196_v5 }
  0x24   : > { %767 = vmatpush.bf16.msra.mxu0 %v2195_v6  ;;  %2603 = vmatpush.bf16.msra.mxu1 %v2195_v6 }
  0x25   : > { %2604 = vmatpush.bf16.msra.mxu2 %v2195_v6  ;;  %2605 = vmatpush.bf16.msra.mxu3 %v2195_v6 }
  0x28   : > { %768 = vmatpush.bf16.msra.mxu0 %v2194_v7  ;;  %2606 = vmatpush.bf16.msra.mxu1 %v2194_v7 }
  0x29   : > { %2607 = vmatpush.bf16.msra.mxu2 %v2194_v7  ;;  %2608 = vmatpush.bf16.msra.mxu3 %v2194_v7 }
  0x2b   : > { %769 = vmatmul.bf16.vlgmr.msra.gmra.mxu0 %v2130_v8  ;;  %849 = vmatmul.bf16.vlgmr.msra.gmra.mxu1 %v2146_v10  ;;  %v2180_v10 = vld [vmem:[%s2688_s7 + $0x190] sm:$0xff] }
  0x2c   : > { %929 = vmatmul.bf16.vlgmr.msra.gmra.mxu2 %v2162_v18  ;;  %1009 = vmatmul.bf16.vlgmr.msra.gmra.mxu3 %v2178_v42  ;;  %v2142_v18 = vld [vmem:[%s2688_s7 + $0x60] sm:$0xff] }
  0x2d   : > { %v2182_v42 = vld [vmem:[%s2688_s7 + $0x1a0] sm:$0xff] }
  0x3b   : > { %774 = vmatmul.bf16.gmra.mxu0 %v2131_v9  ;;  %854 = vmatmul.bf16.gmra.mxu1 %v2147_v12  ;;  %v2168_v9 = vld [vmem:[%s2688_s7 + $0x130] sm:$0xff] }
  0x3c   : > { %934 = vmatmul.bf16.gmra.mxu2 %v2163_v21  ;;  %1014 = vmatmul.bf16.gmra.mxu3 %v2179_v58 }
  0x4b   : > { %779 = vmatmul.bf16.gmra.mxu0 %v2132_v11  ;;  %859 = vmatmul.bf16.gmra.mxu1 %v2148_v14 }
  0x4c   : > { %939 = vmatmul.bf16.gmra.mxu2 %v2164_v24  ;;  %1019 = vmatmul.bf16.gmra.mxu3 %v2180_v10  ;;  %v2145_v10 = vld [vmem:[%s2688_s7 + $0x78] sm:$0xff] }
  0x5b   : > { %784 = vmatmul.bf16.gmra.mxu0 %v2133_v13  ;;  %864 = vmatmul.bf16.gmra.mxu1 %v2149_v16  ;;  %v2156_v16 = vld [vmem:[%s2688_s7 + $0xd0] sm:$0xff] }
  0x5c   : > { %944 = vmatmul.bf16.gmra.mxu2 %v2165_v28 }
  0x6b   : > { %789 = vmatmul.bf16.gmra.mxu0 %v2134_v15  ;;  %869 = vmatmul.bf16.gmra.mxu1 %v2150_v19 }
  0x6c   : > { %949 = vmatmul.bf16.gmra.mxu2 %v2166_v41  ;;  %v2170_v41 = vld [vmem:[%s2688_s7 + $0x140] sm:$0xff] }
  0x7b   : > { %794 = vmatmul.bf16.gmra.mxu0 %v2135_v17  ;;  %874 = vmatmul.bf16.gmra.mxu1 %v2151_v22 }
  0x7c   : > { %954 = vmatmul.bf16.gmra.mxu2 %v2167_v57 }
  0x8b   : > { %799 = vmatmul.bf16.gmra.mxu0 %v2136_v20  ;;  %879 = vmatmul.bf16.gmra.mxu1 %v2152_v25  ;;  %v2169_v25 = vld [vmem:[%s2688_s7 + $0x138] sm:$0xff] }
  0x8c   : > { %959 = vmatmul.bf16.gmra.mxu2 %v2168_v9 }
  0x9b   : > { %804 = vmatmul.bf16.gmra.mxu0 %v2137_v23  ;;  %884 = vmatmul.bf16.gmra.mxu1 %v2153_v34  ;;  %v2143_v34 = vld [vmem:[%s2688_s7 + $0x68] sm:$0xff] }
  0x9c   : > { %964 = vmatmul.bf16.gmra.mxu2 %v2169_v25 }
  0xa8   : > { %v770_v27 = vpop.f32.mrf.mxu0  ;;  %v2722_v44 = vpop.f32.mrf.mxu1 }
  0xa9   : > { %v1479_v30 = vmul.f32 %v770_v27, %v770_v27 }
  0xab   : > { %809 = vmatmul.bf16.gmra.mxu0 %v2138_v26  ;;  %889 = vmatmul.bf16.gmra.mxu1 %v2154_v48  ;;  %v2181_v26 = vld [vmem:[%s2688_s7 + $0x198] sm:$0xff] }
  0xac   : > { %1024 = vmatmul.bf16.gmra.mxu3 %v2181_v26  ;;  %969 = vmatmul.bf16.gmra.mxu2 %v2170_v41  ;;  %v2173_v41 = vld [vmem:[%s2688_s7 + $0x158] sm:$0xff] }
  0xb0   : > { %v772_v29 = vpop.f32.mrf.mxu0  ;;  %v2727_v52 = vpop.f32.mrf.mxu1 }
  0xb1   : > { %v2205_v31 = vpack.c.bf16 %v772_v29, %v770_v27  ;;  %v1480_v32 = vmul.f32 %v772_v29, %v772_v29  ;;  %v1346_v33 = vadd.f32 %v772_v29, %v770_v27  ;;  %v2285_v55 = vpack.c.bf16 %v2727_v52, %v2722_v44 }
  0xb3   : > { %2206 = vst [vmem:[%s2715_s10] sm:$0xff] %v2205_v31   ;;  %v1607_v35 = vadd.f32 %v1480_v32, %v1479_v30  ;;  %v2157_v32 = vld [vmem:[%s2688_s7 + $0xd8] sm:$0xff] }
  0xb4   : > { %2537 = vst [vmem:[%s2715_s10 + $0x80] sm:$0xff] %v2285_v55  }
  0xb8   : > { %v775_v37 = vpop.f32.mrf.mxu0  ;;  %v2734_v60 = vpop.f32.mrf.mxu1 }
  0xb9   : > { %v1347_v38 = vadd.f32 %v1346_v33, %v775_v37  ;;  %v1481_v39 = vmul.f32 %v775_v37, %v775_v37 }
  0xbb   : > { %v1608_v40 = vadd.f32 %v1607_v35, %v1481_v39  ;;  %814 = vmatmul.bf16.gmra.mxu0 %v2139_v36  ;;  %894 = vmatmul.bf16.gmra.mxu1 %v2155_v0  ;;  %v2183_v0 = vld [vmem:[%s2688_s7 + $0x1a8] sm:$0xff] }
  0xbc   : > { %1029 = vmatmul.bf16.gmra.mxu3 %v2182_v42  ;;  %v2185_v42 = vld [vmem:[%s2688_s7 + $0x1b8] sm:$0xff] }
  0xc0   : > { %v777_v43 = vpop.f32.mrf.mxu0  ;;  %v2739_v4 = vpop.f32.mrf.mxu1 }
  0xc1   : > { %v2210_v45 = vpack.c.bf16 %v777_v43, %v775_v37  ;;  %v1482_v46 = vmul.f32 %v777_v43, %v777_v43  ;;  %v1348_v47 = vadd.f32 %v1347_v38, %v777_v43  ;;  %v2290_v7 = vpack.c.bf16 %v2739_v4, %v2734_v60 }
  0xc3   : > { %2522 = vst [vmem:[%s2715_s10 + $0x8] sm:$0xff] %v2210_v45   ;;  %v1609_v49 = vadd.f32 %v1608_v40, %v1482_v46 }
  0xc4   : > { %2538 = vst [vmem:[%s2715_s10 + $0x88] sm:$0xff] %v2290_v7  }
  0xc8   : > { %v780_v51 = vpop.f32.mrf.mxu0  ;;  %v2746_v12 = vpop.f32.mrf.mxu1 }
  0xc9   : > { %v1349_v53 = vadd.f32 %v1348_v47, %v780_v51  ;;  %v1483_v54 = vmul.f32 %v780_v51, %v780_v51 }
  0xcb   : > { %v1610_v56 = vadd.f32 %v1609_v49, %v1483_v54  ;;  %819 = vmatmul.bf16.gmra.mxu0 %v2140_v50  ;;  %899 = vmatmul.bf16.gmra.mxu1 %v2156_v16  ;;  %v2772_v49 = vpop.f32.mrf.mxu2  ;;  %v2158_v50 = vld [vmem:[%s2688_s7 + $0xe0] sm:$0xff] }
  0xcc   : > { %1034 = vmatmul.bf16.gmra.mxu3 %v2183_v0 }
  0xd0   : > { %v782_v59 = vpop.f32.mrf.mxu0  ;;  %v2751_v20 = vpop.f32.mrf.mxu1 }
  0xd1   : > { %v2215_v61 = vpack.c.bf16 %v782_v59, %v780_v51  ;;  %v1484_v62 = vmul.f32 %v782_v59, %v782_v59  ;;  %v1350_v63 = vadd.f32 %v1349_v53, %v782_v59  ;;  %v2295_v23 = vpack.c.bf16 %v2751_v20, %v2746_v12  ;;  %v2144_v53 = vld [vmem:[%s2688_s7 + $0x70] sm:$0xff] }
  0xd3   : > { %2523 = vst [vmem:[%s2715_s10 + $0x10] sm:$0xff] %v2215_v61   ;;  %v1611_v1 = vadd.f32 %v1610_v56, %v1484_v62  ;;  %v2781_v59 = vpop.f32.mrf.mxu2 }
  0xd4   : > { %2539 = vst [vmem:[%s2715_s10 + $0x90] sm:$0xff] %v2295_v23   ;;  %v2365_v61 = vpack.c.bf16 %v2781_v59, %v2772_v49 }
  0xd6   : > { %2553 = vst [vmem:[%s2715_s10 + $0x100] sm:$0xff] %v2365_v61  }
  0xd8   : > { %v785_v3 = vpop.f32.mrf.mxu0  ;;  %v2758_v28 = vpop.f32.mrf.mxu1 }
  0xd9   : > { %v1351_v5 = vadd.f32 %v1350_v63, %v785_v3  ;;  %v1485_v6 = vmul.f32 %v785_v3, %v785_v3  ;;  %v2171_v63 = vld [vmem:[%s2688_s7 + $0x148] sm:$0xff] }
  0xda   : > { %974 = vmatmul.bf16.gmra.mxu2 %v2171_v63 }
  0xdb   : > { %v1612_v8 = vadd.f32 %v1611_v1, %v1485_v6  ;;  %824 = vmatmul.bf16.gmra.mxu0 %v2141_v2  ;;  %904 = vmatmul.bf16.gmra.mxu1 %v2157_v32  ;;  %v2791_v7 = vpop.f32.mrf.mxu2 }
  0xe0   : > { %v787_v11 = vpop.f32.mrf.mxu0  ;;  %v2763_v36 = vpop.f32.mrf.mxu1 }
  0xe1   : > { %v2220_v13 = vpack.c.bf16 %v787_v11, %v785_v3  ;;  %v1486_v14 = vmul.f32 %v787_v11, %v787_v11  ;;  %v1352_v15 = vadd.f32 %v1351_v5, %v787_v11  ;;  %v2300_v39 = vpack.c.bf16 %v2763_v36, %v2758_v28 }
  0xe3   : > { %2524 = vst [vmem:[%s2715_s10 + $0x18] sm:$0xff] %v2220_v13   ;;  %v1613_v17 = vadd.f32 %v1612_v8, %v1486_v14  ;;  %v2159_v8 = vld [vmem:[%s2688_s7 + $0xe8] sm:$0xff] }
  0xe4   : > { %2540 = vst [vmem:[%s2715_s10 + $0x98] sm:$0xff] %v2300_v39  }
  0xe8   : > { %v790_v19 = vpop.f32.mrf.mxu0  ;;  %v2770_v45 = vpop.f32.mrf.mxu1 }
  0xe9   : > { %v1353_v21 = vadd.f32 %v1352_v15, %v790_v19  ;;  %v1487_v22 = vmul.f32 %v790_v19, %v790_v19 }
  0xeb   : > { %v1614_v24 = vadd.f32 %v1613_v17, %v1487_v22  ;;  %829 = vmatmul.bf16.gmra.mxu0 %v2142_v18  ;;  %909 = vmatmul.bf16.gmra.mxu1 %v2158_v50  ;;  %v2800_v17 = vpop.f32.mrf.mxu2  ;;  %v2184_v22 = vld [vmem:[%s2688_s7 + $0x1b0] sm:$0xff] }
  0xec   : > { %v2370_v18 = vpack.c.bf16 %v2800_v17, %v2791_v7  ;;  %1039 = vmatmul.bf16.gmra.mxu3 %v2184_v22 }
  0xee   : > { %2554 = vst [vmem:[%s2715_s10 + $0x108] sm:$0xff] %v2370_v18  }
  0xf0   : > { %v792_v27 = vpop.f32.mrf.mxu0  ;;  %v2777_v55 = vpop.f32.mrf.mxu1 }
  0xf1   : > { %v2225_v29 = vpack.c.bf16 %v792_v27, %v790_v19  ;;  %v1354_v30 = vadd.f32 %v1353_v21, %v792_v27  ;;  %v1488_v31 = vmul.f32 %v792_v27, %v792_v27  ;;  %v2305_v58 = vpack.c.bf16 %v2777_v55, %v2770_v45  ;;  %v2172_v21 = vld [vmem:[%s2688_s7 + $0x150] sm:$0xff] }
  0xf2   : > { %979 = vmatmul.bf16.gmra.mxu2 %v2172_v21 }
  0xf3   : > { %2525 = vst [vmem:[%s2715_s10 + $0x20] sm:$0xff] %v2225_v29   ;;  %v1615_v33 = vadd.f32 %v1614_v24, %v1488_v31  ;;  %v2810_v29 = vpop.f32.mrf.mxu2 }
  0xf4   : > { %2541 = vst [vmem:[%s2715_s10 + $0xa0] sm:$0xff] %v2305_v58  }
  0xf8   : > { %v795_v35 = vpop.f32.mrf.mxu0  ;;  %v2789_v2 = vpop.f32.mrf.mxu1 }
  0xf9   : > { %v1355_v37 = vadd.f32 %v1354_v30, %v795_v35  ;;  %v1489_v38 = vmul.f32 %v795_v35, %v795_v35  ;;  %v2160_v30 = vld [vmem:[%s2688_s7 + $0xf0] sm:$0xff] }
  0xfb   : > { %v1616_v40 = vadd.f32 %v1615_v33, %v1489_v38  ;;  %834 = vmatmul.bf16.gmra.mxu0 %v2143_v34  ;;  %914 = vmatmul.bf16.gmra.mxu1 %v2159_v8  ;;  %v2818_v38 = vpop.f32.mrf.mxu2 }
  0xfc   : > { %v2375_v39 = vpack.c.bf16 %v2818_v38, %v2810_v29  ;;  %1044 = vmatmul.bf16.gmra.mxu3 %v2185_v42 }
  0xfe   : > { %2555 = vst [vmem:[%s2715_s10 + $0x110] sm:$0xff] %v2375_v39  }
 0x100   : > { %v797_v43 = vpop.f32.mrf.mxu0  ;;  %v2796_v13 = vpop.f32.mrf.mxu1 }
 0x101   : > { %v2230_v46 = vpack.c.bf16 %v797_v43, %v795_v35  ;;  %v1356_v47 = vadd.f32 %v1355_v37, %v797_v43  ;;  %v1490_v48 = vmul.f32 %v797_v43, %v797_v43  ;;  %v2310_v16 = vpack.c.bf16 %v2796_v13, %v2789_v2 }
 0x102   : > { %984 = vmatmul.bf16.gmra.mxu2 %v2173_v41 }
 0x103   : > { %2526 = vst [vmem:[%s2715_s10 + $0x28] sm:$0xff] %v2230_v46   ;;  %v1617_v51 = vadd.f32 %v1616_v40, %v1490_v48 }
 0x104   : > { %2542 = vst [vmem:[%s2715_s10 + $0xa8] sm:$0xff] %v2310_v16  }
 0x108   : > { %v800_v54 = vpop.f32.mrf.mxu0  ;;  %v2808_v24 = vpop.f32.mrf.mxu1 }
 0x109   : > { %v1357_v56 = vadd.f32 %v1356_v47, %v800_v54  ;;  %v1491_v57 = vmul.f32 %v800_v54, %v800_v54 }
 0x10b   : > { %v1618_v62 = vadd.f32 %v1617_v51, %v1491_v57  ;;  %839 = vmatmul.bf16.gmra.mxu0 %v2144_v53  ;;  %919 = vmatmul.bf16.gmra.mxu1 %v2160_v30  ;;  %v2828_v51 = vpop.f32.mrf.mxu2  ;;  %v2161_v53 = vld [vmem:[%s2688_s7 + $0xf8] sm:$0xff] }
 0x110   : > { %v802_v1 = vpop.f32.mrf.mxu0  ;;  %v2814_v33 = vpop.f32.mrf.mxu1 }
 0x111   : > { %v2235_v3 = vpack.c.bf16 %v802_v1, %v800_v54  ;;  %v1358_v5 = vadd.f32 %v1357_v56, %v802_v1  ;;  %v1492_v6 = vmul.f32 %v802_v1, %v802_v1  ;;  %v2315_v37 = vpack.c.bf16 %v2814_v33, %v2808_v24 }
 0x113   : > { %2527 = vst [vmem:[%s2715_s10 + $0x30] sm:$0xff] %v2235_v3   ;;  %v1619_v9 = vadd.f32 %v1618_v62, %v1492_v6  ;;  %v2836_v63 = vpop.f32.mrf.mxu2  ;;  %v2174_v3 = vld [vmem:[%s2688_s7 + $0x160] sm:$0xff] }
 0x114   : > { %2543 = vst [vmem:[%s2715_s10 + $0xb0] sm:$0xff] %v2315_v37   ;;  %v2380_v0 = vpack.c.bf16 %v2836_v63, %v2828_v51  ;;  %989 = vmatmul.bf16.gmra.mxu2 %v2174_v3 }
 0x116   : > { %2556 = vst [vmem:[%s2715_s10 + $0x118] sm:$0xff] %v2380_v0  }
 0x118   : > { %v805_v11 = vpop.f32.mrf.mxu0  ;;  %v2826_v46 = vpop.f32.mrf.mxu1 }
 0x119   : > { %v1359_v14 = vadd.f32 %v1358_v5, %v805_v11  ;;  %v1493_v15 = vmul.f32 %v805_v11, %v805_v11  ;;  %v2186_v5 = vld [vmem:[%s2688_s7 + $0x1c0] sm:$0xff] }
 0x11a   : > { %1049 = vmatmul.bf16.gmra.mxu3 %v2186_v5 }
 0x11b   : > { %v1620_v19 = vadd.f32 %v1619_v9, %v1493_v15  ;;  %844 = vmatmul.bf16.gmra.mxu0 %v2145_v10  ;;  %924 = vmatmul.bf16.gmra.mxu1 %v2161_v53  ;;  %v2848_v15 = vpop.f32.mrf.mxu3 }
 0x11c   : > { %3475 = vst [vmem:[#allocation2_spill] sm:$0xff] %v2848_v15 }
 0x120   : > { %v807_v23 = vpop.f32.mrf.mxu0  ;;  %v2832_v57 = vpop.f32.mrf.mxu1 }
 0x121   : > { %v2240_v25 = vpack.c.bf16 %v807_v23, %v805_v11  ;;  %v1360_v26 = vadd.f32 %v1359_v14, %v807_v23  ;;  %v1494_v27 = vmul.f32 %v807_v23, %v807_v23  ;;  %v2320_v62 = vpack.c.bf16 %v2832_v57, %v2826_v46  ;;  %v2846_v14 = vpop.f32.mrf.mxu2 }
 0x123   : > { %2528 = vst [vmem:[%s2715_s10 + $0x38] sm:$0xff] %v2240_v25   ;;  %v1621_v31 = vadd.f32 %v1620_v19, %v1494_v27 }
 0x124   : > { %2544 = vst [vmem:[%s2715_s10 + $0xb8] sm:$0xff] %v2320_v62  }
 0x128   : > { %v810_v32 = vpop.f32.mrf.mxu0  ;;  %v2844_v8 = vpop.f32.mrf.mxu1 }
 0x129   : > { %v1361_v34 = vadd.f32 %v1360_v26, %v810_v32  ;;  %v1495_v35 = vmul.f32 %v810_v32, %v810_v32  ;;  %v2857_v25 = vpop.f32.mrf.mxu2  ;;  %v2859_v26 = vpop.f32.mrf.mxu3 }
 0x12a   : > { %3476 = vst [vmem:[#allocation3_spill] sm:$0xff] %v2859_v26  ;;  %v2385_v27 = vpack.c.bf16 %v2857_v25, %v2846_v14  ;;  %v2445_v30 = vpack.c.bf16 %v2859_v26, %v2848_v15 }
 0x12b   : > { %v1622_v40 = vadd.f32 %v1621_v31, %v1495_v35 }
 0x12c   : > { %2557 = vst [vmem:[%s2715_s10 + $0x120] sm:$0xff] %v2385_v27  }
 0x12d   : > { %2569 = vst [vmem:[%s2715_s10 + $0x180] sm:$0xff] %v2445_v30  }
 0x130   : > { %v812_v43 = vpop.f32.mrf.mxu0  ;;  %v2851_v19 = vpop.f32.mrf.mxu1 }
 0x131   : > { %v2245_v47 = vpack.c.bf16 %v812_v43, %v810_v32  ;;  %v1362_v48 = vadd.f32 %v1361_v34, %v812_v43  ;;  %v1496_v50 = vmul.f32 %v812_v43, %v812_v43  ;;  %v2325_v23 = vpack.c.bf16 %v2851_v19, %v2844_v8  ;;  %v2175_v32 = vld [vmem:[%s2688_s7 + $0x168] sm:$0xff]  ;;  %v2879_v41 = vpop.f32.mrf.mxu3 }
 0x132   : > { %v2187_v34 = vld [vmem:[%s2688_s7 + $0x1c8] sm:$0xff]  ;;  %994 = vmatmul.bf16.gmra.mxu2 %v2175_v32  ;;  %3478 = vst [vmem:[#allocation5_spill] sm:$0xff] %v2879_v41 }
 0x133   : > { %2529 = vst [vmem:[%s2715_s10 + $0x40] sm:$0xff] %v2245_v47   ;;  %v1623_v54 = vadd.f32 %v1622_v40, %v1496_v50  ;;  %1054 = vmatmul.bf16.gmra.mxu3 %v2187_v34  ;;  %v2877_v40 = vpop.f32.mrf.mxu2 }
 0x134   : > { %2545 = vst [vmem:[%s2715_s10 + $0xc0] sm:$0xff] %v2325_v23   ;;  %v2189_v23 = vld [vmem:[%s2688_s7 + $0x1d8] sm:$0xff] }
 0x135   : > { %3477 = vst [vmem:[#allocation4_spill] sm:$0xff] %v2877_v40 }
 0x138   : > { %v815_v56 = vpop.f32.mrf.mxu0  ;;  %v2874_v37 = vpop.f32.mrf.mxu1 }
 0x139   : > { %v1363_v58 = vadd.f32 %v1362_v48, %v815_v56  ;;  %v1497_v61 = vmul.f32 %v815_v56, %v815_v56  ;;  %v2890_v50 = vpop.f32.mrf.mxu3 }
 0x13a   : > { %3480 = vst [vmem:[#allocation7_spill] sm:$0xff] %v2890_v50 }
 0x13b   : > { %v1624_v1 = vadd.f32 %v1623_v54, %v1497_v61  ;;  %v2888_v48 = vpop.f32.mrf.mxu2  ;;  %v2450_v54 = vpack.c.bf16 %v2890_v50, %v2879_v41 }
 0x13c   : > { %3479 = vst [vmem:[#allocation6_spill] sm:$0xff] %v2888_v48  ;;  %v2390_v53 = vpack.c.bf16 %v2888_v48, %v2877_v40 }
 0x13d   : > { %2570 = vst [vmem:[%s2715_s10 + $0x188] sm:$0xff] %v2450_v54  }
 0x13e   : > { %2558 = vst [vmem:[%s2715_s10 + $0x128] sm:$0xff] %v2390_v53  }
 0x140   : > { %v817_v6 = vpop.f32.mrf.mxu0  ;;  %v2884_v43 = vpop.f32.mrf.mxu1 }
 0x141   : > { %v2250_v9 = vpack.c.bf16 %v817_v6, %v815_v56  ;;  %v1364_v10 = vadd.f32 %v1363_v58, %v817_v6  ;;  %v1498_v11 = vmul.f32 %v817_v6, %v817_v6  ;;  %v2330_v47 = vpack.c.bf16 %v2884_v43, %v2874_v37  ;;  %v2176_v56 = vld [vmem:[%s2688_s7 + $0x170] sm:$0xff]  ;;  %v2909_v3 = vpop.f32.mrf.mxu3 }
 0x142   : > { %v2188_v58 = vld [vmem:[%s2688_s7 + $0x1d0] sm:$0xff]  ;;  %999 = vmatmul.bf16.gmra.mxu2 %v2176_v56  ;;  %3482 = vst [vmem:[#allocation9_spill] sm:$0xff] %v2909_v3 }
 0x143   : > { %2530 = vst [vmem:[%s2715_s10 + $0x48] sm:$0xff] %v2250_v9   ;;  %v1625_v16 = vadd.f32 %v1624_v1, %v1498_v11  ;;  %1059 = vmatmul.bf16.gmra.mxu3 %v2188_v58  ;;  %v2907_v1 = vpop.f32.mrf.mxu2 }
 0x144   : > { %2546 = vst [vmem:[%s2715_s10 + $0xc8] sm:$0xff] %v2330_v47  }
 0x145   : > { %3481 = vst [vmem:[#allocation8_spill] sm:$0xff] %v2907_v1 }
 0x148   : > { %v820_v18 = vpop.f32.mrf.mxu0  ;;  %v2903_v62 = vpop.f32.mrf.mxu1 }
 0x149   : > { %v2853_v21 = vadd.f32 %v1364_v10, %v820_v18  ;;  %v1499_v22 = vmul.f32 %v820_v18, %v820_v18  ;;  %v2920_v11 = vpop.f32.mrf.mxu3 }
 0x14a   : > { %3484 = vst [vmem:[#allocation11_spill] sm:$0xff] %v2920_v11 }
 0x14b   : > { %v2865_v31 = vadd.f32 %v1625_v16, %v1499_v22  ;;  %v2918_v10 = vpop.f32.mrf.mxu2  ;;  %v2177_v22 = vld [vmem:[%s2688_s7 + $0x178] sm:$0xff] }
 0x14c   : > { %3483 = vst [vmem:[#allocation10_spill] sm:$0xff] %v2918_v10  ;;  %v2395_v16 = vpack.c.bf16 %v2918_v10, %v2907_v1 }
 0x14e   : > { %2559 = vst [vmem:[%s2715_s10 + $0x130] sm:$0xff] %v2395_v16   ;;  %v2190_v16 = vld [vmem:[%s2688_s7 + $0x1e0] sm:$0xff] }
 0x150   : > { %v2872_v35 = vpop.f32.mrf.mxu0  ;;  %v2914_v6 = vpop.f32.mrf.mxu1 }
 0x151   : > { %v2255_v39 = vpack.c.bf16 %v2872_v35, %v820_v18  ;;  %v2335_v9 = vpack.c.bf16 %v2914_v6, %v2903_v62  ;;  %v2455_v18 = vpack.c.bf16 %v2920_v11, %v2909_v3  ;;  %v1366_v41 = vadd.f32 %v2853_v21, %v2872_v35 }
 0x152   : > { %1004 = vmatmul.bf16.gmra.mxu2 %v2177_v22 }
 0x153   : > { %2531 = vst [vmem:[%s2715_s10 + $0x50] sm:$0xff] %v2255_v39   ;;  %1064 = vmatmul.bf16.gmra.mxu3 %v2189_v23  ;;  %v2934_v34 = vpop.f32.mrf.mxu2  ;;  %v2936_v39 = vpop.f32.mrf.mxu3 }
 0x154   : > { %2547 = vst [vmem:[%s2715_s10 + $0xd0] sm:$0xff] %v2335_v9  }
 0x155   : > { %2571 = vst [vmem:[%s2715_s10 + $0x190] sm:$0xff] %v2455_v18  }
 0x156   : > { %3485 = vst [vmem:[#allocation12_spill] sm:$0xff] %v2934_v34 }
 0x157   : > { %3486 = vst [vmem:[#allocation13_spill] sm:$0xff] %v2936_v39 }
 0x158   : > { %v2882_v42 = vpop.f32.mrf.mxu0  ;;  %v2931_v30 = vpop.f32.mrf.mxu1 }
 0x159   : > { %v1501_v26 = vmul.f32 %v2882_v42, %v2882_v42 }
 0x15b   : > { %v2943_v56 = vpop.f32.mrf.mxu2  ;;  %v2945_v58 = vpop.f32.mrf.mxu3 }
 0x15c   : > { %3487 = vst [vmem:[#allocation14_spill] sm:$0xff] %v2943_v56  ;;  %v2460_v9 = vpack.c.bf16 %v2945_v58, %v2936_v39  ;;  %v1500_v39 = vmul.f32 %v2872_v35, %v2872_v35 }
 0x15d   : > { %3488 = vst [vmem:[#allocation15_spill] sm:$0xff] %v2945_v58 }
 0x15e   : > { %2572 = vst [vmem:[%s2715_s10 + $0x198] sm:$0xff] %v2460_v9   ;;  %v1627_v15 = vadd.f32 %v2865_v31, %v1500_v39 }
 0x160   : > { %v2901_v61 = vpop.f32.mrf.mxu0  ;;  %v2939_v53 = vpop.f32.mrf.mxu1 }
 0x161   : > { %v2260_v0 = vpack.c.bf16 %v2901_v61, %v2882_v42  ;;  %v2340_v54 = vpack.c.bf16 %v2939_v53, %v2931_v30 }
 0x163   : > { %2532 = vst [vmem:[%s2715_s10 + $0x58] sm:$0xff] %v2260_v0   ;;  %v2400_v0 = vpack.c.bf16 %v2943_v56, %v2934_v34  ;;  %1069 = vmatmul.bf16.gmra.mxu3 %v2190_v16  ;;  %v2959_v11 = vpop.f32.mrf.mxu3 }
 0x164   : > { %2548 = vst [vmem:[%s2715_s10 + $0xd8] sm:$0xff] %v2340_v54  }
 0x165   : > { %2560 = vst [vmem:[%s2715_s10 + $0x138] sm:$0xff] %v2400_v0  }
 0x166   : > { %3490 = vst [vmem:[#allocation17_spill] sm:$0xff] %v2959_v11 }
 0x168   : > { %v2912_v5 = vpop.f32.mrf.mxu0  ;;  %v2955_v22 = vpop.f32.mrf.mxu1 }
 0x169   : > { %v1503_v35 = vmul.f32 %v2912_v5, %v2912_v5 }
 0x16b   : > { %v2966_v0 = vpop.f32.mrf.mxu3 }
 0x16c   : > { %3492 = vst [vmem:[#allocation19_spill] sm:$0xff] %v2966_v0  ;;  %v2465_v50 = vpack.c.bf16 %v2966_v0, %v2959_v11 }
 0x16e   : > { %2573 = vst [vmem:[%s2715_s10 + $0x1a0] sm:$0xff] %v2465_v50  }
 0x170   : > { %v832_v27 = vpop.f32.mrf.mxu0  ;;  %v2962_v58 = vpop.f32.mrf.mxu1 }
 0x171   : > { %v2265_v32 = vpack.c.bf16 %v832_v27, %v2912_v5  ;;  %v2345_v9 = vpack.c.bf16 %v2962_v58, %v2955_v22 }
 0x173   : > { %2533 = vst [vmem:[%s2715_s10 + $0x60] sm:$0xff] %v2265_v32   ;;  %v2957_v32 = vpop.f32.mrf.mxu2  ;;  %v2995_v50 = vpop.f32.mrf.mxu3 }
 0x174   : > { %3489 = vst [vmem:[#allocation16_spill] sm:$0xff] %v2957_v32 }
 0x175   : > { %2549 = vst [vmem:[%s2715_s10 + $0xe0] sm:$0xff] %v2345_v9   ;;  %v1628_v9 = vadd.f32 %v1627_v15, %v1501_v26 }
 0x178   : > { %v835_v47 = vpop.f32.mrf.mxu0  ;;  %v2988_v11 = vpop.f32.mrf.mxu1 }
 0x179   : > { %v1505_v34 = vmul.f32 %v835_v47, %v835_v47 }
 0x17b   : > { %v2964_v54 = vpop.f32.mrf.mxu2 }
 0x17c   : > { %3491 = vst [vmem:[#allocation18_spill] sm:$0xff] %v2964_v54  ;;  %v2405_v16 = vpack.c.bf16 %v2964_v54, %v2957_v32  ;;  %v1367_v54 = vadd.f32 %v1366_v41, %v2882_v42  ;;  %v1502_v32 = vmul.f32 %v2901_v61, %v2901_v61  ;;  %v1504_v42 = vmul.f32 %v832_v27, %v832_v27 }
 0x17e   : > { %2561 = vst [vmem:[%s2715_s10 + $0x140] sm:$0xff] %v2405_v16   ;;  %v1368_v21 = vadd.f32 %v1367_v54, %v2901_v61  ;;  %v1629_v31 = vadd.f32 %v1628_v9, %v1502_v32 }
 0x180   : > { %v837_v18 = vpop.f32.mrf.mxu0  ;;  %v1369_v41 = vadd.f32 %v1368_v21, %v2912_v5  ;;  %v1630_v39 = vadd.f32 %v1629_v31, %v1503_v35  ;;  %v2999_v54 = vpop.f32.mrf.mxu1 }
 0x181   : > { %v2270_v23 = vpack.c.bf16 %v837_v18, %v835_v47  ;;  %v1506_v26 = vmul.f32 %v837_v18, %v837_v18  ;;  %v3003_v5 = vpop.f32.mrf.mxu3 }
 0x182   : > { %v1370_v56 = vadd.f32 %v1369_v41, %v832_v27  ;;  %v1631_v10 = vadd.f32 %v1630_v39, %v1504_v42  ;;  %3493 = vst [vmem:[#allocation20_spill] sm:$0xff] %v3003_v5  ;;  %v2350_v27 = vpack.c.bf16 %v2999_v54, %v2988_v11 }
 0x183   : > { %2534 = vst [vmem:[%s2715_s10 + $0x68] sm:$0xff] %v2270_v23   ;;  %v2191_v23 = vld [vmem:[%s2688_s7 + $0x1e8] sm:$0xff] }
 0x184   : > { %1074 = vmatmul.bf16.gmra.mxu3 %v2191_v23  ;;  %v2993_v23 = vpop.f32.mrf.mxu2  ;;  %v1371_v15 = vadd.f32 %v1370_v56, %v835_v47  ;;  %v1632_v1 = vadd.f32 %v1631_v10, %v1505_v34  ;;  %v2470_v10 = vpack.c.bf16 %v3003_v5, %v2995_v50  ;;  %v2192_v34 = vld [vmem:[%s2688_s7 + $0x1f0] sm:$0xff]  ;;  %2550 = vst [vmem:[%s2715_s10 + $0xe8] sm:$0xff] %v2350_v27  }
 0x186   : > { %v1372_v48 = vadd.f32 %v1371_v15, %v837_v18  ;;  %v1633_v56 = vadd.f32 %v1632_v1, %v1506_v26  ;;  %2574 = vst [vmem:[%s2715_s10 + $0x1a8] sm:$0xff] %v2470_v10  }
 0x188   : > { %v840_v3 = vpop.f32.mrf.mxu0  ;;  %v3015_v39 = vpop.f32.mrf.mxu1 }
 0x189   : > { %v1507_v40 = vmul.f32 %v840_v3, %v840_v3  ;;  %v1373_v9 = vadd.f32 %v1372_v48, %v840_v3  ;;  %v3019_v5 = vpop.f32.mrf.mxu3 }
 0x18b   : > { %v1634_v18 = vadd.f32 %v1633_v56, %v1507_v40  ;;  %v1511_v40 = vmul.f32 %v2722_v44, %v2722_v44 }
 0x18c   : > { %v3001_v32 = vpop.f32.mrf.mxu2 }
 0x18d   : > { %v2410_v47 = vpack.c.bf16 %v3001_v32, %v2993_v23 }
 0x18f   : > { %2562 = vst [vmem:[%s2715_s10 + $0x148] sm:$0xff] %v2410_v47   ;;  %v1512_v47 = vmul.f32 %v2727_v52, %v2727_v52 }
 0x190   : > { %v842_v0 = vpop.f32.mrf.mxu0 }
 0x191   : > { %v2275_v16 = vpack.c.bf16 %v842_v0, %v840_v3  ;;  %v1508_v21 = vmul.f32 %v842_v0, %v842_v0  ;;  %v1374_v35 = vadd.f32 %v1373_v9, %v842_v0 }
 0x193   : > { %2535 = vst [vmem:[%s2715_s10 + $0x70] sm:$0xff] %v2275_v16   ;;  %v1635_v31 = vadd.f32 %v1634_v18, %v1508_v21 }
 0x194   : > { %1079 = vmatmul.bf16.gmra.mxu3 %v2192_v34  ;;  %v3017_v26 = vpop.f32.mrf.mxu2  ;;  %v3031_v34 = vpop.f32.mrf.mxu1 }
 0x198   : > { %v845_v61 = vpop.f32.mrf.mxu0 }
 0x199   : > { %v1509_v16 = vmul.f32 %v845_v61, %v845_v61  ;;  %v1375_v41 = vadd.f32 %v1374_v35, %v845_v61 }
 0x19b   : > { %v1636_v1 = vadd.f32 %v1635_v31, %v1509_v16  ;;  %v3038_v16 = vpop.f32.mrf.mxu3  ;;  %v2355_v31 = vpack.c.bf16 %v3031_v34, %v3015_v39 }
 0x19d   : > { %2551 = vst [vmem:[%s2715_s10 + $0xf0] sm:$0xff] %v2355_v31  }
 0x1a0   : > { %v847_v42 = vpop.f32.mrf.mxu0 }
 0x1a1   : > { %v2280_v48 = vpack.c.bf16 %v847_v42, %v845_v61  ;;  %v1376_v3 = vadd.f32 %v1375_v41, %v847_v42  ;;  %v1510_v15 = vmul.f32 %v847_v42, %v847_v42  ;;  %v1513_v61 = vmul.f32 %v2734_v60, %v2734_v60 }
 0x1a2   : > { %v1515_v41 = vmul.f32 %v2746_v12, %v2746_v12 }
 0x1a3   : > { %2536 = vst [vmem:[%s2715_s10 + $0x78] sm:$0xff] %v2280_v48   ;;  %v1377_v0 = vadd.f32 %v1376_v3, %v2722_v44  ;;  %v1637_v27 = vadd.f32 %v1636_v1, %v1510_v15  ;;  %v1514_v44 = vmul.f32 %v2739_v4, %v2739_v4  ;;  %v2193_v48 = vld [vmem:[%s2688_s7 + $0x1f8] sm:$0xff]  ;;  %v1516_v3 = vmul.f32 %v2751_v20, %v2751_v20 }
 0x1a4   : > { %1084 = vmatmul.bf16.gmra.mxu3 %v2193_v48 }
 0x1a5   : > { %v1378_v56 = vadd.f32 %v1377_v0, %v2727_v52  ;;  %v1638_v9 = vadd.f32 %v1637_v27, %v1511_v40  ;;  %v3036_v52 = vpop.f32.mrf.mxu2  ;;  %v1517_v0 = vmul.f32 %v2758_v28, %v2758_v28 }
 0x1a7   : > { %v1379_v21 = vadd.f32 %v1378_v56, %v2734_v60  ;;  %v1639_v10 = vadd.f32 %v1638_v9, %v1512_v47  ;;  %v2415_v60 = vpack.c.bf16 %v3036_v52, %v3017_v26  ;;  %v3059_v47 = vpop.f32.mrf.mxu1  ;;  %v1518_v56 = vmul.f32 %v2763_v36, %v2763_v36 }
 0x1a9   : > { %v1380_v18 = vadd.f32 %v1379_v21, %v2739_v4  ;;  %v1640_v35 = vadd.f32 %v1639_v10, %v1513_v61  ;;  %v2475_v4 = vpack.c.bf16 %v3038_v16, %v3019_v5  ;;  %2563 = vst [vmem:[%s2715_s10 + $0x150] sm:$0xff] %v2415_v60   ;;  %v1519_v10 = vmul.f32 %v2770_v45, %v2770_v45 }
 0x1ab   : > { %v1381_v42 = vadd.f32 %v1380_v18, %v2746_v12  ;;  %v1641_v1 = vadd.f32 %v1640_v35, %v1514_v44  ;;  %2575 = vst [vmem:[%s2715_s10 + $0x1b0] sm:$0xff] %v2475_v4  }
 0x1ad   : > { %v1382_v15 = vadd.f32 %v1381_v42, %v2751_v20  ;;  %v1642_v40 = vadd.f32 %v1641_v1, %v1515_v41  ;;  %v3064_v21 = vpop.f32.mrf.mxu2  ;;  %v3066_v20 = vpop.f32.mrf.mxu3 }
 0x1af   : > { %v1383_v12 = vadd.f32 %v1382_v15, %v2758_v28  ;;  %v1643_v27 = vadd.f32 %v1642_v40, %v1516_v3  ;;  %v1520_v28 = vmul.f32 %v2777_v55, %v2777_v55  ;;  %v3077_v42 = vpop.f32.mrf.mxu1  ;;  %v1523_v15 = vmul.f32 %v2808_v24, %v2808_v24 }
 0x1b0   : > { %v2360_v3 = vpack.c.bf16 %v3077_v42, %v3059_v47 }
 0x1b1   : > { %v1384_v9 = vadd.f32 %v1383_v12, %v2763_v36  ;;  %v1644_v61 = vadd.f32 %v1643_v27, %v1517_v0  ;;  %v1521_v36 = vmul.f32 %v2789_v2, %v2789_v2  ;;  %v1524_v12 = vmul.f32 %v2814_v33, %v2814_v33 }
 0x1b2   : > { %2552 = vst [vmem:[%s2715_s10 + $0xf8] sm:$0xff] %v2360_v3  }
 0x1b3   : > { %v1385_v44 = vadd.f32 %v1384_v9, %v2770_v45  ;;  %v1645_v18 = vadd.f32 %v1644_v61, %v1518_v56  ;;  %v1522_v45 = vmul.f32 %v2796_v13, %v2796_v13  ;;  %v1525_v9 = vmul.f32 %v2826_v46, %v2826_v46 }
 0x1b5   : > { %v1386_v35 = vadd.f32 %v1385_v44, %v2777_v55  ;;  %v1646_v31 = vadd.f32 %v1645_v18, %v1519_v10  ;;  %v3082_v48 = vpop.f32.mrf.mxu2  ;;  %v3084_v55 = vpop.f32.mrf.mxu3 }
 0x1b7   : > { %v1387_v60 = vadd.f32 %v1386_v35, %v2789_v2  ;;  %v1647_v41 = vadd.f32 %v1646_v31, %v1520_v28  ;;  %v2420_v2 = vpack.c.bf16 %v3082_v48, %v3064_v21 }
 0x1b9   : > { %v1388_v1 = vadd.f32 %v1387_v60, %v2796_v13  ;;  %v1648_v4 = vadd.f32 %v1647_v41, %v1521_v36  ;;  %v2480_v13 = vpack.c.bf16 %v3084_v55, %v3066_v20  ;;  %2564 = vst [vmem:[%s2715_s10 + $0x158] sm:$0xff] %v2420_v2  }
 0x1bb   : > { %v1649_v40 = vadd.f32 %v1648_v4, %v1522_v45  ;;  %v1389_v0 = vadd.f32 %v1388_v1, %v2808_v24  ;;  %2576 = vst [vmem:[%s2715_s10 + $0x1b8] sm:$0xff] %v2480_v13   ;;  %v1526_v24 = vmul.f32 %v2832_v57, %v2832_v57  ;;  %v1530_v4 = vmul.f32 %v2884_v43, %v2884_v43 }
 0x1bd   : > { %v1390_v27 = vadd.f32 %v1389_v0, %v2814_v33  ;;  %v1650_v56 = vadd.f32 %v1649_v40, %v1523_v15  ;;  %v3107_v28 = vpop.f32.mrf.mxu2  ;;  %v3109_v35 = vpop.f32.mrf.mxu3  ;;  %v1527_v33 = vmul.f32 %v2844_v8, %v2844_v8 }
 0x1bf   : > { %v1391_v61 = vadd.f32 %v1390_v27, %v2826_v46  ;;  %v1651_v10 = vadd.f32 %v1650_v56, %v1524_v12  ;;  %v1528_v46 = vmul.f32 %v2851_v19, %v2851_v19  ;;  %v1533_v56 = vmul.f32 %v2931_v30, %v2931_v30 }
 0x1c1   : > { %v1392_v44 = vadd.f32 %v1391_v61, %v2832_v57  ;;  %v1652_v18 = vadd.f32 %v1651_v10, %v1525_v9  ;;  %v1529_v57 = vmul.f32 %v2874_v37, %v2874_v37  ;;  %v1534_v10 = vmul.f32 %v2939_v53, %v2939_v53 }
 0x1c3   : > { %v1393_v31 = vadd.f32 %v1392_v44, %v2844_v8  ;;  %v1653_v36 = vadd.f32 %v1652_v18, %v1526_v24 }
 0x1c5   : > { %v1394_v60 = vadd.f32 %v1393_v31, %v2851_v19  ;;  %v1654_v41 = vadd.f32 %v1653_v36, %v1527_v33  ;;  %v3123_v2 = vpop.f32.mrf.mxu2  ;;  %v3125_v15 = vpop.f32.mrf.mxu3  ;;  %v1535_v33 = vmul.f32 %v2955_v22, %v2955_v22 }
 0x1c6   : > { %v2425_v19 = vpack.c.bf16 %v3123_v2, %v3107_v28  ;;  %v2485_v40 = vpack.c.bf16 %v3125_v15, %v3109_v35 }
 0x1c7   : > { %v1395_v45 = vadd.f32 %v1394_v60, %v2874_v37  ;;  %v1655_v1 = vadd.f32 %v1654_v41, %v1528_v46  ;;  %v1531_v37 = vmul.f32 %v2903_v62, %v2903_v62  ;;  %v1536_v46 = vmul.f32 %v2962_v58, %v2962_v58 }
 0x1c8   : > { %2565 = vst [vmem:[%s2715_s10 + $0x160] sm:$0xff] %v2425_v19   ;;  %v1537_v41 = vmul.f32 %v2988_v11, %v2988_v11 }
 0x1c9   : > { %v1396_v8 = vadd.f32 %v1395_v45, %v2884_v43  ;;  %v1656_v3 = vadd.f32 %v1655_v1, %v1529_v57  ;;  %v1532_v43 = vmul.f32 %v2914_v6, %v2914_v6  ;;  %2577 = vst [vmem:[%s2715_s10 + $0x1c0] sm:$0xff] %v2485_v40  }
 0x1cb   : > { %v1397_v0 = vadd.f32 %v1396_v8, %v2903_v62  ;;  %v1657_v13 = vadd.f32 %v1656_v3, %v1530_v4 }
 0x1cd   : > { %v1398_v12 = vadd.f32 %v1397_v0, %v2914_v6  ;;  %v1658_v27 = vadd.f32 %v1657_v13, %v1531_v37  ;;  %v3145_v44 = vpop.f32.mrf.mxu2  ;;  %v3147_v18 = vpop.f32.mrf.mxu3  ;;  %v1540_v37 = vmul.f32 %v3031_v34, %v3031_v34 }
 0x1cf   : > { %v1399_v9 = vadd.f32 %v1398_v12, %v2931_v30  ;;  %v1659_v61 = vadd.f32 %v1658_v27, %v1532_v43  ;;  %v1541_v43 = vmul.f32 %v3059_v47, %v3059_v47 }
 0x1d1   : > { %v1400_v62 = vadd.f32 %v1399_v9, %v2939_v53  ;;  %v1660_v24 = vadd.f32 %v1659_v61, %v1533_v56 }
 0x1d3   : > { %v1401_v6 = vadd.f32 %v1400_v62, %v2955_v22  ;;  %v1661_v31 = vadd.f32 %v1660_v24, %v1534_v10  ;;  %v1538_v22 = vmul.f32 %v2999_v54, %v2999_v54  ;;  %v1544_v62 = vmul.f32 %v2781_v59, %v2781_v59 }
 0x1d5   : > { %v1662_v36 = vadd.f32 %v1661_v31, %v1535_v33  ;;  %v1402_v30 = vadd.f32 %v1401_v6, %v2962_v58  ;;  %v3161_v1 = vpop.f32.mrf.mxu2  ;;  %v3163_v4 = vpop.f32.mrf.mxu3  ;;  %v1546_v31 = vmul.f32 %v2800_v17, %v2800_v17 }
 0x1d6   : > { %v2430_v58 = vpack.c.bf16 %v3161_v1, %v3145_v44  ;;  %v2490_v8 = vpack.c.bf16 %v3163_v4, %v3147_v18 }
 0x1d7   : > { %v1663_v60 = vadd.f32 %v1662_v36, %v1536_v46  ;;  %v1403_v53 = vadd.f32 %v1402_v30, %v2988_v11  ;;  %v1539_v11 = vmul.f32 %v3015_v39, %v3015_v39 }
 0x1d8   : > { %2566 = vst [vmem:[%s2715_s10 + $0x168] sm:$0xff] %v2430_v58  }
 0x1d9   : > { %v1664_v57 = vadd.f32 %v1663_v60, %v1537_v41  ;;  %v1404_v45 = vadd.f32 %v1403_v53, %v2999_v54  ;;  %2578 = vst [vmem:[%s2715_s10 + $0x1c8] sm:$0xff] %v2490_v8  }
 0x1db   : > { %v1665_v3 = vadd.f32 %v1664_v57, %v1538_v22  ;;  %v1405_v19 = vadd.f32 %v1404_v45, %v3015_v39  ;;  %v1542_v39 = vmul.f32 %v3077_v42, %v3077_v42  ;;  %v1549_v22 = vmul.f32 %v2828_v51, %v2828_v51 }
 0x1dd   : > { %v1666_v40 = vadd.f32 %v1665_v3, %v1539_v11  ;;  %v1406_v54 = vadd.f32 %v1405_v19, %v3031_v34  ;;  %v3183_v56 = vpop.f32.mrf.mxu2  ;;  %v3185_v9 = vpop.f32.mrf.mxu3  ;;  %v1543_v34 = vmul.f32 %v2772_v49, %v2772_v49  ;;  %v1550_v3 = vmul.f32 %v2836_v63, %v2836_v63 }
 0x1df   : > { %v1667_v0 = vadd.f32 %v1666_v40, %v1540_v37  ;;  %v1407_v13 = vadd.f32 %v1406_v54, %v3059_v47 }
 0x1e1   : > { %v1668_v12 = vadd.f32 %v1667_v0, %v1541_v43  ;;  %v1408_v27 = vadd.f32 %v1407_v13, %v3077_v42  ;;  %v1545_v42 = vmul.f32 %v2791_v7, %v2791_v7  ;;  %v3494_v43 = vld [vmem:[#allocation4_spill] sm:$0xff] }
 0x1e3   : > { %v1409_v61 = vadd.f32 %v1408_v27, %v2772_v49  ;;  %v1669_v10 = vadd.f32 %v1668_v12, %v1542_v39  ;;  %v3495_v39 = vld [vmem:[#allocation6_spill] sm:$0xff] }
 0x1e5   : > { %v1410_v47 = vadd.f32 %v1409_v61, %v2781_v59  ;;  %v1670_v24 = vadd.f32 %v1669_v10, %v1543_v34  ;;  %v3199_v30 = vpop.f32.mrf.mxu2  ;;  %v3201_v46 = vpop.f32.mrf.mxu3  ;;  %v1554_v34 = vmul.f32 %v3495_v39, %v3495_v39 }
 0x1e6   : > { %v2435_v59 = vpack.c.bf16 %v3199_v30, %v3183_v56  ;;  %v2495_v60 = vpack.c.bf16 %v3201_v46, %v3185_v9 }
 0x1e7   : > { %v1411_v6 = vadd.f32 %v1410_v47, %v2791_v7  ;;  %v1671_v33 = vadd.f32 %v1670_v24, %v1544_v62  ;;  %v1547_v7 = vmul.f32 %v2810_v29, %v2810_v29  ;;  %v3496_v24 = vld [vmem:[#allocation8_spill] sm:$0xff] }
 0x1e8   : > { %2567 = vst [vmem:[%s2715_s10 + $0x170] sm:$0xff] %v2435_v59  }
 0x1e9   : > { %v1412_v49 = vadd.f32 %v1411_v6, %v2800_v17  ;;  %v1672_v36 = vadd.f32 %v1671_v33, %v1545_v42  ;;  %v1548_v17 = vmul.f32 %v2818_v38, %v2818_v38  ;;  %2579 = vst [vmem:[%s2715_s10 + $0x1d0] sm:$0xff] %v2495_v60   ;;  %v1555_v42 = vmul.f32 %v3496_v24, %v3496_v24  ;;  %v3498_v60 = vld [vmem:[#allocation12_spill] sm:$0xff] }
 0x1eb   : > { %v1413_v53 = vadd.f32 %v1412_v49, %v2810_v29  ;;  %v1673_v41 = vadd.f32 %v1672_v36, %v1546_v31  ;;  %v3497_v31 = vld [vmem:[#allocation10_spill] sm:$0xff] }
 0x1ec   : > { %v1556_v49 = vmul.f32 %v3497_v31, %v3497_v31 }
 0x1ed   : > { %v1414_v57 = vadd.f32 %v1413_v53, %v2818_v38  ;;  %v1674_v45 = vadd.f32 %v1673_v41, %v1547_v7  ;;  %v3221_v11 = vpop.f32.mrf.mxu2  ;;  %v3223_v40 = vpop.f32.mrf.mxu3  ;;  %v1551_v38 = vmul.f32 %v2846_v14, %v2846_v14  ;;  %v1557_v7 = vmul.f32 %v3498_v60, %v3498_v60 }
 0x1ef   : > { %v1415_v58 = vadd.f32 %v1414_v57, %v2828_v51  ;;  %v1675_v8 = vadd.f32 %v1674_v45, %v1548_v17  ;;  %v1552_v51 = vmul.f32 %v2857_v25, %v2857_v25  ;;  %v3499_v17 = vld [vmem:[#allocation14_spill] sm:$0xff] }
 0x1f0   : > { %v1558_v57 = vmul.f32 %v3499_v17, %v3499_v17 }
 0x1f1   : > { %v1416_v29 = vadd.f32 %v1415_v58, %v2836_v63  ;;  %v1676_v19 = vadd.f32 %v1675_v8, %v1549_v22  ;;  %v1553_v63 = vmul.f32 %v3494_v43, %v3494_v43  ;;  %v3500_v8 = vld [vmem:[#allocation16_spill] sm:$0xff] }
 0x1f3   : > { %v1417_v54 = vadd.f32 %v1416_v29, %v2846_v14  ;;  %v1677_v37 = vadd.f32 %v1676_v19, %v1550_v3  ;;  %v1559_v3 = vmul.f32 %v3500_v8, %v3500_v8 }
 0x1f5   : > { %v1418_v0 = vadd.f32 %v1417_v54, %v2857_v25  ;;  %v1678_v13 = vadd.f32 %v1677_v37, %v1551_v38  ;;  %v3237_v10 = vpop.f32.mrf.mxu2  ;;  %v3239_v62 = vpop.f32.mrf.mxu3  ;;  %v3501_v38 = vld [vmem:[#allocation18_spill] sm:$0xff] }
 0x1f6   : > { %v2440_v25 = vpack.c.bf16 %v3237_v10, %v3221_v11  ;;  %v2500_v47 = vpack.c.bf16 %v3239_v62, %v3223_v40  ;;  %v1560_v54 = vmul.f32 %v3501_v38, %v3501_v38 }
 0x1f7   : > { %v1419_v12 = vadd.f32 %v1418_v0, %v3494_v43  ;;  %v1679_v27 = vadd.f32 %v1678_v13, %v1552_v51  ;;  %v1561_v0 = vmul.f32 %v2993_v23, %v2993_v23 }
 0x1f8   : > { %2568 = vst [vmem:[%s2715_s10 + $0x178] sm:$0xff] %v2440_v25  }
 0x1f9   : > { %v1420_v14 = vadd.f32 %v1419_v12, %v3495_v39  ;;  %v1680_v61 = vadd.f32 %v1679_v27, %v1553_v63  ;;  %2580 = vst [vmem:[%s2715_s10 + $0x1d8] sm:$0xff] %v2500_v47   ;;  %v1562_v63 = vmul.f32 %v3001_v32, %v3001_v32 }
 0x1fb   : > { %v1681_v6 = vadd.f32 %v1680_v61, %v1554_v34  ;;  %v1421_v33 = vadd.f32 %v1420_v14, %v3496_v24  ;;  %v1563_v14 = vmul.f32 %v3017_v26, %v3017_v26 }
 0x1fd   : > { %v1422_v36 = vadd.f32 %v1421_v33, %v3497_v31  ;;  %v1682_v59 = vadd.f32 %v1681_v6, %v1555_v42  ;;  %v3259_v58 = vpop.f32.mrf.mxu3  ;;  %v1566_v31 = vmul.f32 %v3082_v48, %v3082_v48 }
 0x1ff   : > { %v1423_v53 = vadd.f32 %v1422_v36, %v3498_v60  ;;  %v1683_v41 = vadd.f32 %v1682_v59, %v1556_v49 }
 0x201   : > { %v1424_v45 = vadd.f32 %v1423_v53, %v3499_v17  ;;  %v1684_v22 = vadd.f32 %v1683_v41, %v1557_v7 }
 0x203   : > { %v1425_v29 = vadd.f32 %v1424_v45, %v3500_v8  ;;  %v1685_v19 = vadd.f32 %v1684_v22, %v1558_v57  ;;  %v1570_v45 = vmul.f32 %v3161_v1, %v3161_v1 }
 0x205   : > { %v1426_v37 = vadd.f32 %v1425_v29, %v3501_v38  ;;  %v1686_v51 = vadd.f32 %v1685_v19, %v1559_v3  ;;  %v3273_v39 = vpop.f32.mrf.mxu3  ;;  %v1571_v3 = vmul.f32 %v3183_v56, %v3183_v56  ;;  %v1572_v19 = vmul.f32 %v3199_v30, %v3199_v30 }
 0x206   : > { %v2505_v34 = vpack.c.bf16 %v3273_v39, %v3259_v58 }
 0x207   : > { %v1427_v13 = vadd.f32 %v1426_v37, %v2993_v23  ;;  %v1687_v43 = vadd.f32 %v1686_v51, %v1560_v54  ;;  %v1564_v23 = vmul.f32 %v3036_v52, %v3036_v52  ;;  %v1573_v54 = vmul.f32 %v3221_v11, %v3221_v11 }
 0x208   : > { %2581 = vst [vmem:[%s2715_s10 + $0x1e0] sm:$0xff] %v2505_v34  }
 0x209   : > { %v1428_v12 = vadd.f32 %v1427_v13, %v3001_v32  ;;  %v1688_v27 = vadd.f32 %v1687_v43, %v1561_v0  ;;  %v1565_v32 = vmul.f32 %v3064_v21, %v3064_v21  ;;  %v1574_v0 = vmul.f32 %v3237_v10, %v3237_v10  ;;  %v3502_v13 = vld [vmem:[#allocation2_spill] sm:$0xff] }
 0x20a   : > { %v1575_v43 = vmul.f32 %v3502_v13, %v3502_v13 }
 0x20b   : > { %v1429_v61 = vadd.f32 %v1428_v12, %v3017_v26  ;;  %v1689_v25 = vadd.f32 %v1688_v27, %v1562_v63  ;;  %v3503_v12 = vld [vmem:[#allocation3_spill] sm:$0xff] }
 0x20c   : > { %v1576_v27 = vmul.f32 %v3503_v12, %v3503_v12 }
 0x20d   : > { %v1430_v47 = vadd.f32 %v1429_v61, %v3036_v52  ;;  %v1690_v24 = vadd.f32 %v1689_v25, %v1563_v14  ;;  %v3290_v49 = vpop.f32.mrf.mxu3  ;;  %v1567_v52 = vmul.f32 %v3107_v28, %v3107_v28  ;;  %v3504_v14 = vld [vmem:[#allocation5_spill] sm:$0xff] }
 0x20e   : > { %v1577_v61 = vmul.f32 %v3504_v14, %v3504_v14 }
 0x20f   : > { %v1431_v42 = vadd.f32 %v1430_v47, %v3064_v21  ;;  %v1691_v6 = vadd.f32 %v1690_v24, %v1564_v23  ;;  %v1568_v21 = vmul.f32 %v3123_v2, %v3123_v2  ;;  %v3505_v23 = vld [vmem:[#allocation7_spill] sm:$0xff] }
 0x210   : > { %v1578_v47 = vmul.f32 %v3505_v23, %v3505_v23 }
 0x211   : > { %v1432_v33 = vadd.f32 %v1431_v42, %v3082_v48  ;;  %v1692_v26 = vadd.f32 %v1691_v6, %v1565_v32  ;;  %v1569_v48 = vmul.f32 %v3145_v44, %v3145_v44 }
 0x213   : > { %v1693_v36 = vadd.f32 %v1692_v26, %v1566_v31  ;;  %v1433_v59 = vadd.f32 %v1432_v33, %v3107_v28  ;;  %v3506_v33 = vld [vmem:[#allocation9_spill] sm:$0xff] }
 0x214   : > { %v1579_v31 = vmul.f32 %v3506_v33, %v3506_v33 }
 0x215   : > { %v1694_v60 = vadd.f32 %v1693_v36, %v1567_v52  ;;  %v1434_v7 = vadd.f32 %v1433_v59, %v3123_v2  ;;  %v3304_v22 = vpop.f32.mrf.mxu3  ;;  %v3507_v59 = vld [vmem:[#allocation11_spill] sm:$0xff] }
 0x216   : > { %v2510_v28 = vpack.c.bf16 %v3304_v22, %v3290_v49  ;;  %v1580_v52 = vmul.f32 %v3507_v59, %v3507_v59 }
 0x217   : > { %v1695_v53 = vadd.f32 %v1694_v60, %v1568_v21  ;;  %v1435_v41 = vadd.f32 %v1434_v7, %v3145_v44  ;;  %v3508_v21 = vld [vmem:[#allocation13_spill] sm:$0xff] }
 0x218   : > { %2582 = vst [vmem:[%s2715_s10 + $0x1e8] sm:$0xff] %v2510_v28  }
 0x219   : > { %v1696_v17 = vadd.f32 %v1695_v53, %v1569_v48  ;;  %v1436_v57 = vadd.f32 %v1435_v41, %v3161_v1  ;;  %v1581_v53 = vmul.f32 %v3508_v21, %v3508_v21 }
 0x21b   : > { %v1697_v8 = vadd.f32 %v1696_v17, %v1570_v45  ;;  %v1437_v2 = vadd.f32 %v1436_v57, %v3183_v56  ;;  %v3509_v17 = vld [vmem:[#allocation15_spill] sm:$0xff] }
 0x21c   : > { %v1582_v57 = vmul.f32 %v3509_v17, %v3509_v17 }
 0x21d   : > { %v1698_v29 = vadd.f32 %v1697_v8, %v1571_v3  ;;  %v1438_v44 = vadd.f32 %v1437_v2, %v3199_v30  ;;  %v3321_v56 = vpop.f32.mrf.mxu3  ;;  %v3510_v2 = vld [vmem:[#allocation17_spill] sm:$0xff] }
 0x21e   : > { %v1583_v3 = vmul.f32 %v3510_v2, %v3510_v2 }
 0x21f   : > { %v1699_v38 = vadd.f32 %v1698_v29, %v1572_v19  ;;  %v1439_v1 = vadd.f32 %v1438_v44, %v3221_v11  ;;  %v3511_v19 = vld [vmem:[#allocation19_spill] sm:$0xff] }
 0x221   : > { %v1700_v37 = vadd.f32 %v1699_v38, %v1573_v54  ;;  %v1440_v51 = vadd.f32 %v1439_v1, %v3237_v10  ;;  %v1584_v38 = vmul.f32 %v3511_v19, %v3511_v19 }
 0x223   : > { %v1441_v63 = vadd.f32 %v1440_v51, %v3502_v13  ;;  %v1701_v30 = vadd.f32 %v1700_v37, %v1574_v0  ;;  %v1585_v37 = vmul.f32 %v2995_v50, %v2995_v50  ;;  %v3512_v13 = vld [vmem:[#allocation20_spill] sm:$0xff] }
 0x225   : > { %v1442_v11 = vadd.f32 %v1441_v63, %v3503_v12  ;;  %v1702_v34 = vadd.f32 %v1701_v30, %v1575_v43  ;;  %v3335_v42 = vpop.f32.mrf.mxu3  ;;  %v1586_v43 = vmul.f32 %v3512_v13, %v3512_v13 }
 0x226   : > { %v2515_v6 = vpack.c.bf16 %v3335_v42, %v3321_v56 }
 0x227   : > { %v1443_v10 = vadd.f32 %v1442_v11, %v3504_v14  ;;  %v1703_v25 = vadd.f32 %v1702_v34, %v1576_v27  ;;  %v1587_v11 = vmul.f32 %v3019_v5, %v3019_v5 }
 0x228   : > { %2583 = vst [vmem:[%s2715_s10 + $0x1f0] sm:$0xff] %v2515_v6  }
 0x229   : > { %v1444_v24 = vadd.f32 %v1443_v10, %v3505_v23  ;;  %v1704_v32 = vadd.f32 %v1703_v25, %v1577_v61  ;;  %v1589_v25 = vmul.f32 %v3066_v20, %v3066_v20 }
 0x22b   : > { %v1445_v26 = vadd.f32 %v1444_v24, %v3506_v33  ;;  %v1705_v36 = vadd.f32 %v1704_v32, %v1578_v47  ;;  %v1590_v24 = vmul.f32 %v3084_v55, %v3084_v55 }
 0x22d   : > { %v1446_v60 = vadd.f32 %v1445_v26, %v3507_v59  ;;  %v1706_v7 = vadd.f32 %v1705_v36, %v1579_v31  ;;  %v3352_v8 = vpop.f32.mrf.mxu3 }
 0x22f   : > { %v1447_v41 = vadd.f32 %v1446_v60, %v3508_v21  ;;  %v1707_v48 = vadd.f32 %v1706_v7, %v1580_v52 }
 0x231   : > { %v1448_v45 = vadd.f32 %v1447_v41, %v3509_v17  ;;  %v1708_v28 = vadd.f32 %v1707_v48, %v1581_v53 }
 0x233   : > { %v1449_v29 = vadd.f32 %v1448_v45, %v3510_v2  ;;  %v1709_v44 = vadd.f32 %v1708_v28, %v1582_v57  ;;  %v1598_v45 = vmul.f32 %v3239_v62, %v3239_v62 }
 0x235   : > { %v1450_v1 = vadd.f32 %v1449_v29, %v3511_v19  ;;  %v1710_v54 = vadd.f32 %v1709_v44, %v1583_v3  ;;  %v1087_v12 = vpop.f32.mrf.mxu3  ;;  %v1599_v3 = vmul.f32 %v3259_v58, %v3259_v58  ;;  %v1600_v44 = vmul.f32 %v3273_v39, %v3273_v39 }
 0x236   : > { %v2520_v27 = vpack.c.bf16 %v1087_v12, %v3352_v8 }
 0x237   : > { %v1451_v51 = vadd.f32 %v1450_v1, %v2995_v50  ;;  %v1711_v0 = vadd.f32 %v1710_v54, %v1584_v38  ;;  %v1588_v50 = vmul.f32 %v3038_v16, %v3038_v16  ;;  %v1601_v38 = vmul.f32 %v3290_v49, %v3290_v49 }
 0x238   : > { %2584 = vst [vmem:[%s2715_s10 + $0x1f8] sm:$0xff] %v2520_v27   ;;  %v1602_v54 = vmul.f32 %v3304_v22, %v3304_v22  ;;  %v1606_v27 = vmul.f32 %v1087_v12, %v1087_v12 }
 0x239   : > { %v1452_v63 = vadd.f32 %v1451_v51, %v3512_v13  ;;  %v1712_v30 = vadd.f32 %v1711_v0, %v1585_v37  ;;  %v1603_v51 = vmul.f32 %v3321_v56, %v3321_v56 }
 0x23b   : > { %v1713_v34 = vadd.f32 %v1712_v30, %v1586_v43  ;;  %v1453_v14 = vadd.f32 %v1452_v63, %v3019_v5  ;;  %v1591_v5 = vmul.f32 %v3109_v35, %v3109_v35  ;;  %v1605_v63 = vmul.f32 %v3352_v8, %v3352_v8 }
 0x23d   : > { %v1454_v61 = vadd.f32 %v1453_v14, %v3038_v16  ;;  %v1714_v10 = vadd.f32 %v1713_v34, %v1587_v11  ;;  %v1592_v16 = vmul.f32 %v3125_v15, %v3125_v15 }
 0x23f   : > { %v1455_v23 = vadd.f32 %v1454_v61, %v3066_v20  ;;  %v1715_v47 = vadd.f32 %v1714_v10, %v1588_v50  ;;  %v1593_v20 = vmul.f32 %v3147_v18, %v3147_v18 }
 0x241   : > { %v1456_v32 = vadd.f32 %v1455_v23, %v3084_v55  ;;  %v1716_v6 = vadd.f32 %v1715_v47, %v1589_v25  ;;  %v1594_v55 = vmul.f32 %v3163_v4, %v3163_v4 }
 0x243   : > { %v1457_v33 = vadd.f32 %v1456_v32, %v3109_v35  ;;  %v1717_v31 = vadd.f32 %v1716_v6, %v1590_v24  ;;  %v1595_v35 = vmul.f32 %v3185_v9, %v3185_v9 }
 0x245   : > { %v1458_v26 = vadd.f32 %v1457_v33, %v3125_v15  ;;  %v1718_v36 = vadd.f32 %v1717_v31, %v1591_v5  ;;  %v1596_v15 = vmul.f32 %v3201_v46, %v3201_v46 }
 0x247   : > { %v1459_v59 = vadd.f32 %v1458_v26, %v3147_v18  ;;  %v1719_v52 = vadd.f32 %v1718_v36, %v1592_v16  ;;  %v1597_v18 = vmul.f32 %v3223_v40, %v3223_v40 }
 0x249   : > { %v1460_v60 = vadd.f32 %v1459_v59, %v3163_v4  ;;  %v1720_v7 = vadd.f32 %v1719_v52, %v1593_v20 }
 0x24b   : > { %v1461_v21 = vadd.f32 %v1460_v60, %v3185_v9  ;;  %v1721_v53 = vadd.f32 %v1720_v7, %v1594_v55 }
 0x24d   : > { %v1462_v41 = vadd.f32 %v1461_v21, %v3201_v46  ;;  %v1722_v48 = vadd.f32 %v1721_v53, %v1595_v35 }
 0x24f   : > { %v1463_v17 = vadd.f32 %v1462_v41, %v3223_v40  ;;  %v1723_v57 = vadd.f32 %v1722_v48, %v1596_v15 }
 0x251   : > { %v1464_v4 = vadd.f32 %v1463_v17, %v3239_v62  ;;  %v1724_v28 = vadd.f32 %v1723_v57, %v1597_v18 }
 0x253   : > { %v1725_v9 = vadd.f32 %v1724_v28, %v1598_v45  ;;  %v1465_v2 = vadd.f32 %v1464_v4, %v3259_v58 }
 0x255   : > { %v1726_v46 = vadd.f32 %v1725_v9, %v1599_v3  ;;  %v1466_v29 = vadd.f32 %v1465_v2, %v3273_v39 }
 0x257   : > { %v1727_v40 = vadd.f32 %v1726_v46, %v1600_v44  ;;  %v1467_v19 = vadd.f32 %v1466_v29, %v3290_v49  ;;  %v1604_v49 = vmul.f32 %v3335_v42, %v3335_v42 }
 0x259   : > { %v1728_v62 = vadd.f32 %v1727_v40, %v1601_v38  ;;  %v1468_v1 = vadd.f32 %v1467_v19, %v3304_v22 }
 0x25b   : > { %v1729_v58 = vadd.f32 %v1728_v62, %v1602_v54  ;;  %v1469_v37 = vadd.f32 %v1468_v1, %v3321_v56 }
 0x25d   : > { %v1730_v39 = vadd.f32 %v1729_v58, %v1603_v51  ;;  %v1470_v0 = vadd.f32 %v1469_v37, %v3335_v42 }
 0x25f   : > { %v1731_v13 = vadd.f32 %v1730_v39, %v1604_v49  ;;  %v1471_v43 = vadd.f32 %v1470_v0, %v3352_v8 }
 0x261   : > { %v1732_v22 = vadd.f32 %v1731_v13, %v1605_v63  ;;  %v1472_v30 = vadd.f32 %v1471_v43, %v1087_v12 }
 0x263   : > { %v1473_v11 = vrot.slane %v1472_v30, 4  ;;  %v1733_v34 = vadd.f32 %v1732_v22, %v1606_v27 }
 0x265   : > { %v1474_v56 = vadd.f32 %v1473_v11, %v1472_v30  ;;  %v1734_v14 = vrot.slane %v1733_v34, 4 }
 0x267   : > { %v1475_v50 = vrot.slane %v1474_v56, 2  ;;  %v1735_v61 = vadd.f32 %v1734_v14, %v1733_v34 }
 0x269   : > { %v1476_v10 = vadd.f32 %v1475_v50, %v1474_v56  ;;  %v1736_v25 = vrot.slane %v1735_v61, 2 }
 0x26b   : > { %v1477_v42 = vrot.slane %v1476_v10, 1  ;;  %v1737_v23 = vadd.f32 %v1736_v25, %v1735_v61 }
 0x26d   : > { %v1738_v47 = vrot.slane %v1737_v23, 1  ;;  %v1478_v8 = vadd.f32 %v1477_v42, %v1476_v10 }
 0x26f   : > { %v1739_v12 = vadd.f32 %v1738_v47, %v1737_v23 }
 0x271   : > { %v1741_v24 = vsel %vm1740_vm0, %v1478_v8, %v1739_v12 }
 0x272   : > { %1742 = vst [vmem:[%s184_s16] sm:$0x3] %v1741_v24 }
 0x273 PF: > { %s14_s12 = sadd.s32 1, %s2623_s12  }
 0x274   : > { %p11_p5 = scmp.ge.s32.totalorder %s14_s12, 4  }
 0x276   :  { %13 = sbr.rel (!%p11_p5) target bundleno = 1 (0x1), region = 70 }

// kernel: discriminator_forward.11
= control target key start
LH: loop header
LB: loop body
LE: loop exit
PB: predicated region body
PF: predicated region fallthrough
CT: control target
= control target key end

     0   :  { %s1887_s12 = smov 0   ;;  %s2319_s0 = inlined_call_operand.vmem [shape: bf16[2048,128], index: 0, kind: input, shape index: {}]   ;;  %s2320_s1 = inlined_call_operand.vmem [shape: f32[1,128], index: 1, kind: input, shape index: {}]   ;;  %s2321_s2 = inlined_call_operand.vmem [shape: f32[1,128], index: 2, kind: input, shape index: {}]   ;;  %s2322_s3 = inlined_call_operand.vmem [shape: bf16[2048,128], index: 3, kind: output, shape index: {}]  }
   0x1 LB: > { %s1134_s13 = sadd.s32 4294967295, %s1865_s12   ;;  %p1138_p0 = scmp.ge.s32.totalorder %s1865_s12, 1  ;;  %s1865_s12 = sphi %s1887_s12, %s13_s12  }
   0x2   : > { %p138_p1 = scmp.lt.s32.totalorder %s1865_s12, 3 }
   0x4   : > { %p139_p2 = pnand %p1138_p0, %p138_p1 }
   0x5   : > { %s1139_s14 = sshll.u32 (!%p139_p2), %s1134_s13, 7 }
   0x6   : > { %142 = sbr.rel (%p139_p2) target bundleno = 165 (0xa5), region = 32  ;;  %p163_p3 = scmp.lt.s32.totalorder (!%p139_p2), %s1139_s14, 255 }
   0xb   : > { %s2324_s14 = smov (!%p163_p3, %s1139_s14), 255  ;;  %v1908_v0 = vld [vmem:[%s2320_s1] ss:$0 sm:$0xff] }
   0xc   : > { %s1140_s15 = sshll.u32 %s2324_s14, 2  ;;  %v1916_v6 = vld [vmem:[%s2321_s2] ss:$0 sm:$0xff] }
   0xd   : > { %s1903_s18 = scalar_lea.vmem %s2319_s0, %s1140_s15  ;;  %s1942_s25 = scalar_lea.vmem %s2322_s3, %s1140_s15 }
   0xe   : > { %v1146_v1 = vld [vmem:[%s1903_s18] sm:$0xff]   ;;  %v1721_v2 = vld [vmem:[%s1903_s18 + $0x8] sm:$0xff]   ;;  %v1722_v3 = vld [vmem:[%s1903_s18 + $0x10] sm:$0xff]  }
   0xf   : > { %v1147_v4 = vunpack.c.l.bf16 %v1146_v1  ;;  %v1148_v5 = vunpack.c.h.bf16 %v1146_v1  ;;  %v1151_v7 = vunpack.c.l.bf16 %v1721_v2  ;;  %v1152_v8 = vunpack.c.h.bf16 %v1721_v2  ;;  %v1723_v9 = vld [vmem:[%s1903_s18 + $0x18] sm:$0xff]   ;;  %v1724_v30 = vld [vmem:[%s1903_s18 + $0x20] sm:$0xff]   ;;  %v1725_v35 = vld [vmem:[%s1903_s18 + $0x28] sm:$0xff]  }
  0x10   : > { %v1155_v10 = vunpack.c.l.bf16 %v1722_v3  ;;  %v1156_v11 = vunpack.c.h.bf16 %v1722_v3  ;;  %v1159_v12 = vunpack.c.l.bf16 %v1723_v9  ;;  %v1160_v13 = vunpack.c.h.bf16 %v1723_v9  ;;  %v1726_v40 = vld [vmem:[%s1903_s18 + $0x30] sm:$0xff]   ;;  %v1727_v45 = vld [vmem:[%s1903_s18 + $0x38] sm:$0xff]   ;;  %v1728_v3 = vld [vmem:[%s1903_s18 + $0x40] sm:$0xff]  }
  0x11   : > { %v434_v14 = vmul.f32 %v1908_v0, %v1147_v4  ;;  %v435_v15 = vmul.f32 %v1908_v0, %v1148_v5  ;;  %v436_v16 = vmul.f32 %v1908_v0, %v1151_v7  ;;  %v437_v17 = vmul.f32 %v1908_v0, %v1152_v8 }
  0x12   : > { %v438_v18 = vmul.f32 %v1908_v0, %v1155_v10  ;;  %v439_v19 = vmul.f32 %v1908_v0, %v1156_v11  ;;  %v440_v20 = vmul.f32 %v1908_v0, %v1159_v12  ;;  %v441_v21 = vmul.f32 %v1908_v0, %v1160_v13  ;;  %v1729_v13 = vld [vmem:[%s1903_s18 + $0x48] sm:$0xff]  }
  0x13   : > { %v566_v22 = vadd.f32 %v1916_v6, %v434_v14  ;;  %v567_v23 = vadd.f32 %v1916_v6, %v435_v15  ;;  %v568_v24 = vadd.f32 %v1916_v6, %v436_v16  ;;  %v569_v25 = vadd.f32 %v1916_v6, %v437_v17 }
  0x14   : > { %v570_v26 = vadd.f32 %v1916_v6, %v438_v18  ;;  %v571_v27 = vadd.f32 %v1916_v6, %v439_v19  ;;  %v572_v28 = vadd.f32 %v1916_v6, %v440_v20  ;;  %v573_v29 = vadd.f32 %v1916_v6, %v441_v21  ;;  %v1730_v18 = vld [vmem:[%s1903_s18 + $0x50] sm:$0xff]  }
  0x15   : > { %v694_v31 = vmax.f32 %v566_v22, 0.0  ;;  %v695_v32 = vmax.f32 %v567_v23, 0.0  ;;  %v696_v33 = vmax.f32 %v568_v24, 0.0  ;;  %v697_v34 = vmax.f32 %v569_v25, 0.0  ;;  %v1731_v23 = vld [vmem:[%s1903_s18 + $0x58] sm:$0xff]  }
  0x16   : > { %v698_v36 = vmax.f32 %v570_v26, 0.0  ;;  %v699_v37 = vmax.f32 %v571_v27, 0.0  ;;  %v700_v38 = vmax.f32 %v572_v28, 0.0  ;;  %v701_v39 = vmax.f32 %v573_v29, 0.0 }
  0x17   : > { %v1404_v41 = vpack.c.bf16 %v695_v32, %v694_v31  ;;  %v1409_v42 = vpack.c.bf16 %v697_v34, %v696_v33  ;;  %v1163_v43 = vunpack.c.l.bf16 %v1724_v30  ;;  %v1164_v44 = vunpack.c.h.bf16 %v1724_v30 }
  0x18   : > { %v1414_v46 = vpack.c.bf16 %v699_v37, %v698_v36  ;;  %v1419_v47 = vpack.c.bf16 %v701_v39, %v700_v38  ;;  %v1167_v48 = vunpack.c.l.bf16 %v1725_v35  ;;  %v1168_v49 = vunpack.c.h.bf16 %v1725_v35 }
  0x19   : > { %1405 = vst [vmem:[%s1942_s25] sm:$0xff] %v1404_v41   ;;  %v442_v50 = vmul.f32 %v1908_v0, %v1163_v43  ;;  %v443_v51 = vmul.f32 %v1908_v0, %v1164_v44  ;;  %v1171_v52 = vunpack.c.l.bf16 %v1726_v40  ;;  %v1172_v53 = vunpack.c.h.bf16 %v1726_v40  ;;  %v1732_v40 = vld [vmem:[%s1903_s18 + $0x60] sm:$0xff]  }
  0x1a   : > { %1784 = vst [vmem:[%s1942_s25 + $0x8] sm:$0xff] %v1409_v42   ;;  %v444_v54 = vmul.f32 %v1908_v0, %v1167_v48  ;;  %v445_v55 = vmul.f32 %v1908_v0, %v1168_v49  ;;  %v1175_v56 = vunpack.c.l.bf16 %v1727_v45  ;;  %v1176_v57 = vunpack.c.h.bf16 %v1727_v45 }
  0x1b   : > { %1785 = vst [vmem:[%s1942_s25 + $0x10] sm:$0xff] %v1414_v46   ;;  %v574_v58 = vadd.f32 %v1916_v6, %v442_v50  ;;  %v575_v59 = vadd.f32 %v1916_v6, %v443_v51  ;;  %v446_v60 = vmul.f32 %v1908_v0, %v1171_v52  ;;  %v447_v61 = vmul.f32 %v1908_v0, %v1172_v53  ;;  %v1733_v53 = vld [vmem:[%s1903_s18 + $0x68] sm:$0xff]  }
  0x1c   : > { %1786 = vst [vmem:[%s1942_s25 + $0x18] sm:$0xff] %v1419_v47   ;;  %v576_v62 = vadd.f32 %v1916_v6, %v444_v54  ;;  %v577_v63 = vadd.f32 %v1916_v6, %v445_v55  ;;  %v448_v1 = vmul.f32 %v1908_v0, %v1175_v56  ;;  %v449_v2 = vmul.f32 %v1908_v0, %v1176_v57 }
  0x1d   : > { %v702_v4 = vmax.f32 %v574_v58, 0.0  ;;  %v703_v5 = vmax.f32 %v575_v59, 0.0  ;;  %v578_v7 = vadd.f32 %v1916_v6, %v446_v60  ;;  %v579_v8 = vadd.f32 %v1916_v6, %v447_v61  ;;  %v1734_v58 = vld [vmem:[%s1903_s18 + $0x70] sm:$0xff]  }
  0x1e   : > { %v704_v9 = vmax.f32 %v576_v62, 0.0  ;;  %v705_v10 = vmax.f32 %v577_v63, 0.0  ;;  %v580_v11 = vadd.f32 %v1916_v6, %v448_v1  ;;  %v581_v12 = vadd.f32 %v1916_v6, %v449_v2  ;;  %v1735_v63 = vld [vmem:[%s1903_s18 + $0x78] sm:$0xff]  }
  0x1f   : > { %v1424_v14 = vpack.c.bf16 %v703_v5, %v702_v4  ;;  %v706_v15 = vmax.f32 %v578_v7, 0.0  ;;  %v707_v16 = vmax.f32 %v579_v8, 0.0  ;;  %v1179_v17 = vunpack.c.l.bf16 %v1728_v3 }
  0x20   : > { %v1429_v19 = vpack.c.bf16 %v705_v10, %v704_v9  ;;  %v708_v20 = vmax.f32 %v580_v11, 0.0  ;;  %v709_v21 = vmax.f32 %v581_v12, 0.0  ;;  %v1180_v22 = vunpack.c.h.bf16 %v1728_v3 }
  0x21   : > { %1787 = vst [vmem:[%s1942_s25 + $0x20] sm:$0xff] %v1424_v14   ;;  %v1434_v24 = vpack.c.bf16 %v707_v16, %v706_v15  ;;  %v450_v25 = vmul.f32 %v1908_v0, %v1179_v17  ;;  %v1183_v26 = vunpack.c.l.bf16 %v1729_v13  ;;  %v1184_v27 = vunpack.c.h.bf16 %v1729_v13  ;;  %v1736_v14 = vld [vmem:[%s1903_s18 + $0x80] sm:$0xff]  }
  0x22   : > { %1788 = vst [vmem:[%s1942_s25 + $0x28] sm:$0xff] %v1429_v19   ;;  %v1439_v28 = vpack.c.bf16 %v709_v21, %v708_v20  ;;  %v451_v29 = vmul.f32 %v1908_v0, %v1180_v22  ;;  %v1187_v30 = vunpack.c.l.bf16 %v1730_v18  ;;  %v1188_v31 = vunpack.c.h.bf16 %v1730_v18 }
  0x23   : > { %1789 = vst [vmem:[%s1942_s25 + $0x30] sm:$0xff] %v1434_v24   ;;  %v582_v32 = vadd.f32 %v1916_v6, %v450_v25  ;;  %v452_v33 = vmul.f32 %v1908_v0, %v1183_v26  ;;  %v453_v34 = vmul.f32 %v1908_v0, %v1184_v27  ;;  %v1191_v35 = vunpack.c.l.bf16 %v1731_v23 }
  0x24   : > { %1790 = vst [vmem:[%s1942_s25 + $0x38] sm:$0xff] %v1439_v28   ;;  %v583_v36 = vadd.f32 %v1916_v6, %v451_v29  ;;  %v454_v37 = vmul.f32 %v1908_v0, %v1187_v30  ;;  %v455_v38 = vmul.f32 %v1908_v0, %v1188_v31  ;;  %v1192_v39 = vunpack.c.h.bf16 %v1731_v23  ;;  %v1737_v31 = vld [vmem:[%s1903_s18 + $0x88] sm:$0xff]  }
  0x25   : > { %v710_v41 = vmax.f32 %v582_v32, 0.0  ;;  %v584_v42 = vadd.f32 %v1916_v6, %v452_v33  ;;  %v585_v43 = vadd.f32 %v1916_v6, %v453_v34  ;;  %v456_v44 = vmul.f32 %v1908_v0, %v1191_v35 }
  0x26   : > { %v711_v45 = vmax.f32 %v583_v36, 0.0  ;;  %v586_v46 = vadd.f32 %v1916_v6, %v454_v37  ;;  %v587_v47 = vadd.f32 %v1916_v6, %v455_v38  ;;  %v457_v48 = vmul.f32 %v1908_v0, %v1192_v39  ;;  %v1738_v36 = vld [vmem:[%s1903_s18 + $0x90] sm:$0xff]  }
  0x27   : > { %v712_v49 = vmax.f32 %v584_v42, 0.0  ;;  %v713_v50 = vmax.f32 %v585_v43, 0.0  ;;  %v588_v51 = vadd.f32 %v1916_v6, %v456_v44  ;;  %v1195_v52 = vunpack.c.l.bf16 %v1732_v40 }
  0x28   : > { %v1444_v54 = vpack.c.bf16 %v711_v45, %v710_v41  ;;  %v714_v55 = vmax.f32 %v586_v46, 0.0  ;;  %v715_v56 = vmax.f32 %v587_v47, 0.0  ;;  %v589_v57 = vadd.f32 %v1916_v6, %v457_v48  ;;  %v1739_v41 = vld [vmem:[%s1903_s18 + $0x98] sm:$0xff]  }
  0x29   : > { %v1449_v59 = vpack.c.bf16 %v713_v50, %v712_v49  ;;  %v716_v60 = vmax.f32 %v588_v51, 0.0  ;;  %v1196_v61 = vunpack.c.h.bf16 %v1732_v40  ;;  %v458_v62 = vmul.f32 %v1908_v0, %v1195_v52 }
  0x2a   : > { %1791 = vst [vmem:[%s1942_s25 + $0x40] sm:$0xff] %v1444_v54   ;;  %v1454_v1 = vpack.c.bf16 %v715_v56, %v714_v55  ;;  %v717_v2 = vmax.f32 %v589_v57, 0.0  ;;  %v1199_v3 = vunpack.c.l.bf16 %v1733_v53  ;;  %v1200_v4 = vunpack.c.h.bf16 %v1733_v53  ;;  %v1740_v54 = vld [vmem:[%s1903_s18 + $0xa0] sm:$0xff]  }
  0x2b   : > { %1792 = vst [vmem:[%s1942_s25 + $0x48] sm:$0xff] %v1449_v59   ;;  %v459_v5 = vmul.f32 %v1908_v0, %v1196_v61  ;;  %v590_v7 = vadd.f32 %v1916_v6, %v458_v62  ;;  %v1203_v8 = vunpack.c.l.bf16 %v1734_v58  ;;  %v1204_v9 = vunpack.c.h.bf16 %v1734_v58 }
  0x2c   : > { %1793 = vst [vmem:[%s1942_s25 + $0x50] sm:$0xff] %v1454_v1   ;;  %v1459_v10 = vpack.c.bf16 %v717_v2, %v716_v60  ;;  %v460_v11 = vmul.f32 %v1908_v0, %v1199_v3  ;;  %v461_v12 = vmul.f32 %v1908_v0, %v1200_v4  ;;  %v1207_v13 = vunpack.c.l.bf16 %v1735_v63  ;;  %v1741_v4 = vld [vmem:[%s1903_s18 + $0xa8] sm:$0xff]  }
  0x2d   : > { %v591_v15 = vadd.f32 %v1916_v6, %v459_v5  ;;  %v718_v16 = vmax.f32 %v590_v7, 0.0  ;;  %v462_v17 = vmul.f32 %v1908_v0, %v1203_v8  ;;  %v463_v18 = vmul.f32 %v1908_v0, %v1204_v9 }
  0x2e   : > { %1794 = vst [vmem:[%s1942_s25 + $0x58] sm:$0xff] %v1459_v10   ;;  %v592_v19 = vadd.f32 %v1916_v6, %v460_v11  ;;  %v593_v20 = vadd.f32 %v1916_v6, %v461_v12  ;;  %v1208_v21 = vunpack.c.h.bf16 %v1735_v63  ;;  %v464_v22 = vmul.f32 %v1908_v0, %v1207_v13 }
  0x2f   : > { %v719_v23 = vmax.f32 %v591_v15, 0.0  ;;  %v594_v24 = vadd.f32 %v1916_v6, %v462_v17  ;;  %v595_v25 = vadd.f32 %v1916_v6, %v463_v18  ;;  %v1211_v26 = vunpack.c.l.bf16 %v1736_v14 }
  0x30   : > { %v720_v27 = vmax.f32 %v592_v19, 0.0  ;;  %v721_v28 = vmax.f32 %v593_v20, 0.0  ;;  %v465_v29 = vmul.f32 %v1908_v0, %v1208_v21  ;;  %v596_v30 = vadd.f32 %v1916_v6, %v464_v22  ;;  %v1743_v19 = vld [vmem:[%s1903_s18 + $0xb8] sm:$0xff]  }
  0x31   : > { %v1464_v32 = vpack.c.bf16 %v719_v23, %v718_v16  ;;  %v722_v33 = vmax.f32 %v594_v24, 0.0  ;;  %v723_v34 = vmax.f32 %v595_v25, 0.0  ;;  %v1212_v35 = vunpack.c.h.bf16 %v1736_v14  ;;  %v1742_v14 = vld [vmem:[%s1903_s18 + $0xb0] sm:$0xff]  }
  0x32   : > { %v1469_v37 = vpack.c.bf16 %v721_v28, %v720_v27  ;;  %v597_v38 = vadd.f32 %v1916_v6, %v465_v29  ;;  %v724_v39 = vmax.f32 %v596_v30, 0.0  ;;  %v466_v40 = vmul.f32 %v1908_v0, %v1211_v26 }
  0x33   : > { %1795 = vst [vmem:[%s1942_s25 + $0x60] sm:$0xff] %v1464_v32   ;;  %v1474_v42 = vpack.c.bf16 %v723_v34, %v722_v33  ;;  %v467_v43 = vmul.f32 %v1908_v0, %v1212_v35  ;;  %v1215_v44 = vunpack.c.l.bf16 %v1737_v31  ;;  %v1216_v45 = vunpack.c.h.bf16 %v1737_v31  ;;  %v1744_v32 = vld [vmem:[%s1903_s18 + $0xc0] sm:$0xff]  }
  0x34   : > { %1796 = vst [vmem:[%s1942_s25 + $0x68] sm:$0xff] %v1469_v37   ;;  %v725_v46 = vmax.f32 %v597_v38, 0.0  ;;  %v598_v47 = vadd.f32 %v1916_v6, %v466_v40  ;;  %v1219_v48 = vunpack.c.l.bf16 %v1738_v36  ;;  %v1220_v49 = vunpack.c.h.bf16 %v1738_v36 }
  0x35   : > { %1797 = vst [vmem:[%s1942_s25 + $0x70] sm:$0xff] %v1474_v42   ;;  %v599_v50 = vadd.f32 %v1916_v6, %v467_v43  ;;  %v468_v51 = vmul.f32 %v1908_v0, %v1215_v44  ;;  %v469_v52 = vmul.f32 %v1908_v0, %v1216_v45  ;;  %v1223_v53 = vunpack.c.l.bf16 %v1739_v41  ;;  %v1745_v45 = vld [vmem:[%s1903_s18 + $0xc8] sm:$0xff]  }
  0x36   : > { %v1479_v55 = vpack.c.bf16 %v725_v46, %v724_v39  ;;  %v726_v56 = vmax.f32 %v598_v47, 0.0  ;;  %v470_v57 = vmul.f32 %v1908_v0, %v1219_v48  ;;  %v471_v58 = vmul.f32 %v1908_v0, %v1220_v49 }
  0x37   : > { %v727_v59 = vmax.f32 %v599_v50, 0.0  ;;  %v600_v60 = vadd.f32 %v1916_v6, %v468_v51  ;;  %v601_v61 = vadd.f32 %v1916_v6, %v469_v52  ;;  %v1224_v62 = vunpack.c.h.bf16 %v1739_v41 }
  0x38   : > { %1798 = vst [vmem:[%s1942_s25 + $0x78] sm:$0xff] %v1479_v55   ;;  %v602_v63 = vadd.f32 %v1916_v6, %v470_v57  ;;  %v603_v1 = vadd.f32 %v1916_v6, %v471_v58  ;;  %v472_v2 = vmul.f32 %v1908_v0, %v1223_v53  ;;  %v1227_v3 = vunpack.c.l.bf16 %v1740_v54 }
  0x39   : > { %v1484_v5 = vpack.c.bf16 %v727_v59, %v726_v56  ;;  %v728_v7 = vmax.f32 %v600_v60, 0.0  ;;  %v729_v8 = vmax.f32 %v601_v61, 0.0  ;;  %v473_v9 = vmul.f32 %v1908_v0, %v1224_v62 }
  0x3a   : > { %v730_v10 = vmax.f32 %v602_v63, 0.0  ;;  %v731_v11 = vmax.f32 %v603_v1, 0.0  ;;  %v604_v12 = vadd.f32 %v1916_v6, %v472_v2  ;;  %v1228_v13 = vunpack.c.h.bf16 %v1740_v54  ;;  %v1746_v54 = vld [vmem:[%s1903_s18 + $0xd0] sm:$0xff]   ;;  %v1747_v63 = vld [vmem:[%s1903_s18 + $0xd8] sm:$0xff]  }
  0x3b   : > { %1799 = vst [vmem:[%s1942_s25 + $0x80] sm:$0xff] %v1484_v5   ;;  %v1489_v15 = vpack.c.bf16 %v729_v8, %v728_v7  ;;  %v605_v16 = vadd.f32 %v1916_v6, %v473_v9  ;;  %v474_v17 = vmul.f32 %v1908_v0, %v1227_v3  ;;  %v1231_v18 = vunpack.c.l.bf16 %v1741_v4 }
  0x3c   : > { %v1494_v20 = vpack.c.bf16 %v731_v11, %v730_v10  ;;  %v732_v21 = vmax.f32 %v604_v12, 0.0  ;;  %v475_v22 = vmul.f32 %v1908_v0, %v1228_v13  ;;  %v1232_v23 = vunpack.c.h.bf16 %v1741_v4  ;;  %v1748_v10 = vld [vmem:[%s1903_s18 + $0xe0] sm:$0xff]  }
  0x3d   : > { %1800 = vst [vmem:[%s1942_s25 + $0x88] sm:$0xff] %v1489_v15   ;;  %v733_v24 = vmax.f32 %v605_v16, 0.0  ;;  %v606_v25 = vadd.f32 %v1916_v6, %v474_v17  ;;  %v476_v26 = vmul.f32 %v1908_v0, %v1231_v18  ;;  %v1235_v27 = vunpack.c.l.bf16 %v1742_v14 }
  0x3e   : > { %1801 = vst [vmem:[%s1942_s25 + $0x90] sm:$0xff] %v1494_v20   ;;  %v607_v28 = vadd.f32 %v1916_v6, %v475_v22  ;;  %v477_v29 = vmul.f32 %v1908_v0, %v1232_v23  ;;  %v1236_v30 = vunpack.c.h.bf16 %v1742_v14  ;;  %v1239_v31 = vunpack.c.l.bf16 %v1743_v19  ;;  %v1749_v23 = vld [vmem:[%s1903_s18 + $0xe8] sm:$0xff]  }
  0x3f   : > { %v1499_v33 = vpack.c.bf16 %v733_v24, %v732_v21  ;;  %v734_v34 = vmax.f32 %v606_v25, 0.0  ;;  %v608_v35 = vadd.f32 %v1916_v6, %v476_v26  ;;  %v478_v36 = vmul.f32 %v1908_v0, %v1235_v27 }
  0x40   : > { %v735_v37 = vmax.f32 %v607_v28, 0.0  ;;  %v609_v38 = vadd.f32 %v1916_v6, %v477_v29  ;;  %v479_v39 = vmul.f32 %v1908_v0, %v1236_v30  ;;  %v1240_v40 = vunpack.c.h.bf16 %v1743_v19 }
  0x41   : > { %1802 = vst [vmem:[%s1942_s25 + $0x98] sm:$0xff] %v1499_v33   ;;  %v736_v41 = vmax.f32 %v608_v35, 0.0  ;;  %v610_v42 = vadd.f32 %v1916_v6, %v478_v36  ;;  %v480_v43 = vmul.f32 %v1908_v0, %v1239_v31  ;;  %v1243_v44 = vunpack.c.l.bf16 %v1744_v32 }
  0x42   : > { %v1504_v46 = vpack.c.bf16 %v735_v37, %v734_v34  ;;  %v737_v47 = vmax.f32 %v609_v38, 0.0  ;;  %v611_v48 = vadd.f32 %v1916_v6, %v479_v39  ;;  %v481_v49 = vmul.f32 %v1908_v0, %v1240_v40 }
  0x43   : > { %v738_v50 = vmax.f32 %v610_v42, 0.0  ;;  %v612_v51 = vadd.f32 %v1916_v6, %v480_v43  ;;  %v1244_v52 = vunpack.c.h.bf16 %v1744_v32  ;;  %v482_v53 = vmul.f32 %v1908_v0, %v1243_v44  ;;  %v1750_v32 = vld [vmem:[%s1903_s18 + $0xf0] sm:$0xff]  }
  0x44   : > { %1803 = vst [vmem:[%s1942_s25 + $0xa0] sm:$0xff] %v1504_v46   ;;  %v1509_v55 = vpack.c.bf16 %v737_v47, %v736_v41  ;;  %v739_v56 = vmax.f32 %v611_v48, 0.0  ;;  %v613_v57 = vadd.f32 %v1916_v6, %v481_v49  ;;  %v1247_v58 = vunpack.c.l.bf16 %v1745_v45  ;;  %v1751_v41 = vld [vmem:[%s1903_s18 + $0xf8] sm:$0xff]  }
  0x45   : > { %v740_v59 = vmax.f32 %v612_v51, 0.0  ;;  %v483_v60 = vmul.f32 %v1908_v0, %v1244_v52  ;;  %v614_v61 = vadd.f32 %v1916_v6, %v482_v53  ;;  %v1248_v62 = vunpack.c.h.bf16 %v1745_v45 }
  0x46   : > { %1804 = vst [vmem:[%s1942_s25 + $0xa8] sm:$0xff] %v1509_v55   ;;  %v1514_v1 = vpack.c.bf16 %v739_v56, %v738_v50  ;;  %v741_v2 = vmax.f32 %v613_v57, 0.0  ;;  %v484_v3 = vmul.f32 %v1908_v0, %v1247_v58  ;;  %v1251_v4 = vunpack.c.l.bf16 %v1746_v54  ;;  %v1752_v50 = vld [vmem:[%s1903_s18 + $0x100] sm:$0xff]  }
  0x47   : > { %v615_v5 = vadd.f32 %v1916_v6, %v483_v60  ;;  %v742_v7 = vmax.f32 %v614_v61, 0.0  ;;  %v485_v8 = vmul.f32 %v1908_v0, %v1248_v62  ;;  %v1252_v9 = vunpack.c.h.bf16 %v1746_v54 }
  0x48   : > { %1805 = vst [vmem:[%s1942_s25 + $0xb0] sm:$0xff] %v1514_v1   ;;  %v1519_v11 = vpack.c.bf16 %v741_v2, %v740_v59  ;;  %v616_v12 = vadd.f32 %v1916_v6, %v484_v3  ;;  %v486_v13 = vmul.f32 %v1908_v0, %v1251_v4  ;;  %v1255_v14 = vunpack.c.l.bf16 %v1747_v63 }
  0x49   : > { %v743_v15 = vmax.f32 %v615_v5, 0.0  ;;  %v617_v16 = vadd.f32 %v1916_v6, %v485_v8  ;;  %v487_v17 = vmul.f32 %v1908_v0, %v1252_v9  ;;  %v1256_v18 = vunpack.c.h.bf16 %v1747_v63  ;;  %v1753_v63 = vld [vmem:[%s1903_s18 + $0x108] sm:$0xff]  }
  0x4a   : > { %1806 = vst [vmem:[%s1942_s25 + $0xb8] sm:$0xff] %v1519_v11   ;;  %v744_v19 = vmax.f32 %v616_v12, 0.0  ;;  %v618_v20 = vadd.f32 %v1916_v6, %v486_v13  ;;  %v488_v21 = vmul.f32 %v1908_v0, %v1255_v14  ;;  %v1259_v22 = vunpack.c.l.bf16 %v1748_v10 }
  0x4b   : > { %v1524_v24 = vpack.c.bf16 %v743_v15, %v742_v7  ;;  %v745_v25 = vmax.f32 %v617_v16, 0.0  ;;  %v619_v26 = vadd.f32 %v1916_v6, %v487_v17  ;;  %v489_v27 = vmul.f32 %v1908_v0, %v1256_v18 }
  0x4c   : > { %v746_v28 = vmax.f32 %v618_v20, 0.0  ;;  %v620_v29 = vadd.f32 %v1916_v6, %v488_v21  ;;  %v1260_v30 = vunpack.c.h.bf16 %v1748_v10  ;;  %v490_v31 = vmul.f32 %v1908_v0, %v1259_v22  ;;  %v1754_v10 = vld [vmem:[%s1903_s18 + $0x110] sm:$0xff]  }
  0x4d   : > { %1807 = vst [vmem:[%s1942_s25 + $0xc0] sm:$0xff] %v1524_v24   ;;  %v1529_v33 = vpack.c.bf16 %v745_v25, %v744_v19  ;;  %v747_v34 = vmax.f32 %v619_v26, 0.0  ;;  %v621_v35 = vadd.f32 %v1916_v6, %v489_v27  ;;  %v1263_v36 = vunpack.c.l.bf16 %v1749_v23  ;;  %v1755_v19 = vld [vmem:[%s1903_s18 + $0x118] sm:$0xff]  }
  0x4e   : > { %v748_v37 = vmax.f32 %v620_v29, 0.0  ;;  %v491_v38 = vmul.f32 %v1908_v0, %v1260_v30  ;;  %v622_v39 = vadd.f32 %v1916_v6, %v490_v31  ;;  %v1264_v40 = vunpack.c.h.bf16 %v1749_v23 }
  0x4f   : > { %1808 = vst [vmem:[%s1942_s25 + $0xc8] sm:$0xff] %v1529_v33   ;;  %v1534_v42 = vpack.c.bf16 %v747_v34, %v746_v28  ;;  %v749_v43 = vmax.f32 %v621_v35, 0.0  ;;  %v492_v44 = vmul.f32 %v1908_v0, %v1263_v36  ;;  %v1267_v45 = vunpack.c.l.bf16 %v1750_v32  ;;  %v1756_v28 = vld [vmem:[%s1903_s18 + $0x120] sm:$0xff]  }
  0x50   : > { %v623_v46 = vadd.f32 %v1916_v6, %v491_v38  ;;  %v750_v47 = vmax.f32 %v622_v39, 0.0  ;;  %v493_v48 = vmul.f32 %v1908_v0, %v1264_v40  ;;  %v1268_v49 = vunpack.c.h.bf16 %v1750_v32 }
  0x51   : > { %1809 = vst [vmem:[%s1942_s25 + $0xd0] sm:$0xff] %v1534_v42   ;;  %v1539_v51 = vpack.c.bf16 %v749_v43, %v748_v37  ;;  %v624_v52 = vadd.f32 %v1916_v6, %v492_v44  ;;  %v494_v53 = vmul.f32 %v1908_v0, %v1267_v45  ;;  %v1271_v54 = vunpack.c.l.bf16 %v1751_v41 }
  0x52   : > { %v751_v55 = vmax.f32 %v623_v46, 0.0  ;;  %v625_v56 = vadd.f32 %v1916_v6, %v493_v48  ;;  %v495_v57 = vmul.f32 %v1908_v0, %v1268_v49  ;;  %v1272_v58 = vunpack.c.h.bf16 %v1751_v41  ;;  %v1757_v41 = vld [vmem:[%s1903_s18 + $0x128] sm:$0xff]  }
  0x53   : > { %1810 = vst [vmem:[%s1942_s25 + $0xd8] sm:$0xff] %v1539_v51   ;;  %v752_v59 = vmax.f32 %v624_v52, 0.0  ;;  %v626_v60 = vadd.f32 %v1916_v6, %v494_v53  ;;  %v496_v61 = vmul.f32 %v1908_v0, %v1271_v54  ;;  %v1275_v62 = vunpack.c.l.bf16 %v1752_v50 }
  0x54   : > { %v1544_v1 = vpack.c.bf16 %v751_v55, %v750_v47  ;;  %v753_v2 = vmax.f32 %v625_v56, 0.0  ;;  %v627_v3 = vadd.f32 %v1916_v6, %v495_v57  ;;  %v497_v4 = vmul.f32 %v1908_v0, %v1272_v58 }
  0x55   : > { %v754_v5 = vmax.f32 %v626_v60, 0.0  ;;  %v628_v7 = vadd.f32 %v1916_v6, %v496_v61  ;;  %v1276_v8 = vunpack.c.h.bf16 %v1752_v50  ;;  %v498_v9 = vmul.f32 %v1908_v0, %v1275_v62  ;;  %v1758_v50 = vld [vmem:[%s1903_s18 + $0x130] sm:$0xff]  }
  0x56   : > { %1811 = vst [vmem:[%s1942_s25 + $0xe0] sm:$0xff] %v1544_v1   ;;  %v1549_v11 = vpack.c.bf16 %v753_v2, %v752_v59  ;;  %v755_v12 = vmax.f32 %v627_v3, 0.0  ;;  %v629_v13 = vadd.f32 %v1916_v6, %v497_v4  ;;  %v1279_v14 = vunpack.c.l.bf16 %v1753_v63  ;;  %v1759_v59 = vld [vmem:[%s1903_s18 + $0x138] sm:$0xff]  }
  0x57   : > { %v756_v15 = vmax.f32 %v628_v7, 0.0  ;;  %v499_v16 = vmul.f32 %v1908_v0, %v1276_v8  ;;  %v630_v17 = vadd.f32 %v1916_v6, %v498_v9  ;;  %v1280_v18 = vunpack.c.h.bf16 %v1753_v63 }
  0x58   : > { %1812 = vst [vmem:[%s1942_s25 + $0xe8] sm:$0xff] %v1549_v11   ;;  %v1554_v20 = vpack.c.bf16 %v755_v12, %v754_v5  ;;  %v757_v21 = vmax.f32 %v629_v13, 0.0  ;;  %v500_v22 = vmul.f32 %v1908_v0, %v1279_v14  ;;  %v1283_v23 = vunpack.c.l.bf16 %v1754_v10  ;;  %v1760_v5 = vld [vmem:[%s1903_s18 + $0x140] sm:$0xff]  }
  0x59   : > { %v631_v24 = vadd.f32 %v1916_v6, %v499_v16  ;;  %v758_v25 = vmax.f32 %v630_v17, 0.0  ;;  %v501_v26 = vmul.f32 %v1908_v0, %v1280_v18  ;;  %v1284_v27 = vunpack.c.h.bf16 %v1754_v10 }
  0x5a   : > { %1813 = vst [vmem:[%s1942_s25 + $0xf0] sm:$0xff] %v1554_v20   ;;  %v1559_v29 = vpack.c.bf16 %v757_v21, %v756_v15  ;;  %v632_v30 = vadd.f32 %v1916_v6, %v500_v22  ;;  %v502_v31 = vmul.f32 %v1908_v0, %v1283_v23  ;;  %v1287_v32 = vunpack.c.l.bf16 %v1755_v19 }
  0x5b   : > { %v759_v33 = vmax.f32 %v631_v24, 0.0  ;;  %v633_v34 = vadd.f32 %v1916_v6, %v501_v26  ;;  %v503_v35 = vmul.f32 %v1908_v0, %v1284_v27  ;;  %v1288_v36 = vunpack.c.h.bf16 %v1755_v19  ;;  %v1761_v19 = vld [vmem:[%s1903_s18 + $0x148] sm:$0xff]  }
  0x5c   : > { %1814 = vst [vmem:[%s1942_s25 + $0xf8] sm:$0xff] %v1559_v29   ;;  %v760_v37 = vmax.f32 %v632_v30, 0.0  ;;  %v634_v38 = vadd.f32 %v1916_v6, %v502_v31  ;;  %v504_v39 = vmul.f32 %v1908_v0, %v1287_v32  ;;  %v1291_v40 = vunpack.c.l.bf16 %v1756_v28 }
  0x5d   : > { %v1564_v42 = vpack.c.bf16 %v759_v33, %v758_v25  ;;  %v761_v43 = vmax.f32 %v633_v34, 0.0  ;;  %v635_v44 = vadd.f32 %v1916_v6, %v503_v35  ;;  %v505_v45 = vmul.f32 %v1908_v0, %v1288_v36 }
  0x5e   : > { %v762_v46 = vmax.f32 %v634_v38, 0.0  ;;  %v636_v47 = vadd.f32 %v1916_v6, %v504_v39  ;;  %v1292_v48 = vunpack.c.h.bf16 %v1756_v28  ;;  %v506_v49 = vmul.f32 %v1908_v0, %v1291_v40  ;;  %v1762_v28 = vld [vmem:[%s1903_s18 + $0x150] sm:$0xff]  }
  0x5f   : > { %1815 = vst [vmem:[%s1942_s25 + $0x100] sm:$0xff] %v1564_v42   ;;  %v1569_v51 = vpack.c.bf16 %v761_v43, %v760_v37  ;;  %v763_v52 = vmax.f32 %v635_v44, 0.0  ;;  %v637_v53 = vadd.f32 %v1916_v6, %v505_v45  ;;  %v1295_v54 = vunpack.c.l.bf16 %v1757_v41  ;;  %v1763_v37 = vld [vmem:[%s1903_s18 + $0x158] sm:$0xff]  }
  0x60   : > { %v764_v55 = vmax.f32 %v636_v47, 0.0  ;;  %v507_v56 = vmul.f32 %v1908_v0, %v1292_v48  ;;  %v638_v57 = vadd.f32 %v1916_v6, %v506_v49  ;;  %v1296_v58 = vunpack.c.h.bf16 %v1757_v41 }
  0x61   : > { %1816 = vst [vmem:[%s1942_s25 + $0x108] sm:$0xff] %v1569_v51   ;;  %v1574_v60 = vpack.c.bf16 %v763_v52, %v762_v46  ;;  %v765_v61 = vmax.f32 %v637_v53, 0.0  ;;  %v508_v62 = vmul.f32 %v1908_v0, %v1295_v54  ;;  %v1299_v63 = vunpack.c.l.bf16 %v1758_v50  ;;  %v1764_v46 = vld [vmem:[%s1903_s18 + $0x160] sm:$0xff]  }
  0x62   : > { %v639_v1 = vadd.f32 %v1916_v6, %v507_v56  ;;  %v766_v2 = vmax.f32 %v638_v57, 0.0  ;;  %v509_v3 = vmul.f32 %v1908_v0, %v1296_v58  ;;  %v1300_v4 = vunpack.c.h.bf16 %v1758_v50 }
  0x63   : > { %1817 = vst [vmem:[%s1942_s25 + $0x110] sm:$0xff] %v1574_v60   ;;  %v1579_v7 = vpack.c.bf16 %v765_v61, %v764_v55  ;;  %v640_v8 = vadd.f32 %v1916_v6, %v508_v62  ;;  %v510_v9 = vmul.f32 %v1908_v0, %v1299_v63  ;;  %v1303_v10 = vunpack.c.l.bf16 %v1759_v59 }
  0x64   : > { %v767_v11 = vmax.f32 %v639_v1, 0.0  ;;  %v641_v12 = vadd.f32 %v1916_v6, %v509_v3  ;;  %v511_v13 = vmul.f32 %v1908_v0, %v1300_v4  ;;  %v1304_v14 = vunpack.c.h.bf16 %v1759_v59  ;;  %v1765_v59 = vld [vmem:[%s1903_s18 + $0x168] sm:$0xff]  }
  0x65   : > { %1818 = vst [vmem:[%s1942_s25 + $0x118] sm:$0xff] %v1579_v7   ;;  %v768_v15 = vmax.f32 %v640_v8, 0.0  ;;  %v642_v16 = vadd.f32 %v1916_v6, %v510_v9  ;;  %v512_v17 = vmul.f32 %v1908_v0, %v1303_v10  ;;  %v1307_v18 = vunpack.c.l.bf16 %v1760_v5 }
  0x66   : > { %v1584_v20 = vpack.c.bf16 %v767_v11, %v766_v2  ;;  %v769_v21 = vmax.f32 %v641_v12, 0.0  ;;  %v643_v22 = vadd.f32 %v1916_v6, %v511_v13  ;;  %v513_v23 = vmul.f32 %v1908_v0, %v1304_v14 }
  0x67   : > { %v770_v24 = vmax.f32 %v642_v16, 0.0  ;;  %v644_v25 = vadd.f32 %v1916_v6, %v512_v17  ;;  %v1308_v26 = vunpack.c.h.bf16 %v1760_v5  ;;  %v514_v27 = vmul.f32 %v1908_v0, %v1307_v18  ;;  %v1766_v5 = vld [vmem:[%s1903_s18 + $0x170] sm:$0xff]  }
  0x68   : > { %1819 = vst [vmem:[%s1942_s25 + $0x120] sm:$0xff] %v1584_v20   ;;  %v1589_v29 = vpack.c.bf16 %v769_v21, %v768_v15  ;;  %v771_v30 = vmax.f32 %v643_v22, 0.0  ;;  %v645_v31 = vadd.f32 %v1916_v6, %v513_v23  ;;  %v1311_v32 = vunpack.c.l.bf16 %v1761_v19  ;;  %v1767_v15 = vld [vmem:[%s1903_s18 + $0x178] sm:$0xff]  }
  0x69   : > { %v772_v33 = vmax.f32 %v644_v25, 0.0  ;;  %v515_v34 = vmul.f32 %v1908_v0, %v1308_v26  ;;  %v646_v35 = vadd.f32 %v1916_v6, %v514_v27  ;;  %v1312_v36 = vunpack.c.h.bf16 %v1761_v19 }
  0x6a   : > { %1820 = vst [vmem:[%s1942_s25 + $0x128] sm:$0xff] %v1589_v29   ;;  %v1594_v38 = vpack.c.bf16 %v771_v30, %v770_v24  ;;  %v773_v39 = vmax.f32 %v645_v31, 0.0  ;;  %v516_v40 = vmul.f32 %v1908_v0, %v1311_v32  ;;  %v1315_v41 = vunpack.c.l.bf16 %v1762_v28  ;;  %v1768_v24 = vld [vmem:[%s1903_s18 + $0x180] sm:$0xff]  }
  0x6b   : > { %v647_v42 = vadd.f32 %v1916_v6, %v515_v34  ;;  %v774_v43 = vmax.f32 %v646_v35, 0.0  ;;  %v517_v44 = vmul.f32 %v1908_v0, %v1312_v36  ;;  %v1316_v45 = vunpack.c.h.bf16 %v1762_v28  ;;  %v2205_v35 = vld [vmem:[%s2320_s1] ss:$0 sm:$0xff] }
  0x6c   : > { %1821 = vst [vmem:[%s1942_s25 + $0x130] sm:$0xff] %v1594_v38   ;;  %v1599_v47 = vpack.c.bf16 %v773_v39, %v772_v33  ;;  %v648_v48 = vadd.f32 %v1916_v6, %v516_v40  ;;  %v518_v49 = vmul.f32 %v1908_v0, %v1315_v41  ;;  %v1319_v50 = vunpack.c.l.bf16 %v1763_v37  ;;  %v1769_v38 = vld [vmem:[%s1903_s18 + $0x188] sm:$0xff]  }
  0x6d   : > { %v775_v51 = vmax.f32 %v647_v42, 0.0  ;;  %v649_v52 = vadd.f32 %v1916_v6, %v517_v44  ;;  %v519_v53 = vmul.f32 %v1908_v0, %v1316_v45  ;;  %v1320_v54 = vunpack.c.h.bf16 %v1763_v37 }
  0x6e   : > { %1822 = vst [vmem:[%s1942_s25 + $0x138] sm:$0xff] %v1599_v47   ;;  %v776_v55 = vmax.f32 %v648_v48, 0.0  ;;  %v650_v56 = vadd.f32 %v1916_v6, %v518_v49  ;;  %v520_v57 = vmul.f32 %v1908_v0, %v1319_v50  ;;  %v1323_v58 = vunpack.c.l.bf16 %v1764_v46 }
  0x6f   : > { %v1604_v60 = vpack.c.bf16 %v775_v51, %v774_v43  ;;  %v777_v61 = vmax.f32 %v649_v52, 0.0  ;;  %v651_v62 = vadd.f32 %v1916_v6, %v519_v53  ;;  %v521_v63 = vmul.f32 %v1908_v0, %v1320_v54 }
  0x70   : > { %v778_v1 = vmax.f32 %v650_v56, 0.0  ;;  %v652_v2 = vadd.f32 %v1916_v6, %v520_v57  ;;  %v1324_v3 = vunpack.c.h.bf16 %v1764_v46  ;;  %v522_v4 = vmul.f32 %v1908_v0, %v1323_v58  ;;  %v1770_v46 = vld [vmem:[%s1903_s18 + $0x190] sm:$0xff]  }
  0x71   : > { %1823 = vst [vmem:[%s1942_s25 + $0x140] sm:$0xff] %v1604_v60   ;;  %v1609_v7 = vpack.c.bf16 %v777_v61, %v776_v55  ;;  %v779_v8 = vmax.f32 %v651_v62, 0.0  ;;  %v653_v9 = vadd.f32 %v1916_v6, %v521_v63  ;;  %v1327_v10 = vunpack.c.l.bf16 %v1765_v59  ;;  %v1771_v55 = vld [vmem:[%s1903_s18 + $0x198] sm:$0xff]  }
  0x72   : > { %v780_v11 = vmax.f32 %v652_v2, 0.0  ;;  %v523_v12 = vmul.f32 %v1908_v0, %v1324_v3  ;;  %v654_v13 = vadd.f32 %v1916_v6, %v522_v4  ;;  %v1328_v14 = vunpack.c.h.bf16 %v1765_v59 }
  0x73   : > { %1824 = vst [vmem:[%s1942_s25 + $0x148] sm:$0xff] %v1609_v7   ;;  %v1614_v16 = vpack.c.bf16 %v779_v8, %v778_v1  ;;  %v781_v17 = vmax.f32 %v653_v9, 0.0  ;;  %v524_v18 = vmul.f32 %v1908_v0, %v1327_v10  ;;  %v1331_v19 = vunpack.c.l.bf16 %v1766_v5  ;;  %v1772_v1 = vld [vmem:[%s1903_s18 + $0x1a0] sm:$0xff]  }
  0x74   : > { %v655_v20 = vadd.f32 %v1916_v6, %v523_v12  ;;  %v782_v21 = vmax.f32 %v654_v13, 0.0  ;;  %v525_v22 = vmul.f32 %v1908_v0, %v1328_v14  ;;  %v1332_v23 = vunpack.c.h.bf16 %v1766_v5 }
  0x75   : > { %1825 = vst [vmem:[%s1942_s25 + $0x150] sm:$0xff] %v1614_v16   ;;  %v1619_v25 = vpack.c.bf16 %v781_v17, %v780_v11  ;;  %v656_v26 = vadd.f32 %v1916_v6, %v524_v18  ;;  %v526_v27 = vmul.f32 %v1908_v0, %v1331_v19  ;;  %v1335_v28 = vunpack.c.l.bf16 %v1767_v15 }
  0x76   : > { %v783_v29 = vmax.f32 %v655_v20, 0.0  ;;  %v657_v30 = vadd.f32 %v1916_v6, %v525_v22  ;;  %v527_v31 = vmul.f32 %v1908_v0, %v1332_v23  ;;  %v1336_v32 = vunpack.c.h.bf16 %v1767_v15  ;;  %v2212_v0 = vld [vmem:[%s2321_s2] ss:$0 sm:$0xff]  ;;  %v1773_v15 = vld [vmem:[%s1903_s18 + $0x1a8] sm:$0xff]  }
  0x77   : > { %1826 = vst [vmem:[%s1942_s25 + $0x158] sm:$0xff] %v1619_v25   ;;  %v784_v33 = vmax.f32 %v656_v26, 0.0  ;;  %v658_v34 = vadd.f32 %v1916_v6, %v526_v27  ;;  %v528_v36 = vmul.f32 %v2205_v35, %v1335_v28  ;;  %v1339_v37 = vunpack.c.l.bf16 %v1768_v24 }
  0x78   : > { %v1624_v39 = vpack.c.bf16 %v783_v29, %v782_v21  ;;  %v785_v40 = vmax.f32 %v657_v30, 0.0  ;;  %v659_v41 = vadd.f32 %v2212_v0, %v527_v31  ;;  %v529_v6 = vmul.f32 %v2205_v35, %v1336_v32 }
  0x79   : > { %v786_v42 = vmax.f32 %v658_v34, 0.0  ;;  %v660_v43 = vadd.f32 %v2212_v0, %v528_v36  ;;  %v1340_v44 = vunpack.c.h.bf16 %v1768_v24  ;;  %v530_v45 = vmul.f32 %v2205_v35, %v1339_v37  ;;  %v1774_v24 = vld [vmem:[%s1903_s18 + $0x1b0] sm:$0xff]  }
  0x7a   : > { %1827 = vst [vmem:[%s1942_s25 + $0x160] sm:$0xff] %v1624_v39   ;;  %v1629_v47 = vpack.c.bf16 %v785_v40, %v784_v33  ;;  %v787_v48 = vmax.f32 %v659_v41, 0.0  ;;  %v661_v49 = vadd.f32 %v2212_v0, %v529_v6  ;;  %v1343_v50 = vunpack.c.l.bf16 %v1769_v38  ;;  %v1775_v33 = vld [vmem:[%s1903_s18 + $0x1b8] sm:$0xff]  }
  0x7b   : > { %v788_v51 = vmax.f32 %v660_v43, 0.0  ;;  %v531_v52 = vmul.f32 %v2205_v35, %v1340_v44  ;;  %v662_v53 = vadd.f32 %v2212_v0, %v530_v45  ;;  %v1344_v54 = vunpack.c.h.bf16 %v1769_v38 }
  0x7c   : > { %1828 = vst [vmem:[%s1942_s25 + $0x168] sm:$0xff] %v1629_v47   ;;  %v1634_v56 = vpack.c.bf16 %v787_v48, %v786_v42  ;;  %v789_v57 = vmax.f32 %v661_v49, 0.0  ;;  %v532_v58 = vmul.f32 %v2205_v35, %v1343_v50  ;;  %v1347_v59 = vunpack.c.l.bf16 %v1770_v46  ;;  %v1776_v42 = vld [vmem:[%s1903_s18 + $0x1c0] sm:$0xff]  }
  0x7d   : > { %v663_v60 = vadd.f32 %v2212_v0, %v531_v52  ;;  %v790_v61 = vmax.f32 %v662_v53, 0.0  ;;  %v533_v62 = vmul.f32 %v2205_v35, %v1344_v54  ;;  %v1348_v63 = vunpack.c.h.bf16 %v1770_v46 }
  0x7e   : > { %1829 = vst [vmem:[%s1942_s25 + $0x170] sm:$0xff] %v1634_v56   ;;  %v1639_v2 = vpack.c.bf16 %v789_v57, %v788_v51  ;;  %v664_v3 = vadd.f32 %v2212_v0, %v532_v58  ;;  %v534_v4 = vmul.f32 %v2205_v35, %v1347_v59  ;;  %v1351_v5 = vunpack.c.l.bf16 %v1771_v55 }
  0x7f   : > { %v791_v7 = vmax.f32 %v663_v60, 0.0  ;;  %v665_v8 = vadd.f32 %v2212_v0, %v533_v62  ;;  %v535_v9 = vmul.f32 %v2205_v35, %v1348_v63  ;;  %v1352_v10 = vunpack.c.h.bf16 %v1771_v55  ;;  %v1777_v55 = vld [vmem:[%s1903_s18 + $0x1c8] sm:$0xff]  }
  0x80   : > { %1830 = vst [vmem:[%s1942_s25 + $0x178] sm:$0xff] %v1639_v2   ;;  %v792_v11 = vmax.f32 %v664_v3, 0.0  ;;  %v666_v12 = vadd.f32 %v2212_v0, %v534_v4  ;;  %v536_v13 = vmul.f32 %v2205_v35, %v1351_v5  ;;  %v1355_v14 = vunpack.c.l.bf16 %v1772_v1 }
  0x81   : > { %v1644_v16 = vpack.c.bf16 %v791_v7, %v790_v61  ;;  %v793_v17 = vmax.f32 %v665_v8, 0.0  ;;  %v667_v18 = vadd.f32 %v2212_v0, %v535_v9  ;;  %v537_v19 = vmul.f32 %v2205_v35, %v1352_v10 }
  0x82   : > { %v794_v20 = vmax.f32 %v666_v12, 0.0  ;;  %v668_v21 = vadd.f32 %v2212_v0, %v536_v13  ;;  %v1356_v22 = vunpack.c.h.bf16 %v1772_v1  ;;  %v538_v23 = vmul.f32 %v2205_v35, %v1355_v14  ;;  %v1778_v1 = vld [vmem:[%s1903_s18 + $0x1d0] sm:$0xff]  }
  0x83   : > { %1831 = vst [vmem:[%s1942_s25 + $0x180] sm:$0xff] %v1644_v16   ;;  %v1649_v25 = vpack.c.bf16 %v793_v17, %v792_v11  ;;  %v795_v26 = vmax.f32 %v667_v18, 0.0  ;;  %v669_v27 = vadd.f32 %v2212_v0, %v537_v19  ;;  %v1359_v28 = vunpack.c.l.bf16 %v1773_v15  ;;  %v1779_v11 = vld [vmem:[%s1903_s18 + $0x1d8] sm:$0xff]  }
  0x84   : > { %v796_v29 = vmax.f32 %v668_v21, 0.0  ;;  %v539_v30 = vmul.f32 %v2205_v35, %v1356_v22  ;;  %v670_v31 = vadd.f32 %v2212_v0, %v538_v23  ;;  %v1360_v32 = vunpack.c.h.bf16 %v1773_v15 }
  0x85   : > { %1832 = vst [vmem:[%s1942_s25 + $0x188] sm:$0xff] %v1649_v25   ;;  %v1654_v34 = vpack.c.bf16 %v795_v26, %v794_v20  ;;  %v797_v36 = vmax.f32 %v669_v27, 0.0  ;;  %v540_v37 = vmul.f32 %v2205_v35, %v1359_v28  ;;  %v1363_v38 = vunpack.c.l.bf16 %v1774_v24  ;;  %v1780_v20 = vld [vmem:[%s1903_s18 + $0x1e0] sm:$0xff]  }
  0x86   : > { %v671_v39 = vadd.f32 %v2212_v0, %v539_v30  ;;  %v798_v40 = vmax.f32 %v670_v31, 0.0  ;;  %v541_v41 = vmul.f32 %v2205_v35, %v1360_v32  ;;  %v1364_v6 = vunpack.c.h.bf16 %v1774_v24 }
  0x87   : > { %1833 = vst [vmem:[%s1942_s25 + $0x190] sm:$0xff] %v1654_v34   ;;  %v1659_v43 = vpack.c.bf16 %v797_v36, %v796_v29  ;;  %v672_v44 = vadd.f32 %v2212_v0, %v540_v37  ;;  %v542_v45 = vmul.f32 %v2205_v35, %v1363_v38  ;;  %v1367_v46 = vunpack.c.l.bf16 %v1775_v33 }
  0x88   : > { %v799_v47 = vmax.f32 %v671_v39, 0.0  ;;  %v673_v48 = vadd.f32 %v2212_v0, %v541_v41  ;;  %v543_v49 = vmul.f32 %v2205_v35, %v1364_v6  ;;  %v1368_v50 = vunpack.c.h.bf16 %v1775_v33  ;;  %v1781_v33 = vld [vmem:[%s1903_s18 + $0x1e8] sm:$0xff]  }
  0x89   : > { %1834 = vst [vmem:[%s1942_s25 + $0x198] sm:$0xff] %v1659_v43   ;;  %v800_v51 = vmax.f32 %v672_v44, 0.0  ;;  %v674_v52 = vadd.f32 %v2212_v0, %v542_v45  ;;  %v544_v53 = vmul.f32 %v2205_v35, %v1367_v46  ;;  %v1371_v54 = vunpack.c.l.bf16 %v1776_v42 }
  0x8a   : > { %v1664_v56 = vpack.c.bf16 %v799_v47, %v798_v40  ;;  %v801_v57 = vmax.f32 %v673_v48, 0.0  ;;  %v675_v58 = vadd.f32 %v2212_v0, %v543_v49  ;;  %v545_v59 = vmul.f32 %v2205_v35, %v1368_v50 }
  0x8b   : > { %v802_v60 = vmax.f32 %v674_v52, 0.0  ;;  %v676_v61 = vadd.f32 %v2212_v0, %v544_v53  ;;  %v1372_v62 = vunpack.c.h.bf16 %v1776_v42  ;;  %v546_v63 = vmul.f32 %v2205_v35, %v1371_v54  ;;  %v1782_v42 = vld [vmem:[%s1903_s18 + $0x1f0] sm:$0xff]  }
  0x8c   : > { %1835 = vst [vmem:[%s1942_s25 + $0x1a0] sm:$0xff] %v1664_v56   ;;  %v1669_v2 = vpack.c.bf16 %v801_v57, %v800_v51  ;;  %v803_v3 = vmax.f32 %v675_v58, 0.0  ;;  %v677_v4 = vadd.f32 %v2212_v0, %v545_v59  ;;  %v1375_v5 = vunpack.c.l.bf16 %v1777_v55  ;;  %v1783_v51 = vld [vmem:[%s1903_s18 + $0x1f8] sm:$0xff]  }
  0x8d   : > { %v804_v7 = vmax.f32 %v676_v61, 0.0  ;;  %v547_v8 = vmul.f32 %v2205_v35, %v1372_v62  ;;  %v678_v9 = vadd.f32 %v2212_v0, %v546_v63  ;;  %v1376_v10 = vunpack.c.h.bf16 %v1777_v55 }
  0x8e   : > { %1836 = vst [vmem:[%s1942_s25 + $0x1a8] sm:$0xff] %v1669_v2   ;;  %v1674_v12 = vpack.c.bf16 %v803_v3, %v802_v60  ;;  %v805_v13 = vmax.f32 %v677_v4, 0.0  ;;  %v548_v14 = vmul.f32 %v2205_v35, %v1375_v5  ;;  %v1379_v15 = vunpack.c.l.bf16 %v1778_v1 }
  0x8f   : > { %v679_v16 = vadd.f32 %v2212_v0, %v547_v8  ;;  %v806_v17 = vmax.f32 %v678_v9, 0.0  ;;  %v549_v18 = vmul.f32 %v2205_v35, %v1376_v10  ;;  %v1380_v19 = vunpack.c.h.bf16 %v1778_v1 }
  0x90   : > { %1837 = vst [vmem:[%s1942_s25 + $0x1b0] sm:$0xff] %v1674_v12   ;;  %v1679_v21 = vpack.c.bf16 %v805_v13, %v804_v7  ;;  %v680_v22 = vadd.f32 %v2212_v0, %v548_v14  ;;  %v550_v23 = vmul.f32 %v2205_v35, %v1379_v15  ;;  %v1383_v24 = vunpack.c.l.bf16 %v1779_v11 }
  0x91   : > { %v807_v25 = vmax.f32 %v679_v16, 0.0  ;;  %v681_v26 = vadd.f32 %v2212_v0, %v549_v18  ;;  %v551_v27 = vmul.f32 %v2205_v35, %v1380_v19  ;;  %v1384_v28 = vunpack.c.h.bf16 %v1779_v11 }
  0x92   : > { %1838 = vst [vmem:[%s1942_s25 + $0x1b8] sm:$0xff] %v1679_v21   ;;  %v808_v29 = vmax.f32 %v680_v22, 0.0  ;;  %v682_v30 = vadd.f32 %v2212_v0, %v550_v23  ;;  %v552_v31 = vmul.f32 %v2205_v35, %v1383_v24  ;;  %v1387_v32 = vunpack.c.l.bf16 %v1780_v20 }
  0x93   : > { %v1684_v34 = vpack.c.bf16 %v807_v25, %v806_v17  ;;  %v809_v36 = vmax.f32 %v681_v26, 0.0  ;;  %v683_v37 = vadd.f32 %v2212_v0, %v551_v27  ;;  %v553_v38 = vmul.f32 %v2205_v35, %v1384_v28 }
  0x94   : > { %v810_v39 = vmax.f32 %v682_v30, 0.0  ;;  %v684_v40 = vadd.f32 %v2212_v0, %v552_v31  ;;  %v1388_v41 = vunpack.c.h.bf16 %v1780_v20  ;;  %v554_v6 = vmul.f32 %v2205_v35, %v1387_v32 }
  0x95   : > { %1839 = vst [vmem:[%s1942_s25 + $0x1c0] sm:$0xff] %v1684_v34   ;;  %v1689_v43 = vpack.c.bf16 %v809_v36, %v808_v29  ;;  %v811_v44 = vmax.f32 %v683_v37, 0.0  ;;  %v685_v45 = vadd.f32 %v2212_v0, %v553_v38  ;;  %v1391_v46 = vunpack.c.l.bf16 %v1781_v33 }
  0x96   : > { %v812_v47 = vmax.f32 %v684_v40, 0.0  ;;  %v555_v48 = vmul.f32 %v2205_v35, %v1388_v41  ;;  %v686_v49 = vadd.f32 %v2212_v0, %v554_v6  ;;  %v1392_v50 = vunpack.c.h.bf16 %v1781_v33 }
  0x97   : > { %1840 = vst [vmem:[%s1942_s25 + $0x1c8] sm:$0xff] %v1689_v43   ;;  %v1694_v52 = vpack.c.bf16 %v811_v44, %v810_v39  ;;  %v813_v53 = vmax.f32 %v685_v45, 0.0  ;;  %v556_v54 = vmul.f32 %v2205_v35, %v1391_v46  ;;  %v1395_v55 = vunpack.c.l.bf16 %v1782_v42 }
  0x98   : > { %v687_v56 = vadd.f32 %v2212_v0, %v555_v48  ;;  %v814_v57 = vmax.f32 %v686_v49, 0.0  ;;  %v557_v58 = vmul.f32 %v2205_v35, %v1392_v50  ;;  %v1396_v59 = vunpack.c.h.bf16 %v1782_v42 }
  0x99   : > { %1841 = vst [vmem:[%s1942_s25 + $0x1d0] sm:$0xff] %v1694_v52   ;;  %v1699_v60 = vpack.c.bf16 %v813_v53, %v812_v47  ;;  %v688_v61 = vadd.f32 %v2212_v0, %v556_v54  ;;  %v558_v62 = vmul.f32 %v2205_v35, %v1395_v55  ;;  %v1399_v63 = vunpack.c.l.bf16 %v1783_v51 }
  0x9a   : > { %v815_v1 = vmax.f32 %v687_v56, 0.0  ;;  %v689_v2 = vadd.f32 %v2212_v0, %v557_v58  ;;  %v559_v3 = vmul.f32 %v2205_v35, %v1396_v59  ;;  %v1400_v4 = vunpack.c.h.bf16 %v1783_v51 }
  0x9b   : > { %1842 = vst [vmem:[%s1942_s25 + $0x1d8] sm:$0xff] %v1699_v60   ;;  %v816_v5 = vmax.f32 %v688_v61, 0.0  ;;  %v690_v7 = vadd.f32 %v2212_v0, %v558_v62  ;;  %v560_v8 = vmul.f32 %v2205_v35, %v1399_v63 }
  0x9c   : > { %v1704_v9 = vpack.c.bf16 %v815_v1, %v814_v57  ;;  %v817_v10 = vmax.f32 %v689_v2, 0.0  ;;  %v691_v11 = vadd.f32 %v2212_v0, %v559_v3  ;;  %v561_v12 = vmul.f32 %v2205_v35, %v1400_v4 }
  0x9d   : > { %v818_v13 = vmax.f32 %v690_v7, 0.0  ;;  %v692_v14 = vadd.f32 %v2212_v0, %v560_v8 }
  0x9e   : > { %1843 = vst [vmem:[%s1942_s25 + $0x1e0] sm:$0xff] %v1704_v9   ;;  %v1709_v15 = vpack.c.bf16 %v817_v10, %v816_v5  ;;  %v819_v16 = vmax.f32 %v691_v11, 0.0  ;;  %v693_v17 = vadd.f32 %v2212_v0, %v561_v12 }
  0x9f   : > { %v820_v18 = vmax.f32 %v692_v14, 0.0 }
  0xa0   : > { %1844 = vst [vmem:[%s1942_s25 + $0x1e8] sm:$0xff] %v1709_v15   ;;  %v1714_v19 = vpack.c.bf16 %v819_v16, %v818_v13  ;;  %v821_v20 = vmax.f32 %v693_v17, 0.0 }
  0xa2   : > { %1845 = vst [vmem:[%s1942_s25 + $0x1f0] sm:$0xff] %v1714_v19   ;;  %v1719_v21 = vpack.c.bf16 %v821_v20, %v820_v18 }
  0xa4   : > { %1846 = vst [vmem:[%s1942_s25 + $0x1f8] sm:$0xff] %v1719_v21  }
  0xa5 PF: > { %s13_s12 = sadd.s32 1, %s1865_s12  }
  0xa6   : > { %p10_p4 = scmp.ge.s32.totalorder %s13_s12, 4  }
  0xa8   :  { %12 = sbr.rel (!%p10_p4) target bundleno = 1 (0x1), region = 62 }

// kernel: discriminator_forward.12
= control target key start
LH: loop header
LB: loop body
LE: loop exit
PB: predicated region body
PF: predicated region fallthrough
CT: control target
= control target key end

     0   :  { %vm832_vm0 = vcmask 1040384   ;;  %s1785_s1 = inlined_call_operand.vmem [shape: bf16[128,128], index: 1, kind: input, shape index: {}]   ;;  %s1786_s0 = inlined_call_operand.vmem [shape: bf16[512,128], index: 0, kind: input, shape index: {}]   ;;  %s1787_s2 = inlined_call_operand.vmem [shape: bf16[512,128], index: 2, kind: output, shape index: {0}]   ;;  %s1788_s3 = inlined_call_operand.vmem [shape: f32[1,2,128], index: 3, kind: output, shape index: {1}]  }
   0x1   :  { %v1042_v0 = vld [vmem:[%s1785_s1 + $0x38] sm:$0xff]  ;;  %v1041_v1 = vld [vmem:[%s1785_s1 + $0x30] sm:$0xff]  ;;  %v1040_v2 = vld [vmem:[%s1785_s1 + $0x28] sm:$0xff] }
   0x2   :  { %333 = vmatpush.bf16.msra.mxu0 %v1042_v0  ;;  %1234 = vmatpush.bf16.msra.mxu1 %v1042_v0  ;;  %v1039_v3 = vld [vmem:[%s1785_s1 + $0x20] sm:$0xff]  ;;  %v1038_v4 = vld [vmem:[%s1785_s1 + $0x18] sm:$0xff]  ;;  %v1037_v5 = vld [vmem:[%s1785_s1 + $0x10] sm:$0xff] }
   0x3   :  { %1235 = vmatpush.bf16.msra.mxu2 %v1042_v0  ;;  %1236 = vmatpush.bf16.msra.mxu3 %v1042_v0  ;;  %v1036_v6 = vld [vmem:[%s1785_s1 + $0x8] sm:$0xff]  ;;  %v1035_v7 = vld [vmem:[%s1785_s1] sm:$0xff]  ;;  %v1005_v13 = vld [vmem:[%s1786_s0 + $0x10] sm:$0xff] }
   0x4   :  { %v1003_v8 = vld [vmem:[%s1786_s0] sm:$0xff]  ;;  %v1004_v10 = vld [vmem:[%s1786_s0 + $0x8] sm:$0xff]  ;;  %v1013_v14 = vld [vmem:[%s1786_s0 + $0x50] sm:$0xff] }
   0x5   :  { %v1011_v9 = vld [vmem:[%s1786_s0 + $0x40] sm:$0xff]  ;;  %v1012_v11 = vld [vmem:[%s1786_s0 + $0x48] sm:$0xff]  ;;  %v1006_v16 = vld [vmem:[%s1786_s0 + $0x18] sm:$0xff] }
   0x6   :  { %334 = vmatpush.bf16.msra.mxu0 %v1041_v1  ;;  %1237 = vmatpush.bf16.msra.mxu1 %v1041_v1  ;;  %v1019_v12 = vld [vmem:[%s1786_s0 + $0x80] sm:$0xff]  ;;  %v1020_v15 = vld [vmem:[%s1786_s0 + $0x88] sm:$0xff]  ;;  %v1014_v17 = vld [vmem:[%s1786_s0 + $0x58] sm:$0xff] }
   0x7   :  { %1238 = vmatpush.bf16.msra.mxu2 %v1041_v1  ;;  %1239 = vmatpush.bf16.msra.mxu3 %v1041_v1  ;;  %v1021_v18 = vld [vmem:[%s1786_s0 + $0x90] sm:$0xff]  ;;  %v1027_v19 = vld [vmem:[%s1786_s0 + $0xc0] sm:$0xff]  ;;  %v1022_v22 = vld [vmem:[%s1786_s0 + $0x98] sm:$0xff] }
   0x8   :  { %v1007_v20 = vld [vmem:[%s1786_s0 + $0x20] sm:$0xff]  ;;  %v1028_v23 = vld [vmem:[%s1786_s0 + $0xc8] sm:$0xff]  ;;  %v1029_v27 = vld [vmem:[%s1786_s0 + $0xd0] sm:$0xff] }
   0x9   :  { %v1015_v21 = vld [vmem:[%s1786_s0 + $0x60] sm:$0xff]  ;;  %v1008_v24 = vld [vmem:[%s1786_s0 + $0x28] sm:$0xff]  ;;  %v1009_v28 = vld [vmem:[%s1786_s0 + $0x30] sm:$0xff] }
   0xa   :  { %335 = vmatpush.bf16.msra.mxu0 %v1040_v2  ;;  %1240 = vmatpush.bf16.msra.mxu1 %v1040_v2  ;;  %v1016_v25 = vld [vmem:[%s1786_s0 + $0x68] sm:$0xff]  ;;  %v1023_v26 = vld [vmem:[%s1786_s0 + $0xa0] sm:$0xff]  ;;  %v1017_v29 = vld [vmem:[%s1786_s0 + $0x70] sm:$0xff] }
   0xb   :  { %1241 = vmatpush.bf16.msra.mxu2 %v1040_v2  ;;  %1242 = vmatpush.bf16.msra.mxu3 %v1040_v2  ;;  %v1024_v30 = vld [vmem:[%s1786_s0 + $0xa8] sm:$0xff]  ;;  %v1030_v31 = vld [vmem:[%s1786_s0 + $0xd8] sm:$0xff]  ;;  %v1025_v34 = vld [vmem:[%s1786_s0 + $0xb0] sm:$0xff] }
   0xc   :  { %v1010_v32 = vld [vmem:[%s1786_s0 + $0x38] sm:$0xff]  ;;  %v1031_v35 = vld [vmem:[%s1786_s0 + $0xe0] sm:$0xff]  ;;  %v1032_v39 = vld [vmem:[%s1786_s0 + $0xe8] sm:$0xff] }
   0xd   :  { %v1018_v33 = vld [vmem:[%s1786_s0 + $0x78] sm:$0xff]  ;;  %v1033_v53 = vld [vmem:[%s1786_s0 + $0xf0] sm:$0xff] }
   0xe   :  { %336 = vmatpush.bf16.msra.mxu0 %v1039_v3  ;;  %1243 = vmatpush.bf16.msra.mxu1 %v1039_v3  ;;  %v1026_v38 = vld [vmem:[%s1786_s0 + $0xb8] sm:$0xff] }
   0xf   :  { %1244 = vmatpush.bf16.msra.mxu2 %v1039_v3  ;;  %1245 = vmatpush.bf16.msra.mxu3 %v1039_v3 }
  0x12   :  { %337 = vmatpush.bf16.msra.mxu0 %v1038_v4  ;;  %1246 = vmatpush.bf16.msra.mxu1 %v1038_v4 }
  0x13   :  { %1247 = vmatpush.bf16.msra.mxu2 %v1038_v4  ;;  %1248 = vmatpush.bf16.msra.mxu3 %v1038_v4 }
  0x16   :  { %338 = vmatpush.bf16.msra.mxu0 %v1037_v5  ;;  %1249 = vmatpush.bf16.msra.mxu1 %v1037_v5 }
  0x17   :  { %1250 = vmatpush.bf16.msra.mxu2 %v1037_v5  ;;  %1251 = vmatpush.bf16.msra.mxu3 %v1037_v5  ;;  %v1034_v5 = vld [vmem:[%s1786_s0 + $0xf8] sm:$0xff] }
  0x1a   :  { %339 = vmatpush.bf16.msra.mxu0 %v1036_v6  ;;  %1252 = vmatpush.bf16.msra.mxu1 %v1036_v6 }
  0x1b   :  { %1253 = vmatpush.bf16.msra.mxu2 %v1036_v6  ;;  %1254 = vmatpush.bf16.msra.mxu3 %v1036_v6 }
  0x1e   :  { %340 = vmatpush.bf16.msra.mxu0 %v1035_v7  ;;  %1255 = vmatpush.bf16.msra.mxu1 %v1035_v7 }
  0x1f   :  { %1256 = vmatpush.bf16.msra.mxu2 %v1035_v7  ;;  %1257 = vmatpush.bf16.msra.mxu3 %v1035_v7 }
  0x21   :  { %341 = vmatmul.bf16.vlgmr.msra.gmra.mxu0 %v1003_v8  ;;  %381 = vmatmul.bf16.vlgmr.msra.gmra.mxu1 %v1011_v9 }
  0x22   :  { %421 = vmatmul.bf16.vlgmr.msra.gmra.mxu2 %v1019_v12  ;;  %461 = vmatmul.bf16.vlgmr.msra.gmra.mxu3 %v1027_v19 }
  0x31   :  { %346 = vmatmul.bf16.gmra.mxu0 %v1004_v10  ;;  %386 = vmatmul.bf16.gmra.mxu1 %v1012_v11 }
  0x32   :  { %426 = vmatmul.bf16.gmra.mxu2 %v1020_v15  ;;  %466 = vmatmul.bf16.gmra.mxu3 %v1028_v23 }
  0x41   :  { %351 = vmatmul.bf16.gmra.mxu0 %v1005_v13  ;;  %391 = vmatmul.bf16.gmra.mxu1 %v1013_v14 }
  0x42   :  { %431 = vmatmul.bf16.gmra.mxu2 %v1021_v18  ;;  %471 = vmatmul.bf16.gmra.mxu3 %v1029_v27 }
  0x51   :  { %356 = vmatmul.bf16.gmra.mxu0 %v1006_v16  ;;  %396 = vmatmul.bf16.gmra.mxu1 %v1014_v17 }
  0x52   :  { %436 = vmatmul.bf16.gmra.mxu2 %v1022_v22  ;;  %476 = vmatmul.bf16.gmra.mxu3 %v1030_v31 }
  0x61   :  { %361 = vmatmul.bf16.gmra.mxu0 %v1007_v20  ;;  %401 = vmatmul.bf16.gmra.mxu1 %v1015_v21 }
  0x62   :  { %441 = vmatmul.bf16.gmra.mxu2 %v1023_v26  ;;  %481 = vmatmul.bf16.gmra.mxu3 %v1031_v35 }
  0x71   :  { %366 = vmatmul.bf16.gmra.mxu0 %v1008_v24  ;;  %406 = vmatmul.bf16.gmra.mxu1 %v1016_v25 }
  0x72   :  { %446 = vmatmul.bf16.gmra.mxu2 %v1024_v30  ;;  %486 = vmatmul.bf16.gmra.mxu3 %v1032_v39 }
  0x81   :  { %371 = vmatmul.bf16.gmra.mxu0 %v1009_v28  ;;  %411 = vmatmul.bf16.gmra.mxu1 %v1017_v29 }
  0x82   :  { %451 = vmatmul.bf16.gmra.mxu2 %v1025_v34  ;;  %491 = vmatmul.bf16.gmra.mxu3 %v1033_v53 }
  0x91   :  { %376 = vmatmul.bf16.gmra.mxu0 %v1010_v32  ;;  %416 = vmatmul.bf16.gmra.mxu1 %v1018_v33 }
  0x92   :  { %456 = vmatmul.bf16.gmra.mxu2 %v1026_v38  ;;  %496 = vmatmul.bf16.gmra.mxu3 %v1034_v5 }
  0x9e   :  { %v342_v36 = vpop.f32.mrf.mxu0  ;;  %v1386_v37 = vpop.f32.mrf.mxu1 }
  0x9f   :  { %v699_v40 = vmul.f32 %v342_v36, %v342_v36 }
  0xa5   :  { %v1413_v60 = vpop.f32.mrf.mxu2  ;;  %v1464_v20 = vpop.f32.mrf.mxu3 }
  0xa6   :  { %v344_v41 = vpop.f32.mrf.mxu0  ;;  %v1394_v42 = vpop.f32.mrf.mxu1 }
  0xa7   :  { %v1046_v43 = vpack.c.bf16 %v344_v41, %v342_v36  ;;  %v630_v44 = vadd.f32 %v344_v41, %v342_v36  ;;  %v700_v45 = vmul.f32 %v344_v41, %v344_v41  ;;  %v1086_v46 = vpack.c.bf16 %v1394_v42, %v1386_v37 }
  0xa9   :  { %1047 = vst [vmem:[%s1787_s2] sm:$0xff] %v1046_v43   ;;  %v763_v47 = vadd.f32 %v700_v45, %v699_v40 }
  0xaa   :  { %1210 = vst [vmem:[%s1787_s2 + $0x40] sm:$0xff] %v1086_v46  }
  0xad   :  { %v1425_v2 = vpop.f32.mrf.mxu2  ;;  %v1476_v24 = vpop.f32.mrf.mxu3 }
  0xae   :  { %v347_v48 = vpop.f32.mrf.mxu0  ;;  %v1404_v49 = vpop.f32.mrf.mxu1  ;;  %v1126_v3 = vpack.c.bf16 %v1425_v2, %v1413_v60  ;;  %v1166_v26 = vpack.c.bf16 %v1476_v24, %v1464_v20 }
  0xaf   :  { %v631_v50 = vadd.f32 %v630_v44, %v347_v48  ;;  %v701_v51 = vmul.f32 %v347_v48, %v347_v48 }
  0xb0   :  { %1218 = vst [vmem:[%s1787_s2 + $0x80] sm:$0xff] %v1126_v3  }
  0xb1   :  { %v764_v52 = vadd.f32 %v763_v47, %v701_v51  ;;  %1226 = vst [vmem:[%s1787_s2 + $0xc0] sm:$0xff] %v1166_v26  }
  0xb5   :  { %v1441_v10 = vpop.f32.mrf.mxu2  ;;  %v1494_v32 = vpop.f32.mrf.mxu3 }
  0xb6   :  { %v349_v54 = vpop.f32.mrf.mxu0  ;;  %v1409_v55 = vpop.f32.mrf.mxu1 }
  0xb7   :  { %v1051_v56 = vpack.c.bf16 %v349_v54, %v347_v48  ;;  %v632_v57 = vadd.f32 %v631_v50, %v349_v54  ;;  %v702_v58 = vmul.f32 %v349_v54, %v349_v54  ;;  %v1091_v59 = vpack.c.bf16 %v1409_v55, %v1404_v49 }
  0xb9   :  { %1203 = vst [vmem:[%s1787_s2 + $0x8] sm:$0xff] %v1051_v56   ;;  %v765_v61 = vadd.f32 %v764_v52, %v702_v58 }
  0xba   :  { %1211 = vst [vmem:[%s1787_s2 + $0x48] sm:$0xff] %v1091_v59  }
  0xbd   :  { %v1451_v13 = vpop.f32.mrf.mxu2  ;;  %v1506_v36 = vpop.f32.mrf.mxu3 }
  0xbe   :  { %v352_v62 = vpop.f32.mrf.mxu0  ;;  %v1421_v63 = vpop.f32.mrf.mxu1  ;;  %v1131_v14 = vpack.c.bf16 %v1451_v13, %v1441_v10  ;;  %v1171_v39 = vpack.c.bf16 %v1506_v36, %v1494_v32 }
  0xbf   :  { %v1423_v0 = vadd.f32 %v632_v57, %v352_v62  ;;  %v703_v1 = vmul.f32 %v352_v62, %v352_v62 }
  0xc0   :  { %1219 = vst [vmem:[%s1787_s2 + $0x88] sm:$0xff] %v1131_v14  }
  0xc1   :  { %v1429_v4 = vadd.f32 %v765_v61, %v703_v1  ;;  %1227 = vst [vmem:[%s1787_s2 + $0xc8] sm:$0xff] %v1171_v39  }
  0xc5   :  { %v1462_v19 = vpop.f32.mrf.mxu2  ;;  %v1524_v46 = vpop.f32.mrf.mxu3 }
  0xc6   :  { %v354_v6 = vpop.f32.mrf.mxu0  ;;  %v1437_v7 = vpop.f32.mrf.mxu1 }
  0xc7   :  { %v1056_v8 = vpack.c.bf16 %v354_v6, %v352_v62  ;;  %v1096_v9 = vpack.c.bf16 %v1437_v7, %v1421_v63  ;;  %v704_v52 = vmul.f32 %v354_v6, %v354_v6  ;;  %v634_v57 = vadd.f32 %v1423_v0, %v354_v6 }
  0xc9   :  { %1204 = vst [vmem:[%s1787_s2 + $0x10] sm:$0xff] %v1056_v8   ;;  %v767_v58 = vadd.f32 %v1429_v4, %v704_v52 }
  0xca   :  { %1212 = vst [vmem:[%s1787_s2 + $0x50] sm:$0xff] %v1096_v9  }
  0xcd   :  { %v1474_v23 = vpop.f32.mrf.mxu2  ;;  %v1536_v51 = vpop.f32.mrf.mxu3 }
  0xce   :  { %v357_v11 = vpop.f32.mrf.mxu0  ;;  %v1449_v12 = vpop.f32.mrf.mxu1  ;;  %v1136_v25 = vpack.c.bf16 %v1474_v23, %v1462_v19  ;;  %v1176_v54 = vpack.c.bf16 %v1536_v51, %v1524_v46 }
  0xcf   :  { %v705_v56 = vmul.f32 %v357_v11, %v357_v11  ;;  %v635_v61 = vadd.f32 %v634_v57, %v357_v11 }
  0xd0   :  { %1220 = vst [vmem:[%s1787_s2 + $0x90] sm:$0xff] %v1136_v25  }
  0xd1   :  { %1228 = vst [vmem:[%s1787_s2 + $0xd0] sm:$0xff] %v1176_v54   ;;  %v768_v62 = vadd.f32 %v767_v58, %v705_v56 }
  0xd5   :  { %v1492_v31 = vpop.f32.mrf.mxu2  ;;  %v1556_v0 = vpop.f32.mrf.mxu3 }
  0xd6   :  { %v359_v15 = vpop.f32.mrf.mxu0  ;;  %v1458_v16 = vpop.f32.mrf.mxu1 }
  0xd7   :  { %v1061_v17 = vpack.c.bf16 %v359_v15, %v357_v11  ;;  %v1101_v18 = vpack.c.bf16 %v1458_v16, %v1449_v12  ;;  %v706_v59 = vmul.f32 %v359_v15, %v359_v15  ;;  %v636_v8 = vadd.f32 %v635_v61, %v359_v15 }
  0xd9   :  { %1205 = vst [vmem:[%s1787_s2 + $0x18] sm:$0xff] %v1061_v17   ;;  %v769_v6 = vadd.f32 %v768_v62, %v706_v59 }
  0xda   :  { %1213 = vst [vmem:[%s1787_s2 + $0x58] sm:$0xff] %v1101_v18  }
  0xdd   :  { %v1504_v35 = vpop.f32.mrf.mxu2 }
  0xde   :  { %v362_v21 = vpop.f32.mrf.mxu0  ;;  %v1472_v22 = vpop.f32.mrf.mxu1  ;;  %v1141_v38 = vpack.c.bf16 %v1504_v35, %v1492_v31 }
  0xdf   :  { %v707_v1 = vmul.f32 %v362_v21, %v362_v21  ;;  %v637_v25 = vadd.f32 %v636_v8, %v362_v21 }
  0xe0   :  { %1221 = vst [vmem:[%s1787_s2 + $0x98] sm:$0xff] %v1141_v38  }
  0xe1   :  { %v770_v4 = vadd.f32 %v769_v6, %v707_v1 }
  0xe5   :  { %v1522_v45 = vpop.f32.mrf.mxu2 }
  0xe6   :  { %v364_v27 = vpop.f32.mrf.mxu0  ;;  %v1488_v28 = vpop.f32.mrf.mxu1 }
  0xe7   :  { %v1066_v29 = vpack.c.bf16 %v364_v27, %v362_v21  ;;  %v1106_v30 = vpack.c.bf16 %v1488_v28, %v1472_v22  ;;  %v708_v18 = vmul.f32 %v364_v27, %v364_v27  ;;  %v638_v15 = vadd.f32 %v637_v25, %v364_v27 }
  0xe9   :  { %1206 = vst [vmem:[%s1787_s2 + $0x20] sm:$0xff] %v1066_v29   ;;  %v771_v26 = vadd.f32 %v770_v4, %v708_v18 }
  0xea   :  { %1214 = vst [vmem:[%s1787_s2 + $0x60] sm:$0xff] %v1106_v30  }
  0xed   :  { %v1534_v50 = vpop.f32.mrf.mxu2 }
  0xee   :  { %v367_v33 = vpop.f32.mrf.mxu0  ;;  %v1502_v34 = vpop.f32.mrf.mxu1  ;;  %v1146_v53 = vpack.c.bf16 %v1534_v50, %v1522_v45 }
  0xef   :  { %v709_v11 = vmul.f32 %v367_v33, %v367_v33  ;;  %v639_v30 = vadd.f32 %v638_v15, %v367_v33 }
  0xf0   :  { %1222 = vst [vmem:[%s1787_s2 + $0xa0] sm:$0xff] %v1146_v53   ;;  %v1568_v53 = vpop.f32.mrf.mxu3 }
  0xf1   :  { %v772_v38 = vadd.f32 %v771_v26, %v709_v11  ;;  %v1181_v27 = vpack.c.bf16 %v1568_v53, %v1556_v0  ;;  %v716_v26 = vmul.f32 %v1394_v42, %v1394_v42 }
  0xf3   :  { %1229 = vst [vmem:[%s1787_s2 + $0xd8] sm:$0xff] %v1181_v27  }
  0xf5   :  { %v1554_v17 = vpop.f32.mrf.mxu2 }
  0xf6   :  { %v369_v40 = vpop.f32.mrf.mxu0  ;;  %v1518_v41 = vpop.f32.mrf.mxu1 }
  0xf7   :  { %v1071_v43 = vpack.c.bf16 %v369_v40, %v367_v33  ;;  %v1111_v44 = vpack.c.bf16 %v1518_v41, %v1502_v34  ;;  %v710_v29 = vmul.f32 %v369_v40, %v369_v40  ;;  %v640_v21 = vadd.f32 %v639_v30, %v369_v40 }
  0xf8   :  { %v1586_v4 = vpop.f32.mrf.mxu3 }
  0xf9   :  { %1207 = vst [vmem:[%s1787_s2 + $0x28] sm:$0xff] %v1071_v43   ;;  %v773_v54 = vadd.f32 %v772_v38, %v710_v29  ;;  %v717_v38 = vmul.f32 %v1404_v49, %v1404_v49 }
  0xfa   :  { %1215 = vst [vmem:[%s1787_s2 + $0x68] sm:$0xff] %v1111_v44  }
  0xfd   :  { %v1566_v52 = vpop.f32.mrf.mxu2 }
  0xfe   :  { %v372_v47 = vpop.f32.mrf.mxu0  ;;  %v1532_v48 = vpop.f32.mrf.mxu1  ;;  %v1151_v57 = vpack.c.bf16 %v1566_v52, %v1554_v17 }
  0xff   :  { %v711_v39 = vmul.f32 %v372_v47, %v372_v47  ;;  %v641_v58 = vadd.f32 %v640_v21, %v372_v47 }
 0x100   :  { %1223 = vst [vmem:[%s1787_s2 + $0xa8] sm:$0xff] %v1151_v57   ;;  %v1608_v57 = vpop.f32.mrf.mxu3 }
 0x101   :  { %v774_v33 = vadd.f32 %v773_v54, %v711_v39  ;;  %v1186_v27 = vpack.c.bf16 %v1608_v57, %v1586_v4 }
 0x103   :  { %1230 = vst [vmem:[%s1787_s2 + $0xe0] sm:$0xff] %v1186_v27  }
 0x105   :  { %v1584_v25 = vpop.f32.mrf.mxu2 }
 0x106   :  { %v374_v3 = vpop.f32.mrf.mxu0  ;;  %v1550_v5 = vpop.f32.mrf.mxu1 }
 0x107   :  { %v1076_v9 = vpack.c.bf16 %v374_v3, %v372_v47  ;;  %v1116_v14 = vpack.c.bf16 %v1550_v5, %v1532_v48  ;;  %v712_v56 = vmul.f32 %v374_v3, %v374_v3  ;;  %v642_v40 = vadd.f32 %v641_v58, %v374_v3 }
 0x108   :  { %v715_v3 = vmul.f32 %v1386_v37, %v1386_v37  ;;  %v728_v27 = vmul.f32 %v1550_v5, %v1550_v5 }
 0x109   :  { %1208 = vst [vmem:[%s1787_s2 + $0x30] sm:$0xff] %v1076_v9   ;;  %v775_v61 = vadd.f32 %v774_v33, %v712_v56 }
 0x10a   :  { %1216 = vst [vmem:[%s1787_s2 + $0x70] sm:$0xff] %v1116_v14  }
 0x10d   :  { %v1606_v56 = vpop.f32.mrf.mxu2 }
 0x10e   :  { %v377_v43 = vpop.f32.mrf.mxu0  ;;  %v1564_v44 = vpop.f32.mrf.mxu1 }
 0x10f   :  { %v713_v59 = vmul.f32 %v377_v43, %v377_v43  ;;  %v643_v62 = vadd.f32 %v642_v40, %v377_v43 }
 0x111   :  { %v776_v1 = vadd.f32 %v775_v61, %v713_v59  ;;  %v721_v61 = vmul.f32 %v1449_v12, %v1449_v12 }
 0x116   :  { %v379_v8 = vpop.f32.mrf.mxu0  ;;  %v1580_v9 = vpop.f32.mrf.mxu1 }
 0x117   :  { %v1081_v14 = vpack.c.bf16 %v379_v8, %v377_v43  ;;  %v644_v6 = vadd.f32 %v643_v62, %v379_v8  ;;  %v714_v47 = vmul.f32 %v379_v8, %v379_v8  ;;  %v1121_v18 = vpack.c.bf16 %v1580_v9, %v1564_v44 }
 0x119   :  { %1209 = vst [vmem:[%s1787_s2 + $0x38] sm:$0xff] %v1081_v14   ;;  %v645_v11 = vadd.f32 %v644_v6, %v1386_v37  ;;  %v777_v15 = vadd.f32 %v776_v1, %v714_v47  ;;  %v718_v37 = vmul.f32 %v1409_v55, %v1409_v55  ;;  %v722_v1 = vmul.f32 %v1458_v16, %v1458_v16  ;;  %v1632_v6 = vpop.f32.mrf.mxu2 }
 0x11a   :  { %1217 = vst [vmem:[%s1787_s2 + $0x78] sm:$0xff] %v1121_v18   ;;  %v723_v47 = vmul.f32 %v1472_v22, %v1472_v22 }
 0x11b   :  { %v646_v29 = vadd.f32 %v645_v11, %v1394_v42  ;;  %v778_v30 = vadd.f32 %v777_v15, %v715_v3  ;;  %v1156_v42 = vpack.c.bf16 %v1606_v56, %v1584_v25  ;;  %v724_v11 = vmul.f32 %v1488_v28, %v1488_v28 }
 0x11d   :  { %v647_v39 = vadd.f32 %v646_v29, %v1404_v49  ;;  %v779_v43 = vadd.f32 %v778_v30, %v716_v26  ;;  %v719_v49 = vmul.f32 %v1421_v63, %v1421_v63  ;;  %1224 = vst [vmem:[%s1787_s2 + $0xb0] sm:$0xff] %v1156_v42   ;;  %v726_v30 = vmul.f32 %v1518_v41, %v1518_v41 }
 0x11f   :  { %v648_v21 = vadd.f32 %v647_v39, %v1409_v55  ;;  %v780_v54 = vadd.f32 %v779_v43, %v717_v38  ;;  %v720_v55 = vmul.f32 %v1437_v7, %v1437_v7 }
 0x121   :  { %v649_v58 = vadd.f32 %v648_v21, %v1421_v63  ;;  %v781_v33 = vadd.f32 %v780_v54, %v718_v37 }
 0x123   :  { %v650_v59 = vadd.f32 %v649_v58, %v1437_v7  ;;  %v782_v40 = vadd.f32 %v781_v33, %v719_v49  ;;  %v1634_v7 = vpop.f32.mrf.mxu3 }
 0x125   :  { %v783_v62 = vadd.f32 %v782_v40, %v720_v55  ;;  %v651_v63 = vadd.f32 %v650_v59, %v1449_v12  ;;  %v730_v59 = vmul.f32 %v1580_v9, %v1580_v9 }
 0x127   :  { %v652_v8 = vadd.f32 %v651_v63, %v1458_v16  ;;  %v784_v14 = vadd.f32 %v783_v62, %v721_v61  ;;  %v725_v16 = vmul.f32 %v1502_v34, %v1502_v34  ;;  %v732_v63 = vmul.f32 %v1425_v2, %v1425_v2 }
 0x129   :  { %v653_v18 = vadd.f32 %v652_v8, %v1472_v22  ;;  %v785_v3 = vadd.f32 %v784_v14, %v722_v1  ;;  %v1648_v22 = vpop.f32.mrf.mxu2  ;;  %v733_v8 = vmul.f32 %v1441_v10, %v1441_v10 }
 0x12b   :  { %v654_v12 = vadd.f32 %v653_v18, %v1488_v28  ;;  %v786_v15 = vadd.f32 %v785_v3, %v723_v47  ;;  %v1650_v43 = vpop.f32.mrf.mxu3  ;;  %v1161_v28 = vpack.c.bf16 %v1648_v22, %v1632_v6  ;;  %v734_v47 = vmul.f32 %v1451_v13, %v1451_v13 }
 0x12c   :  { %v1191_v37 = vpack.c.bf16 %v1650_v43, %v1634_v7 }
 0x12d   :  { %v655_v26 = vadd.f32 %v654_v12, %v1502_v34  ;;  %v787_v29 = vadd.f32 %v786_v15, %v724_v11  ;;  %v727_v34 = vmul.f32 %v1532_v48, %v1532_v48  ;;  %1225 = vst [vmem:[%s1787_s2 + $0xb8] sm:$0xff] %v1161_v28  }
 0x12e   :  { %1231 = vst [vmem:[%s1787_s2 + $0xe8] sm:$0xff] %v1191_v37   ;;  %v739_v37 = vmul.f32 %v1522_v45, %v1522_v45 }
 0x12f   :  { %v656_v38 = vadd.f32 %v655_v26, %v1518_v41  ;;  %v788_v39 = vadd.f32 %v787_v29, %v725_v16  ;;  %v737_v26 = vmul.f32 %v1492_v31, %v1492_v31 }
 0x131   :  { %v657_v21 = vadd.f32 %v656_v38, %v1532_v48  ;;  %v789_v54 = vadd.f32 %v788_v39, %v726_v30  ;;  %v729_v48 = vmul.f32 %v1564_v44, %v1564_v44 }
 0x133   :  { %v790_v41 = vadd.f32 %v789_v54, %v727_v34  ;;  %v658_v42 = vadd.f32 %v657_v21, %v1550_v5  ;;  %v1674_v40 = vpop.f32.mrf.mxu3  ;;  %v731_v5 = vmul.f32 %v1413_v60, %v1413_v60  ;;  %v740_v34 = vmul.f32 %v1534_v50, %v1534_v50 }
 0x135   :  { %v791_v49 = vadd.f32 %v790_v41, %v728_v27  ;;  %v659_v58 = vadd.f32 %v658_v42, %v1564_v44  ;;  %v741_v41 = vmul.f32 %v1554_v17, %v1554_v17 }
 0x137   :  { %v792_v33 = vadd.f32 %v791_v49, %v729_v48  ;;  %v660_v55 = vadd.f32 %v659_v58, %v1580_v9  ;;  %v742_v49 = vmul.f32 %v1566_v52, %v1566_v52 }
 0x139   :  { %v661_v61 = vadd.f32 %v660_v55, %v1413_v60  ;;  %v793_v62 = vadd.f32 %v792_v33, %v730_v59 }
 0x13b   :  { %v662_v1 = vadd.f32 %v661_v61, %v1425_v2  ;;  %v794_v44 = vadd.f32 %v793_v62, %v731_v5  ;;  %v1688_v60 = vpop.f32.mrf.mxu3  ;;  %v735_v2 = vmul.f32 %v1462_v19, %v1462_v19  ;;  %v745_v62 = vmul.f32 %v1632_v6, %v1632_v6 }
 0x13c   :  { %v1196_v11 = vpack.c.bf16 %v1688_v60, %v1674_v40 }
 0x13d   :  { %v663_v14 = vadd.f32 %v662_v1, %v1441_v10  ;;  %v795_v9 = vadd.f32 %v794_v44, %v732_v63  ;;  %v736_v10 = vmul.f32 %v1474_v23, %v1474_v23  ;;  %v747_v44 = vmul.f32 %v1464_v20, %v1464_v20 }
 0x13e   :  { %1232 = vst [vmem:[%s1787_s2 + $0xf0] sm:$0xff] %v1196_v11  }
 0x13f   :  { %v664_v18 = vadd.f32 %v663_v14, %v1451_v13  ;;  %v796_v3 = vadd.f32 %v795_v9, %v733_v8 }
 0x141   :  { %v665_v12 = vadd.f32 %v664_v18, %v1462_v19  ;;  %v797_v15 = vadd.f32 %v796_v3, %v734_v47  ;;  %v738_v19 = vmul.f32 %v1504_v35, %v1504_v35 }
 0x143   :  { %v666_v13 = vadd.f32 %v665_v12, %v1474_v23  ;;  %v798_v16 = vadd.f32 %v797_v15, %v735_v2  ;;  %v1707_v28 = vpop.f32.mrf.mxu3 }
 0x145   :  { %v799_v29 = vadd.f32 %v798_v16, %v736_v10  ;;  %v667_v30 = vadd.f32 %v666_v13, %v1492_v31 }
 0x147   :  { %v668_v38 = vadd.f32 %v667_v30, %v1504_v35  ;;  %v800_v39 = vadd.f32 %v799_v29, %v737_v26 }
 0x149   :  { %v669_v23 = vadd.f32 %v668_v38, %v1522_v45  ;;  %v801_v21 = vadd.f32 %v800_v39, %v738_v19 }
 0x14b   :  { %v670_v54 = vadd.f32 %v669_v23, %v1534_v50  ;;  %v802_v31 = vadd.f32 %v801_v21, %v739_v37  ;;  %v499_v45 = vpop.f32.mrf.mxu3  ;;  %v743_v50 = vmul.f32 %v1584_v25, %v1584_v25 }
 0x14c   :  { %v1201_v48 = vpack.c.bf16 %v499_v45, %v1707_v28 }
 0x14d   :  { %v671_v35 = vadd.f32 %v670_v54, %v1554_v17  ;;  %v803_v42 = vadd.f32 %v802_v31, %v740_v34  ;;  %v758_v34 = vmul.f32 %v1650_v43, %v1650_v43 }
 0x14e   :  { %1233 = vst [vmem:[%s1787_s2 + $0xf8] sm:$0xff] %v1201_v48   ;;  %v762_v48 = vmul.f32 %v499_v45, %v499_v45 }
 0x14f   :  { %v672_v27 = vadd.f32 %v671_v35, %v1566_v52  ;;  %v804_v58 = vadd.f32 %v803_v42, %v741_v41  ;;  %v744_v52 = vmul.f32 %v1606_v56, %v1606_v56  ;;  %v759_v41 = vmul.f32 %v1674_v40, %v1674_v40 }
 0x150   :  { %v760_v42 = vmul.f32 %v1688_v60, %v1688_v60 }
 0x151   :  { %v805_v33 = vadd.f32 %v804_v58, %v742_v49  ;;  %v673_v55 = vadd.f32 %v672_v27, %v1584_v25  ;;  %v746_v25 = vmul.f32 %v1648_v22, %v1648_v22  ;;  %v761_v49 = vmul.f32 %v1707_v28, %v1707_v28 }
 0x153   :  { %v806_v17 = vadd.f32 %v805_v33, %v743_v50  ;;  %v674_v59 = vadd.f32 %v673_v55, %v1606_v56  ;;  %v748_v56 = vmul.f32 %v1476_v24, %v1476_v24 }
 0x155   :  { %v807_v5 = vadd.f32 %v806_v17, %v744_v52  ;;  %v675_v61 = vadd.f32 %v674_v59, %v1632_v6  ;;  %v749_v6 = vmul.f32 %v1494_v32, %v1494_v32 }
 0x157   :  { %v808_v63 = vadd.f32 %v807_v5, %v745_v62  ;;  %v676_v1 = vadd.f32 %v675_v61, %v1648_v22  ;;  %v750_v22 = vmul.f32 %v1506_v36, %v1506_v36 }
 0x159   :  { %v677_v8 = vadd.f32 %v676_v1, %v1464_v20  ;;  %v809_v14 = vadd.f32 %v808_v63, %v746_v25  ;;  %v751_v20 = vmul.f32 %v1524_v46, %v1524_v46 }
 0x15b   :  { %v678_v9 = vadd.f32 %v677_v8, %v1476_v24  ;;  %v810_v47 = vadd.f32 %v809_v14, %v747_v44  ;;  %v752_v24 = vmul.f32 %v1536_v51, %v1536_v51 }
 0x15d   :  { %v679_v18 = vadd.f32 %v678_v9, %v1494_v32  ;;  %v811_v3 = vadd.f32 %v810_v47, %v748_v56  ;;  %v753_v32 = vmul.f32 %v1556_v0, %v1556_v0 }
 0x15f   :  { %v680_v11 = vadd.f32 %v679_v18, %v1506_v36  ;;  %v812_v2 = vadd.f32 %v811_v3, %v749_v6  ;;  %v754_v36 = vmul.f32 %v1568_v53, %v1568_v53 }
 0x161   :  { %v681_v12 = vadd.f32 %v680_v11, %v1524_v46  ;;  %v813_v15 = vadd.f32 %v812_v2, %v750_v22  ;;  %v755_v46 = vmul.f32 %v1586_v4, %v1586_v4 }
 0x163   :  { %v682_v10 = vadd.f32 %v681_v12, %v1536_v51  ;;  %v814_v13 = vadd.f32 %v813_v15, %v751_v20  ;;  %v756_v51 = vmul.f32 %v1608_v57, %v1608_v57 }
 0x165   :  { %v815_v16 = vadd.f32 %v814_v13, %v752_v24  ;;  %v683_v26 = vadd.f32 %v682_v10, %v1556_v0  ;;  %v757_v0 = vmul.f32 %v1634_v7, %v1634_v7 }
 0x167   :  { %v684_v29 = vadd.f32 %v683_v26, %v1568_v53  ;;  %v816_v30 = vadd.f32 %v815_v16, %v753_v32 }
 0x169   :  { %v685_v19 = vadd.f32 %v684_v29, %v1586_v4  ;;  %v817_v38 = vadd.f32 %v816_v30, %v754_v36 }
 0x16b   :  { %v686_v39 = vadd.f32 %v685_v19, %v1608_v57  ;;  %v818_v37 = vadd.f32 %v817_v38, %v755_v46 }
 0x16d   :  { %v687_v23 = vadd.f32 %v686_v39, %v1634_v7  ;;  %v819_v21 = vadd.f32 %v818_v37, %v756_v51 }
 0x16f   :  { %v688_v53 = vadd.f32 %v687_v23, %v1650_v43  ;;  %v820_v54 = vadd.f32 %v819_v21, %v757_v0 }
 0x171   :  { %v821_v4 = vadd.f32 %v820_v54, %v758_v34  ;;  %v689_v31 = vadd.f32 %v688_v53, %v1674_v40 }
 0x173   :  { %v822_v57 = vadd.f32 %v821_v4, %v759_v41  ;;  %v690_v35 = vadd.f32 %v689_v31, %v1688_v60 }
 0x175   :  { %v823_v7 = vadd.f32 %v822_v57, %v760_v42  ;;  %v691_v27 = vadd.f32 %v690_v35, %v1707_v28 }
 0x177   :  { %v824_v43 = vadd.f32 %v823_v7, %v761_v49  ;;  %v692_v58 = vadd.f32 %v691_v27, %v499_v45 }
 0x179   :  { %v693_v33 = vrot.slane %v692_v58, 4  ;;  %v825_v55 = vadd.f32 %v824_v43, %v762_v48 }
 0x17b   :  { %v694_v50 = vadd.f32 %v693_v33, %v692_v58  ;;  %v826_v17 = vrot.slane %v825_v55, 4 }
 0x17d   :  { %v695_v40 = vrot.slane %v694_v50, 2  ;;  %v827_v59 = vadd.f32 %v826_v17, %v825_v55 }
 0x17f   :  { %v696_v52 = vadd.f32 %v695_v40, %v694_v50  ;;  %v828_v5 = vrot.slane %v827_v59, 2 }
 0x181   :  { %v697_v61 = vrot.slane %v696_v52, 1  ;;  %v829_v62 = vadd.f32 %v828_v5, %v827_v59 }
 0x183   :  { %v830_v60 = vrot.slane %v829_v62, 1  ;;  %v698_v63 = vadd.f32 %v697_v61, %v696_v52 }
 0x185   :  { %v831_v1 = vadd.f32 %v830_v60, %v829_v62 }
 0x187   :  { %v833_v25 = vsel %vm832_vm0, %v698_v63, %v831_v1 }
 0x188   :  { %834 = vst [vmem:[%s1788_s3] sm:$0x3] %v833_v25 }

// kernel: discriminator_forward.13
= control target key start
LH: loop header
LB: loop body
LE: loop exit
PB: predicated region body
PF: predicated region fallthrough
CT: control target
= control target key end

     0   :  { %s1176_s0 = inlined_call_operand.vmem [shape: bf16[512,128], index: 0, kind: input, shape index: {}]   ;;  %s1177_s1 = inlined_call_operand.vmem [shape: f32[1,128], index: 1, kind: input, shape index: {}]   ;;  %s1178_s2 = inlined_call_operand.vmem [shape: f32[1,128], index: 2, kind: input, shape index: {}]   ;;  %s1179_s3 = inlined_call_operand.vmem [shape: bf16[512,128], index: 3, kind: output, shape index: {}]  }
   0x1   :  { %v475_v0 = vld [vmem:[%s1176_s0] sm:$0xff]   ;;  %v762_v5 = vld [vmem:[%s1176_s0 + $0x8] sm:$0xff]   ;;  %v763_v8 = vld [vmem:[%s1176_s0 + $0x10] sm:$0xff]  }
   0x2   :  { %v852_v1 = vld [vmem:[%s1177_s1] ss:$0 sm:$0xff]  ;;  %v476_v2 = vunpack.c.l.bf16 %v475_v0  ;;  %v477_v3 = vunpack.c.h.bf16 %v475_v0  ;;  %v480_v6 = vunpack.c.l.bf16 %v762_v5  ;;  %v481_v7 = vunpack.c.h.bf16 %v762_v5  ;;  %v764_v9 = vld [vmem:[%s1176_s0 + $0x18] sm:$0xff]   ;;  %v766_v35 = vld [vmem:[%s1176_s0 + $0x28] sm:$0xff]  }
   0x3   :  { %v857_v4 = vld [vmem:[%s1178_s2] ss:$0 sm:$0xff]  ;;  %v484_v12 = vunpack.c.l.bf16 %v763_v8  ;;  %v485_v13 = vunpack.c.h.bf16 %v763_v8  ;;  %v488_v16 = vunpack.c.l.bf16 %v764_v9  ;;  %v489_v17 = vunpack.c.h.bf16 %v764_v9  ;;  %v767_v40 = vld [vmem:[%s1176_s0 + $0x30] sm:$0xff]   ;;  %v768_v45 = vld [vmem:[%s1176_s0 + $0x38] sm:$0xff]  }
   0x4   :  { %v146_v10 = vmul.f32 %v852_v1, %v476_v2  ;;  %v147_v11 = vmul.f32 %v852_v1, %v477_v3  ;;  %v148_v14 = vmul.f32 %v852_v1, %v480_v6  ;;  %v149_v15 = vmul.f32 %v852_v1, %v481_v7  ;;  %v765_v26 = vld [vmem:[%s1176_s0 + $0x20] sm:$0xff]  }
   0x5   :  { %v150_v20 = vmul.f32 %v852_v1, %v484_v12  ;;  %v151_v21 = vmul.f32 %v852_v1, %v485_v13  ;;  %v152_v24 = vmul.f32 %v852_v1, %v488_v16  ;;  %v153_v25 = vmul.f32 %v852_v1, %v489_v17  ;;  %v769_v62 = vld [vmem:[%s1176_s0 + $0x40] sm:$0xff]   ;;  %v770_v13 = vld [vmem:[%s1176_s0 + $0x48] sm:$0xff]  }
   0x6   :  { %v214_v18 = vadd.f32 %v857_v4, %v146_v10  ;;  %v215_v19 = vadd.f32 %v857_v4, %v147_v11  ;;  %v216_v22 = vadd.f32 %v857_v4, %v148_v14  ;;  %v217_v23 = vadd.f32 %v857_v4, %v149_v15 }
   0x7   :  { %v218_v29 = vadd.f32 %v857_v4, %v150_v20  ;;  %v219_v30 = vadd.f32 %v857_v4, %v151_v21  ;;  %v220_v33 = vadd.f32 %v857_v4, %v152_v24  ;;  %v221_v34 = vadd.f32 %v857_v4, %v153_v25 }
   0x8   :  { %v278_v27 = vmax.f32 %v214_v18, 0.0  ;;  %v279_v28 = vmax.f32 %v215_v19, 0.0  ;;  %v280_v31 = vmax.f32 %v216_v22, 0.0  ;;  %v281_v32 = vmax.f32 %v217_v23, 0.0  ;;  %v771_v18 = vld [vmem:[%s1176_s0 + $0x50] sm:$0xff]   ;;  %v772_v23 = vld [vmem:[%s1176_s0 + $0x58] sm:$0xff]  }
   0x9   :  { %v282_v37 = vmax.f32 %v218_v29, 0.0  ;;  %v283_v38 = vmax.f32 %v219_v30, 0.0  ;;  %v492_v39 = vunpack.c.l.bf16 %v765_v26  ;;  %v284_v42 = vmax.f32 %v220_v33, 0.0 }
   0xa   :  { %v605_v36 = vpack.c.bf16 %v279_v28, %v278_v27  ;;  %v610_v41 = vpack.c.bf16 %v281_v32, %v280_v31  ;;  %v285_v43 = vmax.f32 %v221_v34, 0.0  ;;  %v493_v44 = vunpack.c.h.bf16 %v765_v26 }
   0xb   :  { %v615_v46 = vpack.c.bf16 %v283_v38, %v282_v37  ;;  %v154_v47 = vmul.f32 %v852_v1, %v492_v39  ;;  %v496_v48 = vunpack.c.l.bf16 %v766_v35  ;;  %v497_v49 = vunpack.c.h.bf16 %v766_v35 }
   0xc   :  { %606 = vst [vmem:[%s1179_s3] sm:$0xff] %v605_v36   ;;  %v620_v50 = vpack.c.bf16 %v285_v43, %v284_v42  ;;  %v155_v51 = vmul.f32 %v852_v1, %v493_v44  ;;  %v500_v52 = vunpack.c.l.bf16 %v767_v40  ;;  %v501_v53 = vunpack.c.h.bf16 %v767_v40  ;;  %v773_v36 = vld [vmem:[%s1176_s0 + $0x60] sm:$0xff]  }
   0xd   :  { %793 = vst [vmem:[%s1179_s3 + $0x8] sm:$0xff] %v610_v41   ;;  %v222_v54 = vadd.f32 %v857_v4, %v154_v47  ;;  %v156_v55 = vmul.f32 %v852_v1, %v496_v48  ;;  %v157_v56 = vmul.f32 %v852_v1, %v497_v49  ;;  %v504_v57 = vunpack.c.l.bf16 %v768_v45 }
   0xe   :  { %794 = vst [vmem:[%s1179_s3 + $0x10] sm:$0xff] %v615_v46   ;;  %v223_v58 = vadd.f32 %v857_v4, %v155_v51  ;;  %v158_v59 = vmul.f32 %v852_v1, %v500_v52  ;;  %v159_v60 = vmul.f32 %v852_v1, %v501_v53  ;;  %v505_v61 = vunpack.c.h.bf16 %v768_v45  ;;  %v774_v53 = vld [vmem:[%s1176_s0 + $0x68] sm:$0xff]  }
   0xf   :  { %795 = vst [vmem:[%s1179_s3 + $0x18] sm:$0xff] %v620_v50   ;;  %v286_v63 = vmax.f32 %v222_v54, 0.0  ;;  %v224_v0 = vadd.f32 %v857_v4, %v156_v55  ;;  %v225_v2 = vadd.f32 %v857_v4, %v157_v56  ;;  %v160_v3 = vmul.f32 %v852_v1, %v504_v57 }
  0x10   :  { %v287_v5 = vmax.f32 %v223_v58, 0.0  ;;  %v226_v6 = vadd.f32 %v857_v4, %v158_v59  ;;  %v227_v7 = vadd.f32 %v857_v4, %v159_v60  ;;  %v161_v8 = vmul.f32 %v852_v1, %v505_v61  ;;  %v775_v58 = vld [vmem:[%s1176_s0 + $0x70] sm:$0xff]  }
  0x11   :  { %v288_v9 = vmax.f32 %v224_v0, 0.0  ;;  %v289_v10 = vmax.f32 %v225_v2, 0.0  ;;  %v228_v11 = vadd.f32 %v857_v4, %v160_v3  ;;  %v508_v12 = vunpack.c.l.bf16 %v769_v62 }
  0x12   :  { %v625_v14 = vpack.c.bf16 %v287_v5, %v286_v63  ;;  %v290_v15 = vmax.f32 %v226_v6, 0.0  ;;  %v291_v16 = vmax.f32 %v227_v7, 0.0  ;;  %v229_v17 = vadd.f32 %v857_v4, %v161_v8  ;;  %v776_v63 = vld [vmem:[%s1176_s0 + $0x78] sm:$0xff]  }
  0x13   :  { %v630_v19 = vpack.c.bf16 %v289_v10, %v288_v9  ;;  %v292_v20 = vmax.f32 %v228_v11, 0.0  ;;  %v509_v21 = vunpack.c.h.bf16 %v769_v62  ;;  %v162_v22 = vmul.f32 %v852_v1, %v508_v12 }
  0x14   :  { %796 = vst [vmem:[%s1179_s3 + $0x20] sm:$0xff] %v625_v14   ;;  %v635_v24 = vpack.c.bf16 %v291_v16, %v290_v15  ;;  %v293_v25 = vmax.f32 %v229_v17, 0.0  ;;  %v512_v26 = vunpack.c.l.bf16 %v770_v13  ;;  %v513_v27 = vunpack.c.h.bf16 %v770_v13  ;;  %v777_v14 = vld [vmem:[%s1176_s0 + $0x80] sm:$0xff]  }
  0x15   :  { %797 = vst [vmem:[%s1179_s3 + $0x28] sm:$0xff] %v630_v19   ;;  %v163_v28 = vmul.f32 %v852_v1, %v509_v21  ;;  %v230_v29 = vadd.f32 %v857_v4, %v162_v22  ;;  %v516_v30 = vunpack.c.l.bf16 %v771_v18  ;;  %v517_v31 = vunpack.c.h.bf16 %v771_v18 }
  0x16   :  { %798 = vst [vmem:[%s1179_s3 + $0x30] sm:$0xff] %v635_v24   ;;  %v640_v32 = vpack.c.bf16 %v293_v25, %v292_v20  ;;  %v164_v33 = vmul.f32 %v852_v1, %v512_v26  ;;  %v165_v34 = vmul.f32 %v852_v1, %v513_v27  ;;  %v520_v35 = vunpack.c.l.bf16 %v772_v23  ;;  %v778_v27 = vld [vmem:[%s1176_s0 + $0x88] sm:$0xff]  }
  0x17   :  { %v231_v37 = vadd.f32 %v857_v4, %v163_v28  ;;  %v294_v38 = vmax.f32 %v230_v29, 0.0  ;;  %v166_v39 = vmul.f32 %v852_v1, %v516_v30  ;;  %v167_v40 = vmul.f32 %v852_v1, %v517_v31 }
  0x18   :  { %799 = vst [vmem:[%s1179_s3 + $0x38] sm:$0xff] %v640_v32   ;;  %v232_v41 = vadd.f32 %v857_v4, %v164_v33  ;;  %v233_v42 = vadd.f32 %v857_v4, %v165_v34  ;;  %v521_v43 = vunpack.c.h.bf16 %v772_v23  ;;  %v168_v44 = vmul.f32 %v852_v1, %v520_v35 }
  0x19   :  { %v295_v45 = vmax.f32 %v231_v37, 0.0  ;;  %v234_v46 = vadd.f32 %v857_v4, %v166_v39  ;;  %v235_v47 = vadd.f32 %v857_v4, %v167_v40  ;;  %v524_v48 = vunpack.c.l.bf16 %v773_v36 }
  0x1a   :  { %v296_v49 = vmax.f32 %v232_v41, 0.0  ;;  %v297_v50 = vmax.f32 %v233_v42, 0.0  ;;  %v169_v51 = vmul.f32 %v852_v1, %v521_v43  ;;  %v236_v52 = vadd.f32 %v857_v4, %v168_v44  ;;  %v780_v41 = vld [vmem:[%s1176_s0 + $0x98] sm:$0xff]  }
  0x1b   :  { %v645_v54 = vpack.c.bf16 %v295_v45, %v294_v38  ;;  %v298_v55 = vmax.f32 %v234_v46, 0.0  ;;  %v299_v56 = vmax.f32 %v235_v47, 0.0  ;;  %v525_v57 = vunpack.c.h.bf16 %v773_v36  ;;  %v779_v36 = vld [vmem:[%s1176_s0 + $0x90] sm:$0xff]  }
  0x1c   :  { %v650_v59 = vpack.c.bf16 %v297_v50, %v296_v49  ;;  %v237_v60 = vadd.f32 %v857_v4, %v169_v51  ;;  %v300_v61 = vmax.f32 %v236_v52, 0.0  ;;  %v170_v62 = vmul.f32 %v852_v1, %v524_v48 }
  0x1d   :  { %800 = vst [vmem:[%s1179_s3 + $0x40] sm:$0xff] %v645_v54   ;;  %v655_v0 = vpack.c.bf16 %v299_v56, %v298_v55  ;;  %v171_v2 = vmul.f32 %v852_v1, %v525_v57  ;;  %v528_v3 = vunpack.c.l.bf16 %v774_v53  ;;  %v529_v5 = vunpack.c.h.bf16 %v774_v53  ;;  %v781_v54 = vld [vmem:[%s1176_s0 + $0xa0] sm:$0xff]  }
  0x1e   :  { %801 = vst [vmem:[%s1179_s3 + $0x48] sm:$0xff] %v650_v59   ;;  %v301_v6 = vmax.f32 %v237_v60, 0.0  ;;  %v238_v7 = vadd.f32 %v857_v4, %v170_v62  ;;  %v532_v8 = vunpack.c.l.bf16 %v775_v58  ;;  %v533_v9 = vunpack.c.h.bf16 %v775_v58 }
  0x1f   :  { %802 = vst [vmem:[%s1179_s3 + $0x50] sm:$0xff] %v655_v0   ;;  %v239_v10 = vadd.f32 %v857_v4, %v171_v2  ;;  %v172_v11 = vmul.f32 %v852_v1, %v528_v3  ;;  %v173_v12 = vmul.f32 %v852_v1, %v529_v5  ;;  %v536_v13 = vunpack.c.l.bf16 %v776_v63  ;;  %v782_v5 = vld [vmem:[%s1176_s0 + $0xa8] sm:$0xff]  }
  0x20   :  { %v660_v15 = vpack.c.bf16 %v301_v6, %v300_v61  ;;  %v302_v16 = vmax.f32 %v238_v7, 0.0  ;;  %v174_v17 = vmul.f32 %v852_v1, %v532_v8  ;;  %v175_v18 = vmul.f32 %v852_v1, %v533_v9 }
  0x21   :  { %v303_v19 = vmax.f32 %v239_v10, 0.0  ;;  %v240_v20 = vadd.f32 %v857_v4, %v172_v11  ;;  %v241_v21 = vadd.f32 %v857_v4, %v173_v12  ;;  %v537_v22 = vunpack.c.h.bf16 %v776_v63 }
  0x22   :  { %803 = vst [vmem:[%s1179_s3 + $0x58] sm:$0xff] %v660_v15   ;;  %v242_v23 = vadd.f32 %v857_v4, %v174_v17  ;;  %v243_v24 = vadd.f32 %v857_v4, %v175_v18  ;;  %v176_v25 = vmul.f32 %v852_v1, %v536_v13  ;;  %v540_v26 = vunpack.c.l.bf16 %v777_v14 }
  0x23   :  { %v665_v28 = vpack.c.bf16 %v303_v19, %v302_v16  ;;  %v304_v29 = vmax.f32 %v240_v20, 0.0  ;;  %v305_v30 = vmax.f32 %v241_v21, 0.0  ;;  %v177_v31 = vmul.f32 %v852_v1, %v537_v22 }
  0x24   :  { %v306_v32 = vmax.f32 %v242_v23, 0.0  ;;  %v307_v33 = vmax.f32 %v243_v24, 0.0  ;;  %v244_v34 = vadd.f32 %v857_v4, %v176_v25  ;;  %v541_v35 = vunpack.c.h.bf16 %v777_v14  ;;  %v783_v14 = vld [vmem:[%s1176_s0 + $0xb0] sm:$0xff]   ;;  %v784_v23 = vld [vmem:[%s1176_s0 + $0xb8] sm:$0xff]  }
  0x25   :  { %804 = vst [vmem:[%s1179_s3 + $0x60] sm:$0xff] %v665_v28   ;;  %v670_v37 = vpack.c.bf16 %v305_v30, %v304_v29  ;;  %v245_v38 = vadd.f32 %v857_v4, %v177_v31  ;;  %v178_v39 = vmul.f32 %v852_v1, %v540_v26  ;;  %v544_v40 = vunpack.c.l.bf16 %v778_v27 }
  0x26   :  { %v675_v42 = vpack.c.bf16 %v307_v33, %v306_v32  ;;  %v308_v43 = vmax.f32 %v244_v34, 0.0  ;;  %v179_v44 = vmul.f32 %v852_v1, %v541_v35  ;;  %v545_v45 = vunpack.c.h.bf16 %v778_v27  ;;  %v785_v32 = vld [vmem:[%s1176_s0 + $0xc0] sm:$0xff]  }
  0x27   :  { %805 = vst [vmem:[%s1179_s3 + $0x68] sm:$0xff] %v670_v37   ;;  %v309_v46 = vmax.f32 %v245_v38, 0.0  ;;  %v246_v47 = vadd.f32 %v857_v4, %v178_v39  ;;  %v180_v48 = vmul.f32 %v852_v1, %v544_v40  ;;  %v548_v49 = vunpack.c.l.bf16 %v779_v36 }
  0x28   :  { %806 = vst [vmem:[%s1179_s3 + $0x70] sm:$0xff] %v675_v42   ;;  %v247_v50 = vadd.f32 %v857_v4, %v179_v44  ;;  %v181_v51 = vmul.f32 %v852_v1, %v545_v45  ;;  %v549_v52 = vunpack.c.h.bf16 %v779_v36  ;;  %v552_v53 = vunpack.c.l.bf16 %v780_v41  ;;  %v786_v45 = vld [vmem:[%s1176_s0 + $0xc8] sm:$0xff]  }
  0x29   :  { %v680_v55 = vpack.c.bf16 %v309_v46, %v308_v43  ;;  %v310_v56 = vmax.f32 %v246_v47, 0.0  ;;  %v248_v57 = vadd.f32 %v857_v4, %v180_v48  ;;  %v182_v58 = vmul.f32 %v852_v1, %v548_v49 }
  0x2a   :  { %v311_v59 = vmax.f32 %v247_v50, 0.0  ;;  %v249_v60 = vadd.f32 %v857_v4, %v181_v51  ;;  %v183_v61 = vmul.f32 %v852_v1, %v549_v52  ;;  %v553_v62 = vunpack.c.h.bf16 %v780_v41 }
  0x2b   :  { %807 = vst [vmem:[%s1179_s3 + $0x78] sm:$0xff] %v680_v55   ;;  %v312_v63 = vmax.f32 %v248_v57, 0.0  ;;  %v250_v0 = vadd.f32 %v857_v4, %v182_v58  ;;  %v184_v2 = vmul.f32 %v852_v1, %v552_v53  ;;  %v556_v3 = vunpack.c.l.bf16 %v781_v54 }
  0x2c   :  { %v685_v6 = vpack.c.bf16 %v311_v59, %v310_v56  ;;  %v313_v7 = vmax.f32 %v249_v60, 0.0  ;;  %v251_v8 = vadd.f32 %v857_v4, %v183_v61  ;;  %v185_v9 = vmul.f32 %v852_v1, %v553_v62 }
  0x2d   :  { %v314_v10 = vmax.f32 %v250_v0, 0.0  ;;  %v252_v11 = vadd.f32 %v857_v4, %v184_v2  ;;  %v557_v12 = vunpack.c.h.bf16 %v781_v54  ;;  %v186_v13 = vmul.f32 %v852_v1, %v556_v3  ;;  %v787_v54 = vld [vmem:[%s1176_s0 + $0xd0] sm:$0xff]  }
  0x2e   :  { %808 = vst [vmem:[%s1179_s3 + $0x80] sm:$0xff] %v685_v6   ;;  %v690_v15 = vpack.c.bf16 %v313_v7, %v312_v63  ;;  %v315_v16 = vmax.f32 %v251_v8, 0.0  ;;  %v253_v17 = vadd.f32 %v857_v4, %v185_v9  ;;  %v560_v18 = vunpack.c.l.bf16 %v782_v5  ;;  %v788_v63 = vld [vmem:[%s1176_s0 + $0xd8] sm:$0xff]  }
  0x2f   :  { %v316_v19 = vmax.f32 %v252_v11, 0.0  ;;  %v187_v20 = vmul.f32 %v852_v1, %v557_v12  ;;  %v254_v21 = vadd.f32 %v857_v4, %v186_v13  ;;  %v561_v22 = vunpack.c.h.bf16 %v782_v5 }
  0x30   :  { %809 = vst [vmem:[%s1179_s3 + $0x88] sm:$0xff] %v690_v15   ;;  %v695_v24 = vpack.c.bf16 %v315_v16, %v314_v10  ;;  %v317_v25 = vmax.f32 %v253_v17, 0.0  ;;  %v188_v26 = vmul.f32 %v852_v1, %v560_v18  ;;  %v564_v27 = vunpack.c.l.bf16 %v783_v14  ;;  %v789_v10 = vld [vmem:[%s1176_s0 + $0xe0] sm:$0xff]  }
  0x31   :  { %v255_v28 = vadd.f32 %v857_v4, %v187_v20  ;;  %v318_v29 = vmax.f32 %v254_v21, 0.0  ;;  %v189_v30 = vmul.f32 %v852_v1, %v561_v22  ;;  %v565_v31 = vunpack.c.h.bf16 %v783_v14 }
  0x32   :  { %810 = vst [vmem:[%s1179_s3 + $0x90] sm:$0xff] %v695_v24   ;;  %v700_v33 = vpack.c.bf16 %v317_v25, %v316_v19  ;;  %v256_v34 = vadd.f32 %v857_v4, %v188_v26  ;;  %v190_v35 = vmul.f32 %v852_v1, %v564_v27  ;;  %v568_v36 = vunpack.c.l.bf16 %v784_v23 }
  0x33   :  { %v319_v37 = vmax.f32 %v255_v28, 0.0  ;;  %v257_v38 = vadd.f32 %v857_v4, %v189_v30  ;;  %v191_v39 = vmul.f32 %v852_v1, %v565_v31  ;;  %v569_v40 = vunpack.c.h.bf16 %v784_v23  ;;  %v790_v23 = vld [vmem:[%s1176_s0 + $0xe8] sm:$0xff]  }
  0x34   :  { %811 = vst [vmem:[%s1179_s3 + $0x98] sm:$0xff] %v700_v33   ;;  %v320_v41 = vmax.f32 %v256_v34, 0.0  ;;  %v258_v42 = vadd.f32 %v857_v4, %v190_v35  ;;  %v192_v43 = vmul.f32 %v852_v1, %v568_v36  ;;  %v572_v44 = vunpack.c.l.bf16 %v785_v32 }
  0x35   :  { %v705_v46 = vpack.c.bf16 %v319_v37, %v318_v29  ;;  %v321_v47 = vmax.f32 %v257_v38, 0.0  ;;  %v259_v48 = vadd.f32 %v857_v4, %v191_v39  ;;  %v193_v49 = vmul.f32 %v852_v1, %v569_v40 }
  0x36   :  { %v322_v50 = vmax.f32 %v258_v42, 0.0  ;;  %v260_v51 = vadd.f32 %v857_v4, %v192_v43  ;;  %v573_v52 = vunpack.c.h.bf16 %v785_v32  ;;  %v194_v53 = vmul.f32 %v852_v1, %v572_v44  ;;  %v791_v32 = vld [vmem:[%s1176_s0 + $0xf0] sm:$0xff]  }
  0x37   :  { %812 = vst [vmem:[%s1179_s3 + $0xa0] sm:$0xff] %v705_v46   ;;  %v710_v55 = vpack.c.bf16 %v321_v47, %v320_v41  ;;  %v323_v56 = vmax.f32 %v259_v48, 0.0  ;;  %v261_v57 = vadd.f32 %v857_v4, %v193_v49  ;;  %v576_v58 = vunpack.c.l.bf16 %v786_v45  ;;  %v792_v41 = vld [vmem:[%s1176_s0 + $0xf8] sm:$0xff]  }
  0x38   :  { %v324_v59 = vmax.f32 %v260_v51, 0.0  ;;  %v195_v60 = vmul.f32 %v852_v1, %v573_v52  ;;  %v262_v61 = vadd.f32 %v857_v4, %v194_v53  ;;  %v577_v62 = vunpack.c.h.bf16 %v786_v45 }
  0x39   :  { %813 = vst [vmem:[%s1179_s3 + $0xa8] sm:$0xff] %v710_v55   ;;  %v715_v0 = vpack.c.bf16 %v323_v56, %v322_v50  ;;  %v325_v2 = vmax.f32 %v261_v57, 0.0  ;;  %v196_v3 = vmul.f32 %v852_v1, %v576_v58  ;;  %v580_v5 = vunpack.c.l.bf16 %v787_v54 }
  0x3a   :  { %v263_v6 = vadd.f32 %v857_v4, %v195_v60  ;;  %v326_v7 = vmax.f32 %v262_v61, 0.0  ;;  %v197_v8 = vmul.f32 %v852_v1, %v577_v62  ;;  %v581_v9 = vunpack.c.h.bf16 %v787_v54 }
  0x3b   :  { %814 = vst [vmem:[%s1179_s3 + $0xb0] sm:$0xff] %v715_v0   ;;  %v720_v11 = vpack.c.bf16 %v325_v2, %v324_v59  ;;  %v264_v12 = vadd.f32 %v857_v4, %v196_v3  ;;  %v198_v13 = vmul.f32 %v852_v1, %v580_v5  ;;  %v584_v14 = vunpack.c.l.bf16 %v788_v63 }
  0x3c   :  { %v327_v15 = vmax.f32 %v263_v6, 0.0  ;;  %v265_v16 = vadd.f32 %v857_v4, %v197_v8  ;;  %v199_v17 = vmul.f32 %v852_v1, %v581_v9  ;;  %v585_v18 = vunpack.c.h.bf16 %v788_v63 }
  0x3d   :  { %815 = vst [vmem:[%s1179_s3 + $0xb8] sm:$0xff] %v720_v11   ;;  %v328_v19 = vmax.f32 %v264_v12, 0.0  ;;  %v266_v20 = vadd.f32 %v857_v4, %v198_v13  ;;  %v200_v21 = vmul.f32 %v852_v1, %v584_v14  ;;  %v588_v22 = vunpack.c.l.bf16 %v789_v10 }
  0x3e   :  { %v725_v24 = vpack.c.bf16 %v327_v15, %v326_v7  ;;  %v329_v25 = vmax.f32 %v265_v16, 0.0  ;;  %v267_v26 = vadd.f32 %v857_v4, %v199_v17  ;;  %v201_v27 = vmul.f32 %v852_v1, %v585_v18 }
  0x3f   :  { %v330_v28 = vmax.f32 %v266_v20, 0.0  ;;  %v268_v29 = vadd.f32 %v857_v4, %v200_v21  ;;  %v589_v30 = vunpack.c.h.bf16 %v789_v10  ;;  %v202_v31 = vmul.f32 %v852_v1, %v588_v22 }
  0x40   :  { %816 = vst [vmem:[%s1179_s3 + $0xc0] sm:$0xff] %v725_v24   ;;  %v730_v33 = vpack.c.bf16 %v329_v25, %v328_v19  ;;  %v331_v34 = vmax.f32 %v267_v26, 0.0  ;;  %v269_v35 = vadd.f32 %v857_v4, %v201_v27  ;;  %v592_v36 = vunpack.c.l.bf16 %v790_v23 }
  0x41   :  { %v332_v37 = vmax.f32 %v268_v29, 0.0  ;;  %v203_v38 = vmul.f32 %v852_v1, %v589_v30  ;;  %v270_v39 = vadd.f32 %v857_v4, %v202_v31  ;;  %v593_v40 = vunpack.c.h.bf16 %v790_v23 }
  0x42   :  { %817 = vst [vmem:[%s1179_s3 + $0xc8] sm:$0xff] %v730_v33   ;;  %v735_v42 = vpack.c.bf16 %v331_v34, %v330_v28  ;;  %v333_v43 = vmax.f32 %v269_v35, 0.0  ;;  %v204_v44 = vmul.f32 %v852_v1, %v592_v36  ;;  %v596_v45 = vunpack.c.l.bf16 %v791_v32 }
  0x43   :  { %v271_v46 = vadd.f32 %v857_v4, %v203_v38  ;;  %v334_v47 = vmax.f32 %v270_v39, 0.0  ;;  %v205_v48 = vmul.f32 %v852_v1, %v593_v40  ;;  %v597_v49 = vunpack.c.h.bf16 %v791_v32 }
  0x44   :  { %818 = vst [vmem:[%s1179_s3 + $0xd0] sm:$0xff] %v735_v42   ;;  %v740_v50 = vpack.c.bf16 %v333_v43, %v332_v37  ;;  %v272_v51 = vadd.f32 %v857_v4, %v204_v44  ;;  %v206_v52 = vmul.f32 %v852_v1, %v596_v45  ;;  %v600_v53 = vunpack.c.l.bf16 %v792_v41 }
  0x45   :  { %v335_v54 = vmax.f32 %v271_v46, 0.0  ;;  %v273_v55 = vadd.f32 %v857_v4, %v205_v48  ;;  %v207_v56 = vmul.f32 %v852_v1, %v597_v49  ;;  %v601_v57 = vunpack.c.h.bf16 %v792_v41 }
  0x46   :  { %819 = vst [vmem:[%s1179_s3 + $0xd8] sm:$0xff] %v740_v50   ;;  %v336_v58 = vmax.f32 %v272_v51, 0.0  ;;  %v274_v59 = vadd.f32 %v857_v4, %v206_v52  ;;  %v208_v60 = vmul.f32 %v852_v1, %v600_v53 }
  0x47   :  { %v745_v61 = vpack.c.bf16 %v335_v54, %v334_v47  ;;  %v337_v62 = vmax.f32 %v273_v55, 0.0  ;;  %v275_v63 = vadd.f32 %v857_v4, %v207_v56  ;;  %v209_v0 = vmul.f32 %v852_v1, %v601_v57 }
  0x48   :  { %v338_v2 = vmax.f32 %v274_v59, 0.0  ;;  %v276_v3 = vadd.f32 %v857_v4, %v208_v60 }
  0x49   :  { %820 = vst [vmem:[%s1179_s3 + $0xe0] sm:$0xff] %v745_v61   ;;  %v750_v5 = vpack.c.bf16 %v337_v62, %v336_v58  ;;  %v339_v6 = vmax.f32 %v275_v63, 0.0  ;;  %v277_v7 = vadd.f32 %v857_v4, %v209_v0 }
  0x4a   :  { %v340_v8 = vmax.f32 %v276_v3, 0.0 }
  0x4b   :  { %821 = vst [vmem:[%s1179_s3 + $0xe8] sm:$0xff] %v750_v5   ;;  %v755_v9 = vpack.c.bf16 %v339_v6, %v338_v2  ;;  %v341_v10 = vmax.f32 %v277_v7, 0.0 }
  0x4d   :  { %822 = vst [vmem:[%s1179_s3 + $0xf0] sm:$0xff] %v755_v9   ;;  %v760_v1 = vpack.c.bf16 %v341_v10, %v340_v8 }
  0x4f   :  { %823 = vst [vmem:[%s1179_s3 + $0xf8] sm:$0xff] %v760_v1  }

// kernel: discriminator_forward.14
= control target key start
LH: loop header
LB: loop body
LE: loop exit
PB: predicated region body
PF: predicated region fallthrough
CT: control target
= control target key end

     0   :  { %vm425_vm0 = vcmask 1040384   ;;  %s874_s1 = inlined_call_operand.vmem [shape: bf16[256,128], index: 1, kind: input, shape index: {}]   ;;  %s875_s0 = inlined_call_operand.vmem [shape: bf16[128,256], index: 0, kind: input, shape index: {}]   ;;  %s876_s2 = inlined_call_operand.vmem [shape: bf16[128,128], index: 2, kind: output, shape index: {0}]   ;;  %s877_s3 = inlined_call_operand.vmem [shape: f32[1,2,128], index: 3, kind: output, shape index: {1}]  }
   0x1   :  { %v587_v0 = vld [vmem:[%s874_s1 + $0x38] sm:$0xff]  ;;  %v586_v2 = vld [vmem:[%s874_s1 + $0x30] sm:$0xff]  ;;  %v585_v4 = vld [vmem:[%s874_s1 + $0x28] sm:$0xff] }
   0x2   :  { %v595_v1 = vld [vmem:[%s874_s1 + $0x78] sm:$0xff]  ;;  %237 = vmatpush.bf16.msra.mxu0 %v587_v0  ;;  %v594_v3 = vld [vmem:[%s874_s1 + $0x70] sm:$0xff]  ;;  %643 = vmatpush.bf16.msra.mxu2 %v587_v0  ;;  %v593_v5 = vld [vmem:[%s874_s1 + $0x68] sm:$0xff] }
   0x3   :  { %286 = vmatpush.bf16.msra.mxu1 %v595_v1  ;;  %651 = vmatpush.bf16.msra.mxu3 %v595_v1  ;;  %v584_v6 = vld [vmem:[%s874_s1 + $0x20] sm:$0xff]  ;;  %v583_v8 = vld [vmem:[%s874_s1 + $0x18] sm:$0xff]  ;;  %v582_v10 = vld [vmem:[%s874_s1 + $0x10] sm:$0xff] }
   0x4   :  { %v592_v7 = vld [vmem:[%s874_s1 + $0x60] sm:$0xff]  ;;  %v591_v9 = vld [vmem:[%s874_s1 + $0x58] sm:$0xff]  ;;  %v590_v11 = vld [vmem:[%s874_s1 + $0x50] sm:$0xff] }
   0x5   :  { %v581_v12 = vld [vmem:[%s874_s1 + $0x8] sm:$0xff]  ;;  %v580_v14 = vld [vmem:[%s874_s1] sm:$0xff]  ;;  %v446_v28 = vld [vmem:[%s875_s0 + $0x10] sm:$0xf] }
   0x6   :  { %238 = vmatpush.bf16.msra.mxu0 %v586_v2  ;;  %644 = vmatpush.bf16.msra.mxu2 %v586_v2  ;;  %v589_v13 = vld [vmem:[%s874_s1 + $0x48] sm:$0xff]  ;;  %v588_v15 = vld [vmem:[%s874_s1 + $0x40] sm:$0xff]  ;;  %v567_v29 = vld [vmem:[%s875_s0 + $0x14] sm:$0xf0] }
   0x7   :  { %287 = vmatpush.bf16.msra.mxu1 %v594_v3  ;;  %652 = vmatpush.bf16.msra.mxu3 %v594_v3  ;;  %v438_v16 = vld [vmem:[%s875_s0] sm:$0xf]  ;;  %v565_v17 = vld [vmem:[%s875_s0 + $0x4] sm:$0xf0]  ;;  %v564_v18 = vld [vmem:[%s875_s0 + $0x4] sm:$0xf]  ;;  %v447_v36 = vor.u32 %v567_v29, %v446_v28 }
   0x8   :  { %v440_v19 = vld [vmem:[%s875_s0 + $0x8] sm:$0xf0]  ;;  %v470_v20 = vld [vmem:[%s875_s0 + $0x40] sm:$0xf]  ;;  %v573_v21 = vld [vmem:[%s875_s0 + $0x44] sm:$0xf0]  ;;  %v439_v24 = vor.u32 %v565_v17, %v438_v16 }
   0x9   :  { %v572_v22 = vld [vmem:[%s875_s0 + $0x44] sm:$0xf]  ;;  %v472_v23 = vld [vmem:[%s875_s0 + $0x48] sm:$0xf0]  ;;  %v443_v25 = vor.u32 %v564_v18, %v440_v19  ;;  %v471_v26 = vor.u32 %v573_v21, %v470_v20  ;;  %v566_v30 = vld [vmem:[%s875_s0 + $0x14] sm:$0xf] }
   0xa   :  { %239 = vmatpush.bf16.msra.mxu0 %v585_v4  ;;  %645 = vmatpush.bf16.msra.mxu2 %v585_v4  ;;  %v475_v27 = vor.u32 %v572_v22, %v472_v23  ;;  %v448_v31 = vld [vmem:[%s875_s0 + $0x18] sm:$0xf0]  ;;  %v478_v32 = vld [vmem:[%s875_s0 + $0x50] sm:$0xf]  ;;  %v575_v33 = vld [vmem:[%s875_s0 + $0x54] sm:$0xf0] }
   0xb   :  { %288 = vmatpush.bf16.msra.mxu1 %v593_v5  ;;  %653 = vmatpush.bf16.msra.mxu3 %v593_v5  ;;  %v574_v34 = vld [vmem:[%s875_s0 + $0x54] sm:$0xf]  ;;  %v480_v35 = vld [vmem:[%s875_s0 + $0x58] sm:$0xf0]  ;;  %v451_v37 = vor.u32 %v566_v30, %v448_v31  ;;  %v479_v38 = vor.u32 %v575_v33, %v478_v32  ;;  %v454_v40 = vld [vmem:[%s875_s0 + $0x20] sm:$0xf] }
   0xc   :  { %v483_v39 = vor.u32 %v574_v34, %v480_v35  ;;  %v569_v41 = vld [vmem:[%s875_s0 + $0x24] sm:$0xf0]  ;;  %v568_v42 = vld [vmem:[%s875_s0 + $0x24] sm:$0xf]  ;;  %v456_v43 = vld [vmem:[%s875_s0 + $0x28] sm:$0xf0] }
   0xd   :  { %v486_v44 = vld [vmem:[%s875_s0 + $0x60] sm:$0xf]  ;;  %v577_v45 = vld [vmem:[%s875_s0 + $0x64] sm:$0xf0]  ;;  %v576_v46 = vld [vmem:[%s875_s0 + $0x64] sm:$0xf]  ;;  %v455_v48 = vor.u32 %v569_v41, %v454_v40  ;;  %v459_v49 = vor.u32 %v568_v42, %v456_v43 }
   0xe   :  { %240 = vmatpush.bf16.msra.mxu0 %v584_v6  ;;  %646 = vmatpush.bf16.msra.mxu2 %v584_v6  ;;  %v488_v47 = vld [vmem:[%s875_s0 + $0x68] sm:$0xf0]  ;;  %v487_v50 = vor.u32 %v577_v45, %v486_v44  ;;  %v462_v52 = vld [vmem:[%s875_s0 + $0x30] sm:$0xf]  ;;  %v571_v53 = vld [vmem:[%s875_s0 + $0x34] sm:$0xf0] }
   0xf   :  { %289 = vmatpush.bf16.msra.mxu1 %v592_v7  ;;  %654 = vmatpush.bf16.msra.mxu3 %v592_v7  ;;  %v491_v51 = vor.u32 %v576_v46, %v488_v47  ;;  %v570_v54 = vld [vmem:[%s875_s0 + $0x34] sm:$0xf]  ;;  %v464_v55 = vld [vmem:[%s875_s0 + $0x38] sm:$0xf0]  ;;  %v494_v56 = vld [vmem:[%s875_s0 + $0x70] sm:$0xf]  ;;  %v463_v60 = vor.u32 %v571_v53, %v462_v52 }
  0x10   :  { %v579_v57 = vld [vmem:[%s875_s0 + $0x74] sm:$0xf0]  ;;  %v578_v58 = vld [vmem:[%s875_s0 + $0x74] sm:$0xf]  ;;  %v496_v59 = vld [vmem:[%s875_s0 + $0x78] sm:$0xf0]  ;;  %v467_v61 = vor.u32 %v570_v54, %v464_v55 }
  0x11   :  { %v495_v62 = vor.u32 %v579_v57, %v494_v56  ;;  %v499_v63 = vor.u32 %v578_v58, %v496_v59 }
  0x12   :  { %241 = vmatpush.bf16.msra.mxu0 %v583_v8  ;;  %647 = vmatpush.bf16.msra.mxu2 %v583_v8 }
  0x13   :  { %290 = vmatpush.bf16.msra.mxu1 %v591_v9  ;;  %655 = vmatpush.bf16.msra.mxu3 %v591_v9 }
  0x16   :  { %242 = vmatpush.bf16.msra.mxu0 %v582_v10  ;;  %648 = vmatpush.bf16.msra.mxu2 %v582_v10 }
  0x17   :  { %291 = vmatpush.bf16.msra.mxu1 %v590_v11  ;;  %656 = vmatpush.bf16.msra.mxu3 %v590_v11 }
  0x1a   :  { %243 = vmatpush.bf16.msra.mxu0 %v581_v12  ;;  %649 = vmatpush.bf16.msra.mxu2 %v581_v12 }
  0x1b   :  { %292 = vmatpush.bf16.msra.mxu1 %v589_v13  ;;  %657 = vmatpush.bf16.msra.mxu3 %v589_v13 }
  0x1e   :  { %244 = vmatpush.bf16.msra.mxu0 %v580_v14  ;;  %650 = vmatpush.bf16.msra.mxu2 %v580_v14 }
  0x1f   :  { %293 = vmatpush.bf16.msra.mxu1 %v588_v15  ;;  %658 = vmatpush.bf16.msra.mxu3 %v588_v15 }
  0x21   :  { %245 = vmatmul.bf16.vlgmr.msra.gmra.mxu0 %v439_v24  ;;  %265 = vmatmul.bf16.vlgmr.msra.gmra.mxu2 %v471_v26 }
  0x22   :  { %294 = vmatmul.bf16.vlgmr.msra.gmra.mxu1 %v443_v25  ;;  %314 = vmatmul.bf16.vlgmr.msra.gmra.mxu3 %v475_v27 }
  0x31   :  { %250 = vmatmul.bf16.gmra.mxu0 %v447_v36  ;;  %270 = vmatmul.bf16.gmra.mxu2 %v479_v38 }
  0x32   :  { %299 = vmatmul.bf16.gmra.mxu1 %v451_v37  ;;  %319 = vmatmul.bf16.gmra.mxu3 %v483_v39 }
  0x41   :  { %255 = vmatmul.bf16.gmra.mxu0 %v455_v48  ;;  %275 = vmatmul.bf16.gmra.mxu2 %v487_v50 }
  0x42   :  { %304 = vmatmul.bf16.gmra.mxu1 %v459_v49  ;;  %324 = vmatmul.bf16.gmra.mxu3 %v491_v51 }
  0x51   :  { %260 = vmatmul.bf16.gmra.mxu0 %v463_v60  ;;  %280 = vmatmul.bf16.gmra.mxu2 %v495_v62 }
  0x52   :  { %309 = vmatmul.bf16.gmra.mxu1 %v467_v61  ;;  %329 = vmatmul.bf16.gmra.mxu3 %v499_v63 }
  0x9e   :  { %v246_v0 = vpop.f32.mrf.mxu0 }
  0x9f   :  { %v295_v1 = vpop.f32.mrf.mxu1 }
  0xa0   :  { %v296_v6 = vadd.f32 %v295_v1, %v246_v0 }
  0xa2   :  { %v388_v39 = vmul.f32 %v296_v6, %v296_v6 }
  0xa4   :  { %v266_v2 = vpop.f32.mrf.mxu2 }
  0xa5   :  { %v315_v3 = vpop.f32.mrf.mxu3 }
  0xa6   :  { %v248_v4 = vpop.f32.mrf.mxu0  ;;  %v826_v9 = vadd.f32 %v315_v3, %v266_v2 }
  0xa7   :  { %v297_v5 = vpop.f32.mrf.mxu1 }
  0xa8   :  { %v298_v7 = vadd.f32 %v297_v5, %v248_v4 }
  0xaa   :  { %v599_v8 = vpack.c.bf16 %v298_v7, %v296_v6  ;;  %v389_v37 = vmul.f32 %v298_v7, %v298_v7  ;;  %v367_v40 = vadd.f32 %v298_v7, %v296_v6 }
  0xac   :  { %600 = vst [vmem:[%s876_s2] sm:$0xff] %v599_v8   ;;  %v268_v10 = vpop.f32.mrf.mxu2  ;;  %v404_v47 = vadd.f32 %v389_v37, %v388_v39  ;;  %v396_v8 = vmul.f32 %v826_v9, %v826_v9 }
  0xad   :  { %v317_v11 = vpop.f32.mrf.mxu3 }
  0xae   :  { %v251_v12 = vpop.f32.mrf.mxu0  ;;  %v828_v14 = vadd.f32 %v317_v11, %v268_v10 }
  0xaf   :  { %v300_v13 = vpop.f32.mrf.mxu1 }
  0xb0   :  { %v619_v15 = vpack.c.bf16 %v828_v14, %v826_v9  ;;  %v301_v20 = vadd.f32 %v300_v13, %v251_v12  ;;  %v397_v13 = vmul.f32 %v828_v14, %v828_v14 }
  0xb2   :  { %639 = vst [vmem:[%s876_s2 + $0x20] sm:$0xff] %v619_v15   ;;  %v390_v41 = vmul.f32 %v301_v20, %v301_v20  ;;  %v368_v48 = vadd.f32 %v367_v40, %v301_v20 }
  0xb4   :  { %v271_v16 = vpop.f32.mrf.mxu2  ;;  %v405_v51 = vadd.f32 %v404_v47, %v390_v41 }
  0xb5   :  { %v320_v17 = vpop.f32.mrf.mxu3 }
  0xb6   :  { %v253_v18 = vpop.f32.mrf.mxu0  ;;  %v838_v23 = vadd.f32 %v320_v17, %v271_v16 }
  0xb7   :  { %v302_v19 = vpop.f32.mrf.mxu1 }
  0xb8   :  { %v303_v21 = vadd.f32 %v302_v19, %v253_v18 }
  0xba   :  { %v604_v22 = vpack.c.bf16 %v303_v21, %v301_v20  ;;  %v391_v49 = vmul.f32 %v303_v21, %v303_v21  ;;  %v369_v52 = vadd.f32 %v368_v48, %v303_v21  ;;  %v398_v20 = vmul.f32 %v838_v23, %v838_v23 }
  0xbc   :  { %636 = vst [vmem:[%s876_s2 + $0x8] sm:$0xff] %v604_v22   ;;  %v273_v24 = vpop.f32.mrf.mxu2  ;;  %v406_v55 = vadd.f32 %v405_v51, %v391_v49 }
  0xbd   :  { %v322_v25 = vpop.f32.mrf.mxu3 }
  0xbe   :  { %v256_v26 = vpop.f32.mrf.mxu0  ;;  %v840_v28 = vadd.f32 %v322_v25, %v273_v24 }
  0xbf   :  { %v305_v27 = vpop.f32.mrf.mxu1 }
  0xc0   :  { %v624_v29 = vpack.c.bf16 %v840_v28, %v838_v23  ;;  %v306_v34 = vadd.f32 %v305_v27, %v256_v26 }
  0xc2   :  { %640 = vst [vmem:[%s876_s2 + $0x28] sm:$0xff] %v624_v29   ;;  %v392_v53 = vmul.f32 %v306_v34, %v306_v34  ;;  %v370_v56 = vadd.f32 %v369_v52, %v306_v34 }
  0xc4   :  { %v276_v30 = vpop.f32.mrf.mxu2  ;;  %v407_v58 = vadd.f32 %v406_v55, %v392_v53 }
  0xc5   :  { %v325_v31 = vpop.f32.mrf.mxu3 }
  0xc6   :  { %v258_v32 = vpop.f32.mrf.mxu0  ;;  %v326_v38 = vadd.f32 %v325_v31, %v276_v30 }
  0xc7   :  { %v307_v33 = vpop.f32.mrf.mxu1 }
  0xc8   :  { %v308_v35 = vadd.f32 %v307_v33, %v258_v32 }
  0xca   :  { %v609_v36 = vpack.c.bf16 %v308_v35, %v306_v34  ;;  %v393_v57 = vmul.f32 %v308_v35, %v308_v35  ;;  %v371_v59 = vadd.f32 %v370_v56, %v308_v35 }
  0xcc   :  { %637 = vst [vmem:[%s876_s2 + $0x10] sm:$0xff] %v609_v36   ;;  %v278_v42 = vpop.f32.mrf.mxu2  ;;  %v408_v1 = vadd.f32 %v407_v58, %v393_v57 }
  0xcd   :  { %v327_v43 = vpop.f32.mrf.mxu3 }
  0xce   :  { %v261_v44 = vpop.f32.mrf.mxu0  ;;  %v328_v46 = vadd.f32 %v327_v43, %v278_v42 }
  0xcf   :  { %v310_v45 = vpop.f32.mrf.mxu1 }
  0xd0   :  { %v629_v50 = vpack.c.bf16 %v328_v46, %v326_v38  ;;  %v311_v54 = vadd.f32 %v310_v45, %v261_v44  ;;  %v401_v30 = vmul.f32 %v328_v46, %v328_v46 }
  0xd2   :  { %641 = vst [vmem:[%s876_s2 + $0x30] sm:$0xff] %v629_v50   ;;  %v394_v60 = vmul.f32 %v311_v54, %v311_v54  ;;  %v372_v2 = vadd.f32 %v371_v59, %v311_v54 }
  0xd4   :  { %v281_v61 = vpop.f32.mrf.mxu2  ;;  %v409_v4 = vadd.f32 %v408_v1, %v394_v60 }
  0xd5   :  { %v330_v62 = vpop.f32.mrf.mxu3 }
  0xd6   :  { %v263_v63 = vpop.f32.mrf.mxu0  ;;  %v331_v12 = vadd.f32 %v330_v62, %v281_v61 }
  0xd7   :  { %v312_v0 = vpop.f32.mrf.mxu1 }
  0xd8   :  { %v313_v3 = vadd.f32 %v312_v0, %v263_v63 }
  0xda   :  { %v614_v5 = vpack.c.bf16 %v313_v3, %v311_v54  ;;  %v373_v6 = vadd.f32 %v372_v2, %v313_v3  ;;  %v395_v7 = vmul.f32 %v313_v3, %v313_v3 }
  0xdc   :  { %638 = vst [vmem:[%s876_s2 + $0x18] sm:$0xff] %v614_v5   ;;  %v374_v10 = vadd.f32 %v373_v6, %v826_v9  ;;  %v410_v11 = vadd.f32 %v409_v4, %v395_v7  ;;  %v283_v17 = vpop.f32.mrf.mxu2  ;;  %v399_v9 = vmul.f32 %v840_v28, %v840_v28 }
  0xdd   :  { %v332_v18 = vpop.f32.mrf.mxu3 }
  0xde   :  { %v375_v15 = vadd.f32 %v374_v10, %v828_v14  ;;  %v411_v16 = vadd.f32 %v410_v11, %v396_v8  ;;  %v333_v19 = vadd.f32 %v332_v18, %v283_v17  ;;  %v400_v14 = vmul.f32 %v326_v38, %v326_v38 }
  0xe0   :  { %v376_v21 = vadd.f32 %v375_v15, %v838_v23  ;;  %v412_v22 = vadd.f32 %v411_v16, %v397_v13  ;;  %v634_v24 = vpack.c.bf16 %v333_v19, %v331_v12  ;;  %v402_v23 = vmul.f32 %v331_v12, %v331_v12 }
  0xe1   :  { %v403_v37 = vmul.f32 %v333_v19, %v333_v19 }
  0xe2   :  { %v413_v25 = vadd.f32 %v412_v22, %v398_v20  ;;  %v377_v26 = vadd.f32 %v376_v21, %v840_v28  ;;  %642 = vst [vmem:[%s876_s2 + $0x38] sm:$0xff] %v634_v24  }
  0xe4   :  { %v378_v27 = vadd.f32 %v377_v26, %v326_v38  ;;  %v414_v29 = vadd.f32 %v413_v25, %v399_v9 }
  0xe6   :  { %v379_v31 = vadd.f32 %v378_v27, %v328_v46  ;;  %v415_v32 = vadd.f32 %v414_v29, %v400_v14 }
  0xe8   :  { %v380_v33 = vadd.f32 %v379_v31, %v331_v12  ;;  %v416_v34 = vadd.f32 %v415_v32, %v401_v30 }
  0xea   :  { %v417_v35 = vadd.f32 %v416_v34, %v402_v23  ;;  %v381_v36 = vadd.f32 %v380_v33, %v333_v19 }
  0xec   :  { %v382_v39 = vrot.slane %v381_v36, 4  ;;  %v418_v40 = vadd.f32 %v417_v35, %v403_v37 }
  0xee   :  { %v383_v41 = vadd.f32 %v382_v39, %v381_v36  ;;  %v419_v28 = vrot.slane %v418_v40, 4 }
  0xf0   :  { %v384_v42 = vrot.slane %v383_v41, 2  ;;  %v420_v43 = vadd.f32 %v419_v28, %v418_v40 }
  0xf2   :  { %v385_v44 = vadd.f32 %v384_v42, %v383_v41  ;;  %v421_v45 = vrot.slane %v420_v43, 2 }
  0xf4   :  { %v386_v47 = vrot.slane %v385_v44, 1  ;;  %v422_v38 = vadd.f32 %v421_v45, %v420_v43 }
  0xf6   :  { %v423_v48 = vrot.slane %v422_v38, 1  ;;  %v387_v46 = vadd.f32 %v386_v47, %v385_v44 }
  0xf8   :  { %v424_v49 = vadd.f32 %v423_v48, %v422_v38 }
  0xfa   :  { %v426_v50 = vsel %vm425_vm0, %v387_v46, %v424_v49 }
  0xfb   :  { %427 = vst [vmem:[%s877_s3] sm:$0x3] %v426_v50 }

// kernel: discriminator_forward.15
= control target key start
LH: loop header
LB: loop body
LE: loop exit
PB: predicated region body
PF: predicated region fallthrough
CT: control target
= control target key end

     0   :  { %s336_s0 = inlined_call_operand.vmem [shape: bf16[128,128], index: 0, kind: input, shape index: {}]   ;;  %s337_s1 = inlined_call_operand.vmem [shape: f32[1,128], index: 1, kind: input, shape index: {}]   ;;  %s338_s2 = inlined_call_operand.vmem [shape: f32[1,128], index: 2, kind: input, shape index: {}]   ;;  %s339_s3 = inlined_call_operand.vmem [shape: bf16[128,128], index: 3, kind: output, shape index: {}]  }
   0x1   :  { %v139_v0 = vld [vmem:[%s336_s0] sm:$0xff]   ;;  %v210_v5 = vld [vmem:[%s336_s0 + $0x8] sm:$0xff]   ;;  %v211_v8 = vld [vmem:[%s336_s0 + $0x10] sm:$0xff]  }
   0x2   :  { %v252_v1 = vld [vmem:[%s337_s1] ss:$0 sm:$0xff]  ;;  %v140_v2 = vunpack.c.l.bf16 %v139_v0  ;;  %v141_v3 = vunpack.c.h.bf16 %v139_v0  ;;  %v144_v6 = vunpack.c.l.bf16 %v210_v5  ;;  %v145_v7 = vunpack.c.h.bf16 %v210_v5  ;;  %v212_v9 = vld [vmem:[%s336_s0 + $0x18] sm:$0xff]   ;;  %v214_v35 = vld [vmem:[%s336_s0 + $0x28] sm:$0xff]  }
   0x3   :  { %v257_v4 = vld [vmem:[%s338_s2] ss:$0 sm:$0xff]  ;;  %v148_v12 = vunpack.c.l.bf16 %v211_v8  ;;  %v149_v13 = vunpack.c.h.bf16 %v211_v8  ;;  %v152_v16 = vunpack.c.l.bf16 %v212_v9  ;;  %v153_v17 = vunpack.c.h.bf16 %v212_v9  ;;  %v215_v40 = vld [vmem:[%s336_s0 + $0x30] sm:$0xff]   ;;  %v216_v45 = vld [vmem:[%s336_s0 + $0x38] sm:$0xff]  }
   0x4   :  { %v50_v10 = vmul.f32 %v252_v1, %v140_v2  ;;  %v51_v11 = vmul.f32 %v252_v1, %v141_v3  ;;  %v52_v14 = vmul.f32 %v252_v1, %v144_v6  ;;  %v53_v15 = vmul.f32 %v252_v1, %v145_v7  ;;  %v213_v26 = vld [vmem:[%s336_s0 + $0x20] sm:$0xff]  }
   0x5   :  { %v54_v20 = vmul.f32 %v252_v1, %v148_v12  ;;  %v55_v21 = vmul.f32 %v252_v1, %v149_v13  ;;  %v56_v24 = vmul.f32 %v252_v1, %v152_v16  ;;  %v57_v25 = vmul.f32 %v252_v1, %v153_v17 }
   0x6   :  { %v70_v18 = vadd.f32 %v257_v4, %v50_v10  ;;  %v71_v19 = vadd.f32 %v257_v4, %v51_v11  ;;  %v72_v22 = vadd.f32 %v257_v4, %v52_v14  ;;  %v73_v23 = vadd.f32 %v257_v4, %v53_v15 }
   0x7   :  { %v74_v29 = vadd.f32 %v257_v4, %v54_v20  ;;  %v75_v30 = vadd.f32 %v257_v4, %v55_v21  ;;  %v76_v33 = vadd.f32 %v257_v4, %v56_v24  ;;  %v77_v34 = vadd.f32 %v257_v4, %v57_v25 }
   0x8   :  { %v86_v27 = vmax.f32 %v70_v18, 0.0  ;;  %v87_v28 = vmax.f32 %v71_v19, 0.0  ;;  %v88_v31 = vmax.f32 %v72_v22, 0.0  ;;  %v89_v32 = vmax.f32 %v73_v23, 0.0 }
   0x9   :  { %v90_v37 = vmax.f32 %v74_v29, 0.0  ;;  %v91_v38 = vmax.f32 %v75_v30, 0.0  ;;  %v156_v39 = vunpack.c.l.bf16 %v213_v26  ;;  %v92_v42 = vmax.f32 %v76_v33, 0.0 }
   0xa   :  { %v173_v36 = vpack.c.bf16 %v87_v28, %v86_v27  ;;  %v178_v41 = vpack.c.bf16 %v89_v32, %v88_v31  ;;  %v93_v43 = vmax.f32 %v77_v34, 0.0  ;;  %v157_v44 = vunpack.c.h.bf16 %v213_v26 }
   0xb   :  { %v183_v46 = vpack.c.bf16 %v91_v38, %v90_v37  ;;  %v58_v47 = vmul.f32 %v252_v1, %v156_v39  ;;  %v160_v48 = vunpack.c.l.bf16 %v214_v35  ;;  %v161_v49 = vunpack.c.h.bf16 %v214_v35 }
   0xc   :  { %174 = vst [vmem:[%s339_s3] sm:$0xff] %v173_v36   ;;  %v188_v50 = vpack.c.bf16 %v93_v43, %v92_v42  ;;  %v59_v51 = vmul.f32 %v252_v1, %v157_v44  ;;  %v164_v52 = vunpack.c.l.bf16 %v215_v40  ;;  %v165_v53 = vunpack.c.h.bf16 %v215_v40 }
   0xd   :  { %217 = vst [vmem:[%s339_s3 + $0x8] sm:$0xff] %v178_v41   ;;  %v78_v54 = vadd.f32 %v257_v4, %v58_v47  ;;  %v60_v55 = vmul.f32 %v252_v1, %v160_v48  ;;  %v61_v56 = vmul.f32 %v252_v1, %v161_v49  ;;  %v168_v57 = vunpack.c.l.bf16 %v216_v45 }
   0xe   :  { %218 = vst [vmem:[%s339_s3 + $0x10] sm:$0xff] %v183_v46   ;;  %v79_v58 = vadd.f32 %v257_v4, %v59_v51  ;;  %v62_v59 = vmul.f32 %v252_v1, %v164_v52  ;;  %v63_v60 = vmul.f32 %v252_v1, %v165_v53  ;;  %v169_v61 = vunpack.c.h.bf16 %v216_v45 }
   0xf   :  { %219 = vst [vmem:[%s339_s3 + $0x18] sm:$0xff] %v188_v50   ;;  %v94_v62 = vmax.f32 %v78_v54, 0.0  ;;  %v80_v63 = vadd.f32 %v257_v4, %v60_v55  ;;  %v81_v0 = vadd.f32 %v257_v4, %v61_v56  ;;  %v64_v2 = vmul.f32 %v252_v1, %v168_v57 }
  0x10   :  { %v95_v3 = vmax.f32 %v79_v58, 0.0  ;;  %v82_v5 = vadd.f32 %v257_v4, %v62_v59  ;;  %v83_v6 = vadd.f32 %v257_v4, %v63_v60  ;;  %v65_v7 = vmul.f32 %v252_v1, %v169_v61 }
  0x11   :  { %v96_v8 = vmax.f32 %v80_v63, 0.0  ;;  %v97_v9 = vmax.f32 %v81_v0, 0.0  ;;  %v84_v10 = vadd.f32 %v257_v4, %v64_v2 }
  0x12   :  { %v193_v11 = vpack.c.bf16 %v95_v3, %v94_v62  ;;  %v98_v12 = vmax.f32 %v82_v5, 0.0  ;;  %v99_v13 = vmax.f32 %v83_v6, 0.0  ;;  %v85_v14 = vadd.f32 %v257_v4, %v65_v7 }
  0x13   :  { %v198_v15 = vpack.c.bf16 %v97_v9, %v96_v8  ;;  %v100_v16 = vmax.f32 %v84_v10, 0.0 }
  0x14   :  { %220 = vst [vmem:[%s339_s3 + $0x20] sm:$0xff] %v193_v11   ;;  %v203_v17 = vpack.c.bf16 %v99_v13, %v98_v12  ;;  %v101_v18 = vmax.f32 %v85_v14, 0.0 }
  0x15   :  { %221 = vst [vmem:[%s339_s3 + $0x28] sm:$0xff] %v198_v15  }
  0x16   :  { %222 = vst [vmem:[%s339_s3 + $0x30] sm:$0xff] %v203_v17   ;;  %v208_v1 = vpack.c.bf16 %v101_v18, %v100_v16 }
  0x18   :  { %223 = vst [vmem:[%s339_s3 + $0x38] sm:$0xff] %v208_v1  }

// kernel: discriminator_forward.17
= control target key start
LH: loop header
LB: loop body
LE: loop exit
PB: predicated region body
PF: predicated region fallthrough
CT: control target
= control target key end

     0   :  { %v63_v26 = vlaneseq  ;;  %vm68_vm0 = vcmask 130112   ;;  %vm73_vm1 = vcmask 1041409   ;;  %vm76_vm2 = vcmask 123904   ;;  %s143_s0 = inlined_call_operand.vmem [shape: bf16[32,128], index: 0, kind: input, shape index: {}]   ;;  %s144_s1 = inlined_call_operand.vmem [shape: f32[1,128], index: 1, kind: input, shape index: {}]   ;;  %s145_s2 = inlined_call_operand.vmem [shape: f32[1,128], index: 2, kind: input, shape index: {}]   ;;  %s146_s3 = inlined_call_operand.vmem [shape: f32[16,128], index: 3, kind: input, shape index: {}]   ;;  %s147_s4 = inlined_call_operand.vmem [shape: f32[2,1], index: 4, kind: output, shape index: {}]  }
   0x1   :  { %v94_v0 = vld [vmem:[%s143_s0 + $0x8] sm:$0xff]   ;;  %v95_v1 = vld [vmem:[%s144_s1] ss:$0 sm:$0xff]  ;;  %vm80_vm3 = vcmask 1024  }
   0x2   :  { %v92_v2 = vunpack.c.l.bf16 %v94_v0  ;;  %v96_v3 = vld [vmem:[%s145_s2] ss:$0 sm:$0xff]  ;;  %v93_v4 = vunpack.c.h.bf16 %v94_v0  ;;  %v46_v22 = vld [vmem:[%s146_s3 + $0x8] sm:$0xff]  ;;  %v64_v29 = vand.u32 127, %v63_v26 }
   0x3   :  { %v87_v5 = vld [vmem:[%s143_s0] sm:$0xff]  }
   0x4   :  { %v31_v6 = vmul.f32 %v95_v1, %v92_v2  ;;  %v88_v7 = vunpack.c.l.bf16 %v87_v5  ;;  %v32_v8 = vmul.f32 %v95_v1, %v93_v4  ;;  %v89_v9 = vunpack.c.h.bf16 %v87_v5  ;;  %v45_v13 = vld [vmem:[%s146_s3] sm:$0xff] }
   0x5   :  { %v66_v30 = vadd.s32 4294967288, %v64_v29 }
   0x6   :  { %v39_v10 = vadd.f32 %v96_v3, %v31_v6  ;;  %v29_v11 = vmul.f32 %v95_v1, %v88_v7  ;;  %v30_v12 = vmul.f32 %v95_v1, %v89_v9  ;;  %v40_v16 = vadd.f32 %v96_v3, %v32_v8 }
   0x8   :  { %v43_v14 = vmax.f32 %v39_v10, 0.0  ;;  %v37_v15 = vadd.f32 %v96_v3, %v29_v11  ;;  %v38_v19 = vadd.f32 %v96_v3, %v30_v12  ;;  %v44_v21 = vmax.f32 %v40_v16, 0.0 }
   0xa   :  { %v49_v17 = vmul.f32 %v45_v13, %v43_v14  ;;  %v41_v18 = vmax.f32 %v37_v15, 0.0  ;;  %v42_v23 = vmax.f32 %v38_v19, 0.0  ;;  %v50_v24 = vmul.f32 %v46_v22, %v44_v21 }
   0xc   :  { %55 = vadd.xlane.f32.xlu1 %v49_v17  ;;  %v47_v20 = vmul.f32 %v45_v13, %v41_v18  ;;  %v48_v25 = vmul.f32 %v46_v22, %v42_v23 }
   0xe   :  { %51 = vadd.xlane.f32.xlu0 %v47_v20 }
  0x14   :  { %57 = vadd.xlane.f32.xlu1 %v50_v24 }
  0x16   :  { %53 = vadd.xlane.f32.xlu0 %v48_v25 }
  0x7f   :  { %v56_v27 = vpop.xlane.xlu1 %55 }
  0x80   :  { %v70_v32 = vperm.slane %v56_v27, %v64_v29 }
  0x81   :  { %v52_v28 = vpop.xlane.xlu0 %51 }
  0x82   :  { %v65_v35 = vperm.slane %v52_v28, %v64_v29 }
  0x87   :  { %v58_v31 = vpop.xlane.xlu1 %57 }
  0x88   :  { %v71_v33 = vperm.slane %v58_v31, %v66_v30 }
  0x89   :  { %v54_v34 = vpop.xlane.xlu0 %53 }
  0x8a   :  { %v67_v36 = vperm.slane %v54_v34, %v66_v30  ;;  %v72_v37 = vsel %vm68_vm0, %v71_v33, %v70_v32 }
  0x8c   :  { %v69_v38 = vsel %vm68_vm0, %v67_v36, %v65_v35 }
  0x8d   :  { %v74_v39 = vsel %vm73_vm1, %v72_v37, %v69_v38 }
  0x8e   :  { %v77_v40 = vsel %vm76_vm2, %v74_v39, 0.0 }
  0x8f   :  { %78 = vadd.xlane.f32.xlu2 %v77_v40 }
 0x102   :  { %v79_v41 = vpop.xlane.xlu2 %78 }
 0x103   :  { %81 = vst.msk [vmem:[%s147_s4] sm:$0x3] %vm80_vm3, %v79_v41 }

// kernel: discriminator_forward.16
= control target key start
LH: loop header
LB: loop body
LE: loop exit
PB: predicated region body
PF: predicated region fallthrough
CT: control target
= control target key end

     0   :  { %vm423_vm0 = vcmask 1040384   ;;  %s818_s1 = inlined_call_operand.vmem [shape: bf16[512,128], index: 1, kind: input, shape index: {}]   ;;  %s819_s0 = inlined_call_operand.vmem [shape: bf16[32,512], index: 0, kind: input, shape index: {}]   ;;  %s820_s2 = inlined_call_operand.vmem [shape: bf16[32,128], index: 2, kind: output, shape index: {0}]   ;;  %s821_s3 = inlined_call_operand.vmem [shape: f32[1,2,128], index: 3, kind: output, shape index: {1}]  }
   0x1   :  { %v609_v0 = vld [vmem:[%s818_s1 + $0x38] sm:$0xff]  ;;  %v608_v4 = vld [vmem:[%s818_s1 + $0x30] sm:$0xff]  ;;  %v607_v8 = vld [vmem:[%s818_s1 + $0x28] sm:$0xff] }
   0x2   :  { %v617_v1 = vld [vmem:[%s818_s1 + $0x78] sm:$0xff]  ;;  %317 = vmatpush.bf16.msra.mxu0 %v609_v0  ;;  %v616_v5 = vld [vmem:[%s818_s1 + $0x70] sm:$0xff]  ;;  %v615_v9 = vld [vmem:[%s818_s1 + $0x68] sm:$0xff] }
   0x3   :  { %v625_v2 = vld [vmem:[%s818_s1 + $0xb8] sm:$0xff]  ;;  %336 = vmatpush.bf16.msra.mxu1 %v617_v1  ;;  %v624_v6 = vld [vmem:[%s818_s1 + $0xb0] sm:$0xff]  ;;  %v623_v10 = vld [vmem:[%s818_s1 + $0xa8] sm:$0xff] }
   0x4   :  { %v633_v3 = vld [vmem:[%s818_s1 + $0xf8] sm:$0xff]  ;;  %355 = vmatpush.bf16.msra.mxu2 %v625_v2  ;;  %v632_v7 = vld [vmem:[%s818_s1 + $0xf0] sm:$0xff]  ;;  %v631_v11 = vld [vmem:[%s818_s1 + $0xe8] sm:$0xff] }
   0x5   :  { %374 = vmatpush.bf16.msra.mxu3 %v633_v3  ;;  %v606_v12 = vld [vmem:[%s818_s1 + $0x20] sm:$0xff]  ;;  %v605_v16 = vld [vmem:[%s818_s1 + $0x18] sm:$0xff]  ;;  %v604_v20 = vld [vmem:[%s818_s1 + $0x10] sm:$0xff] }
   0x6   :  { %318 = vmatpush.bf16.msra.mxu0 %v608_v4  ;;  %v614_v13 = vld [vmem:[%s818_s1 + $0x60] sm:$0xff]  ;;  %v613_v17 = vld [vmem:[%s818_s1 + $0x58] sm:$0xff]  ;;  %v612_v21 = vld [vmem:[%s818_s1 + $0x50] sm:$0xff] }
   0x7   :  { %337 = vmatpush.bf16.msra.mxu1 %v616_v5  ;;  %v622_v14 = vld [vmem:[%s818_s1 + $0xa0] sm:$0xff]  ;;  %v621_v18 = vld [vmem:[%s818_s1 + $0x98] sm:$0xff]  ;;  %v620_v22 = vld [vmem:[%s818_s1 + $0x90] sm:$0xff] }
   0x8   :  { %356 = vmatpush.bf16.msra.mxu2 %v624_v6  ;;  %v630_v15 = vld [vmem:[%s818_s1 + $0xe0] sm:$0xff]  ;;  %v629_v19 = vld [vmem:[%s818_s1 + $0xd8] sm:$0xff]  ;;  %v628_v23 = vld [vmem:[%s818_s1 + $0xd0] sm:$0xff] }
   0x9   :  { %375 = vmatpush.bf16.msra.mxu3 %v632_v7  ;;  %v603_v24 = vld [vmem:[%s818_s1 + $0x8] sm:$0xff]  ;;  %v602_v28 = vld [vmem:[%s818_s1] sm:$0xff]  ;;  %v596_v33 = vld [vmem:[%s819_s0 + $0xc] sm:$0xf0] }
   0xa   :  { %319 = vmatpush.bf16.msra.mxu0 %v607_v8  ;;  %v611_v25 = vld [vmem:[%s818_s1 + $0x48] sm:$0xff]  ;;  %v610_v29 = vld [vmem:[%s818_s1 + $0x40] sm:$0xff]  ;;  %v438_v35 = vld [vmem:[%s819_s0 + $0x10] sm:$0xf0] }
   0xb   :  { %338 = vmatpush.bf16.msra.mxu1 %v615_v9  ;;  %v619_v26 = vld [vmem:[%s818_s1 + $0x88] sm:$0xff]  ;;  %v618_v30 = vld [vmem:[%s818_s1 + $0x80] sm:$0xff]  ;;  %v597_v37 = vld [vmem:[%s819_s0 + $0x14] sm:$0xf0] }
   0xc   :  { %357 = vmatpush.bf16.msra.mxu2 %v623_v10  ;;  %v627_v27 = vld [vmem:[%s818_s1 + $0xc8] sm:$0xff]  ;;  %v626_v31 = vld [vmem:[%s818_s1 + $0xc0] sm:$0xff]  ;;  %v446_v39 = vld [vmem:[%s819_s0 + $0x18] sm:$0xf0] }
   0xd   :  { %376 = vmatpush.bf16.msra.mxu3 %v631_v11  ;;  %v436_v32 = vld [vmem:[%s819_s0] sm:$0xf]  ;;  %v594_v34 = vld [vmem:[%s819_s0 + $0x4] sm:$0xf]  ;;  %v444_v36 = vld [vmem:[%s819_s0 + $0x8] sm:$0xf] }
   0xe   :  { %320 = vmatpush.bf16.msra.mxu0 %v606_v12  ;;  %v595_v38 = vld [vmem:[%s819_s0 + $0xc] sm:$0xf]  ;;  %v437_v40 = vor.u32 %v596_v33, %v436_v32  ;;  %v441_v41 = vor.u32 %v594_v34, %v438_v35  ;;  %v445_v42 = vor.u32 %v597_v37, %v444_v36  ;;  %v452_v44 = vld [vmem:[%s819_s0 + $0x20] sm:$0xf]  ;;  %v600_v45 = vld [vmem:[%s819_s0 + $0x2c] sm:$0xf0] }
   0xf   :  { %339 = vmatpush.bf16.msra.mxu1 %v614_v13  ;;  %v449_v43 = vor.u32 %v595_v38, %v446_v39  ;;  %v598_v46 = vld [vmem:[%s819_s0 + $0x24] sm:$0xf]  ;;  %v454_v47 = vld [vmem:[%s819_s0 + $0x30] sm:$0xf0]  ;;  %v460_v48 = vld [vmem:[%s819_s0 + $0x28] sm:$0xf]  ;;  %v453_v52 = vor.u32 %v600_v45, %v452_v44 }
  0x10   :  { %358 = vmatpush.bf16.msra.mxu2 %v622_v14  ;;  %v601_v49 = vld [vmem:[%s819_s0 + $0x34] sm:$0xf0]  ;;  %v599_v50 = vld [vmem:[%s819_s0 + $0x2c] sm:$0xf]  ;;  %v462_v51 = vld [vmem:[%s819_s0 + $0x38] sm:$0xf0]  ;;  %v457_v53 = vor.u32 %v598_v46, %v454_v47 }
  0x11   :  { %377 = vmatpush.bf16.msra.mxu3 %v630_v15  ;;  %v461_v54 = vor.u32 %v601_v49, %v460_v48  ;;  %v465_v55 = vor.u32 %v599_v50, %v462_v51 }
  0x12   :  { %321 = vmatpush.bf16.msra.mxu0 %v605_v16 }
  0x13   :  { %340 = vmatpush.bf16.msra.mxu1 %v613_v17 }
  0x14   :  { %359 = vmatpush.bf16.msra.mxu2 %v621_v18 }
  0x15   :  { %378 = vmatpush.bf16.msra.mxu3 %v629_v19 }
  0x16   :  { %322 = vmatpush.bf16.msra.mxu0 %v604_v20 }
  0x17   :  { %341 = vmatpush.bf16.msra.mxu1 %v612_v21 }
  0x18   :  { %360 = vmatpush.bf16.msra.mxu2 %v620_v22 }
  0x19   :  { %379 = vmatpush.bf16.msra.mxu3 %v628_v23 }
  0x1a   :  { %323 = vmatpush.bf16.msra.mxu0 %v603_v24 }
  0x1b   :  { %342 = vmatpush.bf16.msra.mxu1 %v611_v25 }
  0x1c   :  { %361 = vmatpush.bf16.msra.mxu2 %v619_v26 }
  0x1d   :  { %380 = vmatpush.bf16.msra.mxu3 %v627_v27 }
  0x1e   :  { %324 = vmatpush.bf16.msra.mxu0 %v602_v28 }
  0x1f   :  { %343 = vmatpush.bf16.msra.mxu1 %v610_v29 }
  0x20   :  { %362 = vmatpush.bf16.msra.mxu2 %v618_v30 }
  0x21   :  { %381 = vmatpush.bf16.msra.mxu3 %v626_v31  ;;  %325 = vmatmul.bf16.vlgmr.msra.gmra.mxu0 %v437_v40 }
  0x22   :  { %344 = vmatmul.bf16.vlgmr.msra.gmra.mxu1 %v441_v41 }
  0x23   :  { %363 = vmatmul.bf16.vlgmr.msra.gmra.mxu2 %v445_v42 }
  0x24   :  { %382 = vmatmul.bf16.vlgmr.msra.gmra.mxu3 %v449_v43 }
  0x31   :  { %330 = vmatmul.bf16.gmra.mxu0 %v453_v52 }
  0x32   :  { %349 = vmatmul.bf16.gmra.mxu1 %v457_v53 }
  0x33   :  { %368 = vmatmul.bf16.gmra.mxu2 %v461_v54 }
  0x34   :  { %387 = vmatmul.bf16.gmra.mxu3 %v465_v55 }
  0x9e   :  { %v326_v56 = vpop.f32.mrf.mxu0 }
  0x9f   :  { %v345_v57 = vpop.f32.mrf.mxu1 }
  0xa0   :  { %v346_v62 = vadd.f32 %v345_v57, %v326_v56 }
  0xa6   :  { %v364_v58 = vpop.f32.mrf.mxu2  ;;  %v328_v60 = vpop.f32.mrf.mxu0 }
  0xa7   :  { %v383_v59 = vpop.f32.mrf.mxu3  ;;  %v347_v61 = vpop.f32.mrf.mxu1  ;;  %v365_v63 = vadd.f32 %v364_v58, %v346_v62 }
  0xa8   :  { %v348_v0 = vadd.f32 %v347_v61, %v328_v60 }
  0xa9   :  { %v384_v6 = vadd.f32 %v383_v59, %v365_v63 }
  0xab   :  { %v410_v19 = vmul.f32 %v384_v6, %v384_v6 }
  0xae   :  { %v366_v1 = vpop.f32.mrf.mxu2  ;;  %v331_v4 = vpop.f32.mrf.mxu0 }
  0xaf   :  { %v385_v2 = vpop.f32.mrf.mxu3  ;;  %v367_v3 = vadd.f32 %v366_v1, %v348_v0  ;;  %v350_v5 = vpop.f32.mrf.mxu1 }
  0xb0   :  { %v351_v9 = vadd.f32 %v350_v5, %v331_v4 }
  0xb1   :  { %v386_v7 = vadd.f32 %v385_v2, %v367_v3 }
  0xb3   :  { %v637_v8 = vpack.c.bf16 %v386_v7, %v384_v6  ;;  %v411_v16 = vmul.f32 %v386_v7, %v386_v7  ;;  %v401_v20 = vadd.f32 %v386_v7, %v384_v6 }
  0xb5   :  { %638 = vst [vmem:[%s820_s2] sm:$0xff] %v637_v8   ;;  %v414_v24 = vadd.f32 %v411_v16, %v410_v19 }
  0xb6   :  { %v369_v10 = vpop.f32.mrf.mxu2  ;;  %v333_v13 = vpop.f32.mrf.mxu0 }
  0xb7   :  { %v388_v11 = vpop.f32.mrf.mxu3  ;;  %v370_v12 = vadd.f32 %v369_v10, %v351_v9  ;;  %v352_v14 = vpop.f32.mrf.mxu1 }
  0xb8   :  { %v353_v17 = vadd.f32 %v352_v14, %v333_v13 }
  0xb9   :  { %v389_v15 = vadd.f32 %v388_v11, %v370_v12 }
  0xbb   :  { %v412_v21 = vmul.f32 %v389_v15, %v389_v15  ;;  %v402_v25 = vadd.f32 %v401_v20, %v389_v15 }
  0xbd   :  { %v415_v27 = vadd.f32 %v414_v24, %v412_v21 }
  0xbe   :  { %v371_v18 = vpop.f32.mrf.mxu2 }
  0xbf   :  { %v372_v22 = vadd.f32 %v371_v18, %v353_v17  ;;  %v390_v23 = vpop.f32.mrf.mxu3 }
  0xc1   :  { %v391_v26 = vadd.f32 %v390_v23, %v372_v22 }
  0xc3   :  { %v642_v28 = vpack.c.bf16 %v391_v26, %v389_v15  ;;  %v403_v29 = vadd.f32 %v402_v25, %v391_v26  ;;  %v413_v30 = vmul.f32 %v391_v26, %v391_v26 }
  0xc5   :  { %644 = vst [vmem:[%s820_s2 + $0x8] sm:$0xff] %v642_v28   ;;  %v404_v31 = vrot.slane %v403_v29, 4  ;;  %v416_v32 = vadd.f32 %v415_v27, %v413_v30 }
  0xc7   :  { %v405_v33 = vadd.f32 %v404_v31, %v403_v29  ;;  %v417_v34 = vrot.slane %v416_v32, 4 }
  0xc9   :  { %v406_v35 = vrot.slane %v405_v33, 2  ;;  %v418_v36 = vadd.f32 %v417_v34, %v416_v32 }
  0xcb   :  { %v407_v37 = vadd.f32 %v406_v35, %v405_v33  ;;  %v419_v38 = vrot.slane %v418_v36, 2 }
  0xcd   :  { %v408_v39 = vrot.slane %v407_v37, 1  ;;  %v420_v40 = vadd.f32 %v419_v38, %v418_v36 }
  0xcf   :  { %v421_v41 = vrot.slane %v420_v40, 1  ;;  %v409_v42 = vadd.f32 %v408_v39, %v407_v37 }
  0xd1   :  { %v422_v43 = vadd.f32 %v421_v41, %v420_v40 }
  0xd3   :  { %v424_v44 = vsel %vm423_vm0, %v409_v42, %v422_v43 }
  0xd4   :  { %425 = vst [vmem:[%s821_s3] sm:$0x3] %v424_v44 }

</bundles_post_ra>
